<compile_context>
chip_gen: v7x
topology: tpu7x:2x2x1
jax: 0.10.0
libtpu: 0.0.40
codegen_flags: <defaults>
</compile_context>

<pallas_src>
import functools
import math

import jax
import jax.numpy as jnp
import numpy as np
from jax.experimental import pallas as pl
from jax.experimental.pallas import tpu as pltpu


# ----------------------------------------------------------------------------
# Fused Pallas kernel (one grid step == one batch sample)
# ----------------------------------------------------------------------------

def _synthesis_block_kernel(
    ws_ref, xz_ref, imgz_ref,
    aw_ref, ab_ref,
    w0t_ref, ww0_ref, b0_ref, n0_ref,
    w1t_ref, ww1_ref, b1_ref, n1_ref,
    w2m_ref, b2_ref,
    m_t_ref, m_v_ref,
    y_ref, img_ref,
    buf_ref,
    *, canvas, npix, margin, cin, cmid, cimg, act_gain, clamp, blur):
  f32 = jnp.float32

  # Zero the scratch margins each step (interior is rewritten before every use).  Cheap, and
  # keeps the kernel correct even when the parallel batch axis is split across cores.
  zero_m = jnp.zeros((margin, buf_ref.shape[1]), f32)
  buf_ref[:margin, :] = zero_m
  buf_ref[margin + npix:, :] = zero_m

  def stage(src, ncols):
    # Park `src` (npix, ncols) in scratch so row-shifted windows are static slices
    # (the zero margins provide the spatial zero padding).
    buf_ref[margin:margin + npix, :ncols] = src

  def shifted(delta, ncols):
    return buf_ref[margin + delta: margin + delta + npix, :ncols]

  ws = ws_ref[...].astype(f32)                       # (3, w_dim)

  # ---- affine style vectors: single fused matmul, gains pre-folded into params ----
  s_all = jnp.dot(ws, aw_ref[...], preferred_element_type=f32) + ab_ref[...]   # (3, cin+2*cmid)
  s0 = s_all[0:1, 0:cin]                              # conv0 styles    (1, cin)
  s1 = s_all[1:2, cin:cin + cmid]                     # conv1 styles    (1, cmid)
  s2 = s_all[2:3, cin + cmid:cin + 2 * cmid]          # torgb styles    (1, cmid)

  # ---------------- conv0: modulate -> transposed 3x3 conv (up=2) ----------------
  stage(xz_ref[...].astype(f32) * s0, cin)           # zero-stuffed, modulated input
  t = jnp.zeros((npix, cmid), f32)
  for a in range(3):
    for b in range(3):
      t = t + jnp.dot(shifted(a * canvas + b, cin), w0t_ref[a * 3 + b],
                      preferred_element_type=f32)
  t = t * m_t_ref[...]                               # keep valid (res+1)^2 block only

  # resample filter (upfirdn2d, separable 4 taps, gain folded into `blur`);
  # output lands at canvas offset (1, 1).
  stage(t, cmid)
  y = jnp.zeros((npix, cmid), f32)
  for u in range(4):
    for v in range(4):
      y = y + (blur[u] * blur[v]) * shifted((u - 2) * canvas + (v - 2), cmid)

  d0 = jax.lax.rsqrt(jnp.dot(s0 * s0, ww0_ref[...], preferred_element_type=f32) + 1e-8)
  y = y * d0 + n0_ref[...]                           # demodulate + const noise
  y = y + b0_ref[...]
  y = jnp.where(y >= 0.0, y, 0.2 * y) * act_gain     # lrelu (def_gain folded)
  y = jnp.clip(y, -clamp, clamp)
  y = y * m_v_ref[...]                               # zero ring == padding for conv1

  # ---------------- conv1: modulate -> 3x3 conv (up=1) ----------------
  stage(y * s1, cmid)
  t1 = jnp.zeros((npix, cmid), f32)
  for a in range(3):
    for b in range(3):
      t1 = t1 + jnp.dot(shifted((a - 1) * canvas + (b - 1), cmid), w1t_ref[a * 3 + b],
                        preferred_element_type=f32)
  d1 = jax.lax.rsqrt(jnp.dot(s1 * s1, ww1_ref[...], preferred_element_type=f32) + 1e-8)
  t1 = t1 * d1 + n1_ref[...]
  t1 = t1 + b1_ref[...]
  t1 = jnp.where(t1 >= 0.0, t1, 0.2 * t1) * act_gain
  t1 = jnp.clip(t1, -clamp, clamp)
  y_ref[...] = t1

  # ---------------- torgb: 1x1 modulated conv (no demod) + bias + clamp ----------------
  rgb = jnp.dot(t1 * s2, w2m_ref[...], preferred_element_type=f32) + b2_ref[...]
  rgb = jnp.clip(rgb, -clamp, clamp)

  # ---------------- skip image: upsample2d (blur of zero-stuffed img) + add ----------------
  stage(imgz_ref[...].astype(f32), cimg)
  img_up = jnp.zeros((npix, cimg), f32)
  for u in range(4):
    for v in range(4):
      img_up = img_up + (blur[u] * blur[v]) * shifted((u - 1) * canvas + (v - 1), cimg)
  img_ref[...] = img_up + rgb


# ----------------------------------------------------------------------------
# Module wrapper
# ----------------------------------------------------------------------------

class SynthesisBlockPallas:
  """Pallas TPU port of SynthesisBlock.forward ('skip' architecture, in_channels != 0, fp32)."""

  def __init__(self, in_channels, out_channels, w_dim, resolution, img_channels,
               is_last=True, architecture='skip', conv_clamp=256, *, key):
    assert architecture == 'skip' and in_channels != 0
    self.in_channels = in_channels
    self.out_channels = out_channels
    self.w_dim = w_dim
    self.resolution = resolution
    self.img_channels = img_channels
    self.is_last = is_last
    self.conv_clamp = float(conv_clamp)
    self.num_conv = 2
    self.num_torgb = 1

    ks = jax.random.split(key, 11)
    r = resolution
    # Raw parameters (PyTorch conventions). Biases / noise strengths get small nonzero
    # values so those code paths are actually exercised (they are zeros at torch init).
    self.params = dict(
        affine0_w=jax.random.normal(ks[0], (in_channels, w_dim), jnp.float32),
        affine0_b=jnp.ones((in_channels,), jnp.float32),
        conv0_w=jax.random.normal(ks[1], (out_channels, in_channels, 3, 3), jnp.float32),
        conv0_b=0.1 * jax.random.normal(ks[2], (out_channels,), jnp.float32),
        noise_const0=jax.random.normal(ks[3], (r, r), jnp.float32),
        noise_strength0=jnp.float32(0.1),
        affine1_w=jax.random.normal(ks[4], (out_channels, w_dim), jnp.float32),
        affine1_b=jnp.ones((out_channels,), jnp.float32),
        conv1_w=jax.random.normal(ks[5], (out_channels, out_channels, 3, 3), jnp.float32),
        conv1_b=0.1 * jax.random.normal(ks[6], (out_channels,), jnp.float32),
        noise_const1=jax.random.normal(ks[7], (r, r), jnp.float32),
        noise_strength1=jnp.float32(0.15),
        torgb_affine_w=jax.random.normal(ks[8], (out_channels, w_dim), jnp.float32),
        torgb_affine_b=jnp.ones((out_channels,), jnp.float32),
        torgb_w=jax.random.normal(ks[9], (img_channels, out_channels, 1, 1), jnp.float32),
        torgb_b=0.1 * jax.random.normal(ks[10], (img_channels,), jnp.float32),
    )
    self._prepare_folded()
    self._jit_fwd = jax.jit(self._forward)

  # ---- fold gains / transposes / flips into the parameters once, host side ----
  def _prepare_folded(self):
    p = self.params
    wd, cin, cmid, cimg, r = (self.w_dim, self.in_channels, self.out_channels,
                              self.img_channels, self.resolution)
    self.canvas = canvas = r + 3
    self.npix = npix = canvas * canvas
    self.margin = 2 * canvas + 2

    ag = 1.0 / math.sqrt(wd)                    # FullyConnectedLayer weight_gain (lr_mult=1)
    rgb_gain = 1.0 / math.sqrt(cmid)            # ToRGBLayer weight_gain (1x1 kernel)
    c = {}
    # Fused affine: ws (3, w_dim) @ [A0 | A1 | A2*rgb_gain] + [b0 | b1 | b2*rgb_gain]
    c['aw'] = jnp.concatenate([(p['affine0_w'] * ag).T,
                               (p['affine1_w'] * ag).T,
                               (p['torgb_affine_w'] * ag).T * rgb_gain], axis=1)
    c['ab'] = jnp.concatenate([p['affine0_b'],
                               p['affine1_b'],
                               p['torgb_affine_b'] * rgb_gain])[None, :]
    # conv0 (up=2): transposed conv == correlate zero-stuffed input with the spatially
    # flipped weight, contracting the input channel (tap k = a*3+b -> (cin, cout)).
    c['w0t'] = jnp.flip(p['conv0_w'], (2, 3)).transpose(2, 3, 1, 0).reshape(9, cin, cmid)
    c['ww0'] = jnp.sum(p['conv0_w'] ** 2, axis=(2, 3)).T
    c['b0'] = p['conv0_b'][None, :]
    # conv1 (up=1): plain correlation.
    c['w1t'] = p['conv1_w'].transpose(2, 3, 1, 0).reshape(9, cmid, cmid)
    c['ww1'] = jnp.sum(p['conv1_w'] ** 2, axis=(2, 3)).T
    c['b1'] = p['conv1_b'][None, :]
    c['w2m'] = p['torgb_w'][:, :, 0, 0].T
    c['b2'] = p['torgb_b'][None, :]

    def on_canvas(img2d, off):
      z = jnp.zeros((canvas, canvas), jnp.float32)
      z = z.at[off:off + img2d.shape[0], off:off + img2d.shape[1]].set(img2d)
      return z.reshape(npix, 1)

    c['n0'] = on_canvas(p['noise_const0'] * p['noise_strength0'], 1)
    c['n1'] = on_canvas(p['noise_const1'] * p['noise_strength1'], 1)
    rows = np.arange(canvas)
    m_t = ((rows[:, None] < r + 1) & (rows[None, :] < r + 1)).astype(np.float32)
    m_v = ((rows[:, None] >= 1) & (rows[:, None] <= r) &
           (rows[None, :] >= 1) & (rows[None, :] <= r)).astype(np.float32)
    c['m_t'] = jnp.asarray(m_t.reshape(npix, 1))
    c['m_v'] = jnp.asarray(m_v.reshape(npix, 1))
    self.consts = c

  def __call__(self, x, img, ws):
    return self._jit_fwd(x, img, ws)

  def _forward(self, x, img, ws):
    B = x.shape[0]
    r = self.resolution
    hin = r // 2
    cin, cmid, cimg = self.in_channels, self.out_channels, self.img_channels
    canvas, npix, margin = self.canvas, self.npix, self.margin
    c = self.consts

    assert x.shape == (B, cin, hin, hin)
    assert img.shape == (B, cimg, hin, hin)
    assert ws.shape == (B, self.num_conv + self.num_torgb, self.w_dim)

    # ---- layout plumbing: NCHW -> zero-stuffed channels-last canvases ----
    def stuff(t_nchw, nc):
      t = jnp.transpose(t_nchw, (0, 2, 3, 1)).astype(jnp.float32)
      z = jnp.zeros((B, canvas, canvas, nc), jnp.float32)
      z = z.at[:, 2:2 + 2 * hin:2, 2:2 + 2 * hin:2, :].set(t)
      return z.reshape(B, npix, nc)

    xz = stuff(x, cin)
    imgz = stuff(img, cimg)

    kernel = functools.partial(
        _synthesis_block_kernel,
        canvas=canvas, npix=npix, margin=margin,
        cin=cin, cmid=cmid, cimg=cimg,
        act_gain=math.sqrt(2.0), clamp=self.conv_clamp,
        blur=(0.25, 0.75, 0.75, 0.25))  # [1,3,3,1]/8 * sqrt(gain=4) per pass

    def sample_spec(nc):
      return pl.BlockSpec((None, npix, nc), lambda b: (b, 0, 0))

    def const_spec(arr):
      nd = arr.ndim
      return pl.BlockSpec(arr.shape, lambda b, _n=nd: (0,) * _n)

    const_names = ['aw', 'ab',
                   'w0t', 'ww0', 'b0', 'n0',
                   'w1t', 'ww1', 'b1', 'n1',
                   'w2m', 'b2', 'm_t', 'm_v']
    const_args = [c[k] for k in const_names]

    in_specs = ([pl.BlockSpec((None, 3, self.w_dim), lambda b: (b, 0, 0)),
                 sample_spec(cin), sample_spec(cimg)]
                + [const_spec(a) for a in const_args])
    out_specs = (sample_spec(cmid), sample_spec(cimg))
    out_shape = (jax.ShapeDtypeStruct((B, npix, cmid), jnp.float32),
                 jax.ShapeDtypeStruct((B, npix, cimg), jnp.float32))

    y_canvas, img_canvas = pl.pallas_call(
        kernel,
        grid=(B,),
        in_specs=in_specs,
        out_specs=out_specs,
        out_shape=out_shape,
        scratch_shapes=[pltpu.VMEM((npix + 2 * margin, max(cin, cmid, cimg)),
                                   jnp.float32)],
        compiler_params=pltpu.CompilerParams(dimension_semantics=("parallel",)),
    )(ws, xz, imgz, *const_args)

    # ---- extract the valid resolution x resolution window (canvas offset (1, 1)) ----
    y = jnp.transpose(
        y_canvas.reshape(B, canvas, canvas, cmid)[:, 1:1 + r, 1:1 + r, :], (0, 3, 1, 2))
    img_out = jnp.transpose(
        img_canvas.reshape(B, canvas, canvas, cimg)[:, 1:1 + r, 1:1 + r, :], (0, 3, 1, 2))
    return y, img_out


# ----------------------------------------------------------------------------
# Independent float64 NumPy reference (mirrors the PyTorch ops)
# ----------------------------------------------------------------------------

def _np_affine(wlat, A, b, lr_mult=1.0):
  wg = lr_mult / np.sqrt(A.shape[1])
  return wlat @ (A * wg).T + b * lr_mult


def _np_conv2d(x, w, padding, flip_weight):
  if not flip_weight:
    w = w[:, :, ::-1, ::-1]
  B, Ci, H, W = x.shape
  Co, _, kh, kw = w.shape
  xp = np.pad(x, ((0, 0), (0, 0), (padding, padding), (padding, padding)))
  Ho, Wo = H + 2 * padding - kh + 1, W + 2 * padding - kw + 1
  out = np.zeros((B, Co, Ho, Wo))
  for a in range(kh):
    for b in range(kw):
      out += np.einsum('bchw,oc->bohw', xp[:, :, a:a + Ho, b:b + Wo], w[:, :, a, b])
  return out


def _np_conv_transpose2d(x, wt, stride):
  B, Ci, H, W = x.shape
  _, Co, kh, kw = wt.shape
  out = np.zeros((B, Co, (H - 1) * stride + kh, (W - 1) * stride + kw))
  for i in range(H):
    for j in range(W):
      out[:, :, i * stride:i * stride + kh, j * stride:j * stride + kw] += np.einsum(
          'bc,cokl->bokl', x[:, :, i, j], wt)
  return out


def _np_upfirdn2d(x, f1d, up, pad, gain):
  B, C, H, W = x.shape
  if up > 1:
    u = np.zeros((B, C, H * up, W * up))
    u[:, :, ::up, ::up] = x
    x = u
  padx0, padx1, pady0, pady1 = pad
  x = np.pad(x, ((0, 0), (0, 0), (pady0, pady1), (padx0, padx1)))
  f = np.asarray(f1d, np.float64)[::-1] * (gain ** 0.5)
  n = len(f)
  Ho = x.shape[2] - n + 1
  x = sum(f[k] * x[:, :, k:k + Ho, :] for k in range(n))
  Wo = x.shape[3] - n + 1
  x = sum(f[k] * x[:, :, :, k:k + Wo] for k in range(n))
  return x


def _np_conv2d_resample(x, w, f1d, up, padding, flip_weight):
  if up == 1:
    return _np_conv2d(x, w, padding, flip_weight)
  kh = w.shape[2]
  fw = len(f1d)
  p0 = padding + (fw + up - 1) // 2 - (kh - 1)
  p1 = padding + (fw - up) // 2 - (kh - up)
  wt = np.transpose(w, (1, 0, 2, 3))
  if flip_weight:                      # _conv2d_wrapper gets flip_weight = not flip_weight
    wt = wt[:, :, ::-1, ::-1]
  y = _np_conv_transpose2d(x, wt, stride=up)
  return _np_upfirdn2d(y, f1d, up=1, pad=(p0, p1, p0, p1), gain=up * up)


def _np_modulated_conv2d(x, weight, styles, noise, up, padding, f1d, demodulate, flip_weight):
  B = x.shape[0]
  w = weight[None] * styles[:, None, :, None, None]
  if demodulate:
    d = 1.0 / np.sqrt(np.sum(w ** 2, axis=(2, 3, 4)) + 1e-8)
    w = w * d[:, :, None, None, None]
  y = np.concatenate([_np_conv2d_resample(x[b:b + 1], w[b], f1d, up, padding, flip_weight)
                      for b in range(B)], axis=0)
  if noise is not None:
    y = y + noise
  return y


def _np_bias_act(x, b, act, gain, clamp):
  x = x + b.reshape(1, -1, 1, 1)
  if act == 'lrelu':
    x = np.where(x >= 0, x, 0.2 * x)
  x = x * gain
  return np.clip(x, -clamp, clamp)


def _reference_forward(params, x, img, ws, *, clamp):
  p = {k: np.asarray(v, np.float64) for k, v in params.items()}
  f1d = np.array([1.0, 3.0, 3.0, 1.0]); f1d = f1d / f1d.sum()
  s0 = _np_affine(ws[:, 0], p['affine0_w'], p['affine0_b'])
  y = _np_modulated_conv2d(x, p['conv0_w'], s0, p['noise_const0'] * p['noise_strength0'],
                           up=2, padding=1, f1d=f1d, demodulate=True, flip_weight=False)
  y = _np_bias_act(y, p['conv0_b'], 'lrelu', np.sqrt(2.0), clamp)
  s1 = _np_affine(ws[:, 1], p['affine1_w'], p['affine1_b'])
  y = _np_modulated_conv2d(y, p['conv1_w'], s1, p['noise_const1'] * p['noise_strength1'],
                           up=1, padding=1, f1d=f1d, demodulate=True, flip_weight=True)
  y = _np_bias_act(y, p['conv1_b'], 'lrelu', np.sqrt(2.0), clamp)
  img_up = _np_upfirdn2d(img, f1d, up=2, pad=(2, 1, 2, 1), gain=4)
  s2 = _np_affine(ws[:, 2], p['torgb_affine_w'], p['torgb_affine_b'])
  s2 = s2 / np.sqrt(p['torgb_w'].shape[1])
  rgb = _np_modulated_conv2d(y, p['torgb_w'], s2, None, up=1, padding=0, f1d=f1d,
                             demodulate=False, flip_weight=True)
  rgb = _np_bias_act(rgb, p['torgb_b'], 'linear', 1.0, clamp)
  return y, img_up + rgb


# ----------------------------------------------------------------------------

if __name__ == "__main__":
  key = jax.random.PRNGKey(0)
  k_params, k_x, k_img, k_ws = jax.random.split(key, 4)

  batch = 2
  in_channels, out_channels = 16, 32
  w_dim, resolution, img_channels = 32, 8, 3

  block = SynthesisBlockPallas(in_channels, out_channels, w_dim, resolution,
                               img_channels, is_last=True, architecture='skip',
                               conv_clamp=256, key=k_params)

  x = jax.random.normal(k_x, (batch, in_channels, resolution // 2, resolution // 2), jnp.float32)
  img = jax.random.normal(k_img, (batch, img_channels, resolution // 2, resolution // 2), jnp.float32)
  ws = jax.random.normal(k_ws, (batch, 3, w_dim), jnp.float32)

  y, img_out = block(x, img, ws)
  y, img_out = jax.block_until_ready((y, img_out))
  assert y.shape == (batch, out_channels, resolution, resolution), y.shape
  assert img_out.shape == (batch, img_channels, resolution, resolution), img_out.shape

  y_ref, img_ref = _reference_forward(block.params,
                                      np.asarray(x, np.float64),
                                      np.asarray(img, np.float64),
                                      np.asarray(ws, np.float64),
                                      clamp=256.0)
  np.testing.assert_allclose(np.asarray(y), y_ref, rtol=1e-2, atol=1e-2)
  np.testing.assert_allclose(np.asarray(img_out), img_ref, rtol=1e-2, atol=1e-2)
  print("KERNEL_OK")
</pallas_src>

<mosaic_0001>
module attributes {stable_mosaic.version = 11 : i64} {
  func.func @_synthesis_block_kernel(%arg0: i32, %arg1: memref<1x3x32xf32, #tpu.memory_space<vmem>>, %arg2: memref<1x121x16xf32, #tpu.memory_space<vmem>>, %arg3: memref<1x121x3xf32, #tpu.memory_space<vmem>>, %arg4: memref<32x80xf32, #tpu.memory_space<vmem>>, %arg5: memref<1x80xf32, #tpu.memory_space<vmem>>, %arg6: memref<9x16x32xf32, #tpu.memory_space<vmem>>, %arg7: memref<16x32xf32, #tpu.memory_space<vmem>>, %arg8: memref<1x32xf32, #tpu.memory_space<vmem>>, %arg9: memref<121x1xf32, #tpu.memory_space<vmem>>, %arg10: memref<9x32x32xf32, #tpu.memory_space<vmem>>, %arg11: memref<32x32xf32, #tpu.memory_space<vmem>>, %arg12: memref<1x32xf32, #tpu.memory_space<vmem>>, %arg13: memref<121x1xf32, #tpu.memory_space<vmem>>, %arg14: memref<32x3xf32, #tpu.memory_space<vmem>>, %arg15: memref<1x3xf32, #tpu.memory_space<vmem>>, %arg16: memref<121x1xf32, #tpu.memory_space<vmem>>, %arg17: memref<121x1xf32, #tpu.memory_space<vmem>>, %arg18: memref<1x121x32xf32, #tpu.memory_space<vmem>>, %arg19: memref<1x121x3xf32, #tpu.memory_space<vmem>>, %arg20: memref<169x32xf32, #tpu.memory_space<vmem>>) attributes {dimension_semantics = [#tpu.dimension_semantics<parallel>], iteration_bounds = array<i64: 2>, scalar_prefetch = 0 : i64, scratch_operands = 1 : i64, tpu.core_type = #tpu.core_type<tc>, window_params = [{transform_indices = @transform_0, window_bounds = array<i64: 1, 3, 32>}, {transform_indices = @transform_1, window_bounds = array<i64: 1, 121, 16>}, {transform_indices = @transform_2, window_bounds = array<i64: 1, 121, 3>}, {pipeline_mode = #tpu.pipeline_mode<synchronous>, transform_indices = @transform_3, window_bounds = array<i64: 32, 80>}, {pipeline_mode = #tpu.pipeline_mode<synchronous>, transform_indices = @transform_4, window_bounds = array<i64: 1, 80>}, {pipeline_mode = #tpu.pipeline_mode<synchronous>, transform_indices = @transform_5, window_bounds = array<i64: 9, 16, 32>}, {pipeline_mode = #tpu.pipeline_mode<synchronous>, transform_indices = @transform_6, window_bounds = array<i64: 16, 32>}, {pipeline_mode = #tpu.pipeline_mode<synchronous>, transform_indices = @transform_7, window_bounds = array<i64: 1, 32>}, {pipeline_mode = #tpu.pipeline_mode<synchronous>, transform_indices = @transform_8, window_bounds = array<i64: 121, 1>}, {pipeline_mode = #tpu.pipeline_mode<synchronous>, transform_indices = @transform_9, window_bounds = array<i64: 9, 32, 32>}, {pipeline_mode = #tpu.pipeline_mode<synchronous>, transform_indices = @transform_10, window_bounds = array<i64: 32, 32>}, {pipeline_mode = #tpu.pipeline_mode<synchronous>, transform_indices = @transform_11, window_bounds = array<i64: 1, 32>}, {pipeline_mode = #tpu.pipeline_mode<synchronous>, transform_indices = @transform_12, window_bounds = array<i64: 121, 1>}, {pipeline_mode = #tpu.pipeline_mode<synchronous>, transform_indices = @transform_13, window_bounds = array<i64: 32, 3>}, {pipeline_mode = #tpu.pipeline_mode<synchronous>, transform_indices = @transform_14, window_bounds = array<i64: 1, 3>}, {pipeline_mode = #tpu.pipeline_mode<synchronous>, transform_indices = @transform_15, window_bounds = array<i64: 121, 1>}, {pipeline_mode = #tpu.pipeline_mode<synchronous>, transform_indices = @transform_16, window_bounds = array<i64: 121, 1>}, {transform_indices = @transform_17, window_bounds = array<i64: 1, 121, 32>}, {transform_indices = @transform_18, window_bounds = array<i64: 1, 121, 3>}]} {
    %cst = arith.constant 0.000000e+00 : f32
    %0 = vector.broadcast %cst : f32 to vector<24x32xf32>
    %c0 = arith.constant 0 : index
    %c0_0 = arith.constant 0 : index
    %1 = vector.load %arg20[%c0, %c0_0] : memref<169x32xf32, #tpu.memory_space<vmem>>, vector<24x32xf32>
    tpu.vector_store %arg20[%c0, %c0_0], %0 {strides = array<i32>} : memref<169x32xf32, #tpu.memory_space<vmem>>, vector<24x32xf32>,
    %c145 = arith.constant 145 : index
    %c0_1 = arith.constant 0 : index
    %2 = vector.load %arg20[%c145, %c0_1] : memref<169x32xf32, #tpu.memory_space<vmem>>, vector<24x32xf32>
    tpu.vector_store %arg20[%c145, %c0_1], %0 {strides = array<i32>} : memref<169x32xf32, #tpu.memory_space<vmem>>, vector<24x32xf32>,
    %c0_2 = arith.constant 0 : index
    %c0_3 = arith.constant 0 : index
    %c0_4 = arith.constant 0 : index
    %3 = vector.load %arg1[%c0_2, %c0_3, %c0_4] : memref<1x3x32xf32, #tpu.memory_space<vmem>>, vector<1x3x32xf32>
    %4 = vector.shape_cast %3 : vector<1x3x32xf32> to vector<3x32xf32>
    %c0_5 = arith.constant 0 : index
    %c0_6 = arith.constant 0 : index
    %5 = vector.load %arg4[%c0_5, %c0_6] : memref<32x80xf32, #tpu.memory_space<vmem>>, vector<32x80xf32>
    %cst_7 = arith.constant dense<0.000000e+00> : vector<3x80xf32>
    %6 = tpu.matmul %4, %5, %cst_7 {dimension_numbers = #tpu.dot_dimension_numbers<[1], [0], [0], [1], [0, 0, 1, 1], [], []>} : vector<3x32xf32>, vector<32x80xf32>, vector<3x80xf32> -> vector<3x80xf32>
    %c0_8 = arith.constant 0 : index
    %c0_9 = arith.constant 0 : index
    %7 = vector.load %arg5[%c0_8, %c0_9] : memref<1x80xf32, #tpu.memory_space<vmem>>, vector<1x80xf32>
    %8 = vector.broadcast %7 : vector<1x80xf32> to vector<3x80xf32>
    %9 = arith.addf %6, %8 : vector<3x80xf32>
    %10 = vector.extract_strided_slice %9 {offsets = [0, 0], sizes = [1, 16], strides = [1, 1]} : vector<3x80xf32> to vector<1x16xf32>
    %11 = vector.extract_strided_slice %9 {offsets = [1, 16], sizes = [1, 32], strides = [1, 1]} : vector<3x80xf32> to vector<1x32xf32>
    %12 = vector.extract_strided_slice %9 {offsets = [2, 48], sizes = [1, 32], strides = [1, 1]} : vector<3x80xf32> to vector<1x32xf32>
    %c0_10 = arith.constant 0 : index
    %c0_11 = arith.constant 0 : index
    %c0_12 = arith.constant 0 : index
    %13 = vector.load %arg2[%c0_10, %c0_11, %c0_12] : memref<1x121x16xf32, #tpu.memory_space<vmem>>, vector<1x121x16xf32>
    %14 = vector.shape_cast %13 : vector<1x121x16xf32> to vector<121x16xf32>
    %15 = vector.broadcast %10 : vector<1x16xf32> to vector<121x16xf32>
    %16 = arith.mulf %14, %15 : vector<121x16xf32>
    %c24 = arith.constant 24 : index
    %c0_13 = arith.constant 0 : index
    %17 = vector.load %arg20[%c24, %c0_13] : memref<169x32xf32, #tpu.memory_space<vmem>>, vector<121x16xf32>
    tpu.vector_store %arg20[%c24, %c0_13], %16 {strides = array<i32>} : memref<169x32xf32, #tpu.memory_space<vmem>>, vector<121x16xf32>,
    %cst_14 = arith.constant 0.000000e+00 : f32
    %18 = vector.broadcast %cst_14 : f32 to vector<121x32xf32>
    %c24_15 = arith.constant 24 : index
    %c0_16 = arith.constant 0 : index
    %19 = vector.load %arg20[%c24_15, %c0_16] : memref<169x32xf32, #tpu.memory_space<vmem>>, vector<121x16xf32>
    %c0_17 = arith.constant 0 : index
    %c0_18 = arith.constant 0 : index
    %c0_19 = arith.constant 0 : index
    %20 = vector.load %arg6[%c0_17, %c0_18, %c0_19] : memref<9x16x32xf32, #tpu.memory_space<vmem>>, vector<1x16x32xf32>
    %21 = vector.shape_cast %20 : vector<1x16x32xf32> to vector<16x32xf32>
    %cst_20 = arith.constant dense<0.000000e+00> : vector<121x32xf32>
    %22 = tpu.matmul %19, %21, %cst_20 {dimension_numbers = #tpu.dot_dimension_numbers<[1], [0], [0], [1], [0, 0, 1, 1], [], []>} : vector<121x16xf32>, vector<16x32xf32>, vector<121x32xf32> -> vector<121x32xf32>
    %23 = arith.addf %18, %22 : vector<121x32xf32>
    %c25 = arith.constant 25 : index
    %c0_21 = arith.constant 0 : index
    %24 = vector.load %arg20[%c25, %c0_21] : memref<169x32xf32, #tpu.memory_space<vmem>>, vector<121x16xf32>
    %c1 = arith.constant 1 : index
    %c0_22 = arith.constant 0 : index
    %c0_23 = arith.constant 0 : index
    %25 = vector.load %arg6[%c1, %c0_22, %c0_23] : memref<9x16x32xf32, #tpu.memory_space<vmem>>, vector<1x16x32xf32>
    %26 = vector.shape_cast %25 : vector<1x16x32xf32> to vector<16x32xf32>
    %cst_24 = arith.constant dense<0.000000e+00> : vector<121x32xf32>
    %27 = tpu.matmul %24, %26, %cst_24 {dimension_numbers = #tpu.dot_dimension_numbers<[1], [0], [0], [1], [0, 0, 1, 1], [], []>} : vector<121x16xf32>, vector<16x32xf32>, vector<121x32xf32> -> vector<121x32xf32>
    %28 = arith.addf %23, %27 : vector<121x32xf32>
    %c26 = arith.constant 26 : index
    %c0_25 = arith.constant 0 : index
    %29 = vector.load %arg20[%c26, %c0_25] : memref<169x32xf32, #tpu.memory_space<vmem>>, vector<121x16xf32>
    %c2 = arith.constant 2 : index
    %c0_26 = arith.constant 0 : index
    %c0_27 = arith.constant 0 : index
    %30 = vector.load %arg6[%c2, %c0_26, %c0_27] : memref<9x16x32xf32, #tpu.memory_space<vmem>>, vector<1x16x32xf32>
    %31 = vector.shape_cast %30 : vector<1x16x32xf32> to vector<16x32xf32>
    %cst_28 = arith.constant dense<0.000000e+00> : vector<121x32xf32>
    %32 = tpu.matmul %29, %31, %cst_28 {dimension_numbers = #tpu.dot_dimension_numbers<[1], [0], [0], [1], [0, 0, 1, 1], [], []>} : vector<121x16xf32>, vector<16x32xf32>, vector<121x32xf32> -> vector<121x32xf32>
    %33 = arith.addf %28, %32 : vector<121x32xf32>
    %c35 = arith.constant 35 : index
    %c0_29 = arith.constant 0 : index
    %34 = vector.load %arg20[%c35, %c0_29] : memref<169x32xf32, #tpu.memory_space<vmem>>, vector<121x16xf32>
    %c3 = arith.constant 3 : index
    %c0_30 = arith.constant 0 : index
    %c0_31 = arith.constant 0 : index
    %35 = vector.load %arg6[%c3, %c0_30, %c0_31] : memref<9x16x32xf32, #tpu.memory_space<vmem>>, vector<1x16x32xf32>
    %36 = vector.shape_cast %35 : vector<1x16x32xf32> to vector<16x32xf32>
    %cst_32 = arith.constant dense<0.000000e+00> : vector<121x32xf32>
    %37 = tpu.matmul %34, %36, %cst_32 {dimension_numbers = #tpu.dot_dimension_numbers<[1], [0], [0], [1], [0, 0, 1, 1], [], []>} : vector<121x16xf32>, vector<16x32xf32>, vector<121x32xf32> -> vector<121x32xf32>
    %38 = arith.addf %33, %37 : vector<121x32xf32>
    %c36 = arith.constant 36 : index
    %c0_33 = arith.constant 0 : index
    %39 = vector.load %arg20[%c36, %c0_33] : memref<169x32xf32, #tpu.memory_space<vmem>>, vector<121x16xf32>
    %c4 = arith.constant 4 : index
    %c0_34 = arith.constant 0 : index
    %c0_35 = arith.constant 0 : index
    %40 = vector.load %arg6[%c4, %c0_34, %c0_35] : memref<9x16x32xf32, #tpu.memory_space<vmem>>, vector<1x16x32xf32>
    %41 = vector.shape_cast %40 : vector<1x16x32xf32> to vector<16x32xf32>
    %cst_36 = arith.constant dense<0.000000e+00> : vector<121x32xf32>
    %42 = tpu.matmul %39, %41, %cst_36 {dimension_numbers = #tpu.dot_dimension_numbers<[1], [0], [0], [1], [0, 0, 1, 1], [], []>} : vector<121x16xf32>, vector<16x32xf32>, vector<121x32xf32> -> vector<121x32xf32>
    %43 = arith.addf %38, %42 : vector<121x32xf32>
    %c37 = arith.constant 37 : index
    %c0_37 = arith.constant 0 : index
    %44 = vector.load %arg20[%c37, %c0_37] : memref<169x32xf32, #tpu.memory_space<vmem>>, vector<121x16xf32>
    %c5 = arith.constant 5 : index
    %c0_38 = arith.constant 0 : index
    %c0_39 = arith.constant 0 : index
    %45 = vector.load %arg6[%c5, %c0_38, %c0_39] : memref<9x16x32xf32, #tpu.memory_space<vmem>>, vector<1x16x32xf32>
    %46 = vector.shape_cast %45 : vector<1x16x32xf32> to vector<16x32xf32>
    %cst_40 = arith.constant dense<0.000000e+00> : vector<121x32xf32>
    %47 = tpu.matmul %44, %46, %cst_40 {dimension_numbers = #tpu.dot_dimension_numbers<[1], [0], [0], [1], [0, 0, 1, 1], [], []>} : vector<121x16xf32>, vector<16x32xf32>, vector<121x32xf32> -> vector<121x32xf32>
    %48 = arith.addf %43, %47 : vector<121x32xf32>
    %c46 = arith.constant 46 : index
    %c0_41 = arith.constant 0 : index
    %49 = vector.load %arg20[%c46, %c0_41] : memref<169x32xf32, #tpu.memory_space<vmem>>, vector<121x16xf32>
    %c6 = arith.constant 6 : index
    %c0_42 = arith.constant 0 : index
    %c0_43 = arith.constant 0 : index
    %50 = vector.load %arg6[%c6, %c0_42, %c0_43] : memref<9x16x32xf32, #tpu.memory_space<vmem>>, vector<1x16x32xf32>
    %51 = vector.shape_cast %50 : vector<1x16x32xf32> to vector<16x32xf32>
    %cst_44 = arith.constant dense<0.000000e+00> : vector<121x32xf32>
    %52 = tpu.matmul %49, %51, %cst_44 {dimension_numbers = #tpu.dot_dimension_numbers<[1], [0], [0], [1], [0, 0, 1, 1], [], []>} : vector<121x16xf32>, vector<16x32xf32>, vector<121x32xf32> -> vector<121x32xf32>
    %53 = arith.addf %48, %52 : vector<121x32xf32>
    %c47 = arith.constant 47 : index
    %c0_45 = arith.constant 0 : index
    %54 = vector.load %arg20[%c47, %c0_45] : memref<169x32xf32, #tpu.memory_space<vmem>>, vector<121x16xf32>
    %c7 = arith.constant 7 : index
    %c0_46 = arith.constant 0 : index
    %c0_47 = arith.constant 0 : index
    %55 = vector.load %arg6[%c7, %c0_46, %c0_47] : memref<9x16x32xf32, #tpu.memory_space<vmem>>, vector<1x16x32xf32>
    %56 = vector.shape_cast %55 : vector<1x16x32xf32> to vector<16x32xf32>
    %cst_48 = arith.constant dense<0.000000e+00> : vector<121x32xf32>
    %57 = tpu.matmul %54, %56, %cst_48 {dimension_numbers = #tpu.dot_dimension_numbers<[1], [0], [0], [1], [0, 0, 1, 1], [], []>} : vector<121x16xf32>, vector<16x32xf32>, vector<121x32xf32> -> vector<121x32xf32>
    %58 = arith.addf %53, %57 : vector<121x32xf32>
    %c48 = arith.constant 48 : index
    %c0_49 = arith.constant 0 : index
    %59 = vector.load %arg20[%c48, %c0_49] : memref<169x32xf32, #tpu.memory_space<vmem>>, vector<121x16xf32>
    %c8 = arith.constant 8 : index
    %c0_50 = arith.constant 0 : index
    %c0_51 = arith.constant 0 : index
    %60 = vector.load %arg6[%c8, %c0_50, %c0_51] : memref<9x16x32xf32, #tpu.memory_space<vmem>>, vector<1x16x32xf32>
    %61 = vector.shape_cast %60 : vector<1x16x32xf32> to vector<16x32xf32>
    %cst_52 = arith.constant dense<0.000000e+00> : vector<121x32xf32>
    %62 = tpu.matmul %59, %61, %cst_52 {dimension_numbers = #tpu.dot_dimension_numbers<[1], [0], [0], [1], [0, 0, 1, 1], [], []>} : vector<121x16xf32>, vector<16x32xf32>, vector<121x32xf32> -> vector<121x32xf32>
    %63 = arith.addf %58, %62 : vector<121x32xf32>
    %c0_53 = arith.constant 0 : index
    %c0_54 = arith.constant 0 : index
    %64 = vector.load %arg16[%c0_53, %c0_54] : memref<121x1xf32, #tpu.memory_space<vmem>>, vector<121x1xf32>
    %65 = vector.broadcast %64 : vector<121x1xf32> to vector<121x32xf32>
    %66 = arith.mulf %63, %65 : vector<121x32xf32>
    %c24_55 = arith.constant 24 : index
    %c0_56 = arith.constant 0 : index
    %67 = vector.load %arg20[%c24_55, %c0_56] : memref<169x32xf32, #tpu.memory_space<vmem>>, vector<121x32xf32>
    tpu.vector_store %arg20[%c24_55, %c0_56], %66 {strides = array<i32>} : memref<169x32xf32, #tpu.memory_space<vmem>>, vector<121x32xf32>,
    %cst_57 = arith.constant 0.000000e+00 : f32
    %68 = vector.broadcast %cst_57 : f32 to vector<121x32xf32>
    %c0_58 = arith.constant 0 : index
    %c0_59 = arith.constant 0 : index
    %69 = vector.load %arg20[%c0_58, %c0_59] : memref<169x32xf32, #tpu.memory_space<vmem>>, vector<121x32xf32>
    %cst_60 = arith.constant 6.250000e-02 : f32
    %70 = vector.broadcast %cst_60 : f32 to vector<121x32xf32>
    %71 = arith.mulf %70, %69 : vector<121x32xf32>
    %72 = arith.addf %68, %71 : vector<121x32xf32>
    %c1_61 = arith.constant 1 : index
    %c0_62 = arith.constant 0 : index
    %73 = vector.load %arg20[%c1_61, %c0_62] : memref<169x32xf32, #tpu.memory_space<vmem>>, vector<121x32xf32>
    %cst_63 = arith.constant 1.875000e-01 : f32
    %74 = vector.broadcast %cst_63 : f32 to vector<121x32xf32>
    %75 = arith.mulf %74, %73 : vector<121x32xf32>
    %76 = arith.addf %72, %75 : vector<121x32xf32>
    %c2_64 = arith.constant 2 : index
    %c0_65 = arith.constant 0 : index
    %77 = vector.load %arg20[%c2_64, %c0_65] : memref<169x32xf32, #tpu.memory_space<vmem>>, vector<121x32xf32>
    %cst_66 = arith.constant 1.875000e-01 : f32
    %78 = vector.broadcast %cst_66 : f32 to vector<121x32xf32>
    %79 = arith.mulf %78, %77 : vector<121x32xf32>
    %80 = arith.addf %76, %79 : vector<121x32xf32>
    %c3_67 = arith.constant 3 : index
    %c0_68 = arith.constant 0 : index
    %81 = vector.load %arg20[%c3_67, %c0_68] : memref<169x32xf32, #tpu.memory_space<vmem>>, vector<121x32xf32>
    %cst_69 = arith.constant 6.250000e-02 : f32
    %82 = vector.broadcast %cst_69 : f32 to vector<121x32xf32>
    %83 = arith.mulf %82, %81 : vector<121x32xf32>
    %84 = arith.addf %80, %83 : vector<121x32xf32>
    %c11 = arith.constant 11 : index
    %c0_70 = arith.constant 0 : index
    %85 = vector.load %arg20[%c11, %c0_70] : memref<169x32xf32, #tpu.memory_space<vmem>>, vector<121x32xf32>
    %cst_71 = arith.constant 1.875000e-01 : f32
    %86 = vector.broadcast %cst_71 : f32 to vector<121x32xf32>
    %87 = arith.mulf %86, %85 : vector<121x32xf32>
    %88 = arith.addf %84, %87 : vector<121x32xf32>
    %c12 = arith.constant 12 : index
    %c0_72 = arith.constant 0 : index
    %89 = vector.load %arg20[%c12, %c0_72] : memref<169x32xf32, #tpu.memory_space<vmem>>, vector<121x32xf32>
    %cst_73 = arith.constant 5.625000e-01 : f32
    %90 = vector.broadcast %cst_73 : f32 to vector<121x32xf32>
    %91 = arith.mulf %90, %89 : vector<121x32xf32>
    %92 = arith.addf %88, %91 : vector<121x32xf32>
    %c13 = arith.constant 13 : index
    %c0_74 = arith.constant 0 : index
    %93 = vector.load %arg20[%c13, %c0_74] : memref<169x32xf32, #tpu.memory_space<vmem>>, vector<121x32xf32>
    %cst_75 = arith.constant 5.625000e-01 : f32
    %94 = vector.broadcast %cst_75 : f32 to vector<121x32xf32>
    %95 = arith.mulf %94, %93 : vector<121x32xf32>
    %96 = arith.addf %92, %95 : vector<121x32xf32>
    %c14 = arith.constant 14 : index
    %c0_76 = arith.constant 0 : index
    %97 = vector.load %arg20[%c14, %c0_76] : memref<169x32xf32, #tpu.memory_space<vmem>>, vector<121x32xf32>
    %cst_77 = arith.constant 1.875000e-01 : f32
    %98 = vector.broadcast %cst_77 : f32 to vector<121x32xf32>
    %99 = arith.mulf %98, %97 : vector<121x32xf32>
    %100 = arith.addf %96, %99 : vector<121x32xf32>
    %c22 = arith.constant 22 : index
    %c0_78 = arith.constant 0 : index
    %101 = vector.load %arg20[%c22, %c0_78] : memref<169x32xf32, #tpu.memory_space<vmem>>, vector<121x32xf32>
    %cst_79 = arith.constant 1.875000e-01 : f32
    %102 = vector.broadcast %cst_79 : f32 to vector<121x32xf32>
    %103 = arith.mulf %102, %101 : vector<121x32xf32>
    %104 = arith.addf %100, %103 : vector<121x32xf32>
    %c23 = arith.constant 23 : index
    %c0_80 = arith.constant 0 : index
    %105 = vector.load %arg20[%c23, %c0_80] : memref<169x32xf32, #tpu.memory_space<vmem>>, vector<121x32xf32>
    %cst_81 = arith.constant 5.625000e-01 : f32
    %106 = vector.broadcast %cst_81 : f32 to vector<121x32xf32>
    %107 = arith.mulf %106, %105 : vector<121x32xf32>
    %108 = arith.addf %104, %107 : vector<121x32xf32>
    %c24_82 = arith.constant 24 : index
    %c0_83 = arith.constant 0 : index
    %109 = vector.load %arg20[%c24_82, %c0_83] : memref<169x32xf32, #tpu.memory_space<vmem>>, vector<121x32xf32>
    %cst_84 = arith.constant 5.625000e-01 : f32
    %110 = vector.broadcast %cst_84 : f32 to vector<121x32xf32>
    %111 = arith.mulf %110, %109 : vector<121x32xf32>
    %112 = arith.addf %108, %111 : vector<121x32xf32>
    %c25_85 = arith.constant 25 : index
    %c0_86 = arith.constant 0 : index
    %113 = vector.load %arg20[%c25_85, %c0_86] : memref<169x32xf32, #tpu.memory_space<vmem>>, vector<121x32xf32>
    %cst_87 = arith.constant 1.875000e-01 : f32
    %114 = vector.broadcast %cst_87 : f32 to vector<121x32xf32>
    %115 = arith.mulf %114, %113 : vector<121x32xf32>
    %116 = arith.addf %112, %115 : vector<121x32xf32>
    %c33 = arith.constant 33 : index
    %c0_88 = arith.constant 0 : index
    %117 = vector.load %arg20[%c33, %c0_88] : memref<169x32xf32, #tpu.memory_space<vmem>>, vector<121x32xf32>
    %cst_89 = arith.constant 6.250000e-02 : f32
    %118 = vector.broadcast %cst_89 : f32 to vector<121x32xf32>
    %119 = arith.mulf %118, %117 : vector<121x32xf32>
    %120 = arith.addf %116, %119 : vector<121x32xf32>
    %c34 = arith.constant 34 : index
    %c0_90 = arith.constant 0 : index
    %121 = vector.load %arg20[%c34, %c0_90] : memref<169x32xf32, #tpu.memory_space<vmem>>, vector<121x32xf32>
    %cst_91 = arith.constant 1.875000e-01 : f32
    %122 = vector.broadcast %cst_91 : f32 to vector<121x32xf32>
    %123 = arith.mulf %122, %121 : vector<121x32xf32>
    %124 = arith.addf %120, %123 : vector<121x32xf32>
    %c35_92 = arith.constant 35 : index
    %c0_93 = arith.constant 0 : index
    %125 = vector.load %arg20[%c35_92, %c0_93] : memref<169x32xf32, #tpu.memory_space<vmem>>, vector<121x32xf32>
    %cst_94 = arith.constant 1.875000e-01 : f32
    %126 = vector.broadcast %cst_94 : f32 to vector<121x32xf32>
    %127 = arith.mulf %126, %125 : vector<121x32xf32>
    %128 = arith.addf %124, %127 : vector<121x32xf32>
    %c36_95 = arith.constant 36 : index
    %c0_96 = arith.constant 0 : index
    %129 = vector.load %arg20[%c36_95, %c0_96] : memref<169x32xf32, #tpu.memory_space<vmem>>, vector<121x32xf32>
    %cst_97 = arith.constant 6.250000e-02 : f32
    %130 = vector.broadcast %cst_97 : f32 to vector<121x32xf32>
    %131 = arith.mulf %130, %129 : vector<121x32xf32>
    %132 = arith.addf %128, %131 : vector<121x32xf32>
    %133 = arith.mulf %10, %10 : vector<1x16xf32>
    %c0_98 = arith.constant 0 : index
    %c0_99 = arith.constant 0 : index
    %134 = vector.load %arg7[%c0_98, %c0_99] : memref<16x32xf32, #tpu.memory_space<vmem>>, vector<16x32xf32>
    %cst_100 = arith.constant dense<0.000000e+00> : vector<1x32xf32>
    %135 = tpu.matmul %133, %134, %cst_100 {dimension_numbers = #tpu.dot_dimension_numbers<[1], [0], [0], [1], [0, 0, 1, 1], [], []>} : vector<1x16xf32>, vector<16x32xf32>, vector<1x32xf32> -> vector<1x32xf32>
    %cst_101 = arith.constant 9.99999993E-9 : f32
    %136 = vector.broadcast %cst_101 : f32 to vector<1x32xf32>
    %137 = arith.addf %135, %136 : vector<1x32xf32>
    %138 = math.rsqrt %137 : vector<1x32xf32>
    %139 = vector.broadcast %138 : vector<1x32xf32> to vector<121x32xf32>
    %140 = arith.mulf %132, %139 : vector<121x32xf32>
    %c0_102 = arith.constant 0 : index
    %c0_103 = arith.constant 0 : index
    %141 = vector.load %arg9[%c0_102, %c0_103] : memref<121x1xf32, #tpu.memory_space<vmem>>, vector<121x1xf32>
    %142 = vector.broadcast %141 : vector<121x1xf32> to vector<121x32xf32>
    %143 = arith.addf %140, %142 : vector<121x32xf32>
    %c0_104 = arith.constant 0 : index
    %c0_105 = arith.constant 0 : index
    %144 = vector.load %arg8[%c0_104, %c0_105] : memref<1x32xf32, #tpu.memory_space<vmem>>, vector<1x32xf32>
    %145 = vector.broadcast %144 : vector<1x32xf32> to vector<121x32xf32>
    %146 = arith.addf %143, %145 : vector<121x32xf32>
    %cst_106 = arith.constant 0.000000e+00 : f32
    %147 = vector.broadcast %cst_106 : f32 to vector<121x32xf32>
    %148 = arith.cmpf oge, %146, %147 : vector<121x32xf32>
    %cst_107 = arith.constant 2.000000e-01 : f32
    %149 = vector.broadcast %cst_107 : f32 to vector<121x32xf32>
    %150 = arith.mulf %149, %146 : vector<121x32xf32>
    %151 = arith.select %148, %146, %150 : vector<121x32xi1>, vector<121x32xf32>
    %cst_108 = arith.constant 1.41421354 : f32
    %152 = vector.broadcast %cst_108 : f32 to vector<121x32xf32>
    %153 = arith.mulf %151, %152 : vector<121x32xf32>
    %cst_109 = arith.constant -2.560000e+02 : f32
    %cst_110 = arith.constant 2.560000e+02 : f32
    %154 = vector.broadcast %cst_109 : f32 to vector<121x32xf32>
    %155 = arith.maximumf %154, %153 : vector<121x32xf32>
    %156 = vector.broadcast %cst_110 : f32 to vector<121x32xf32>
    %157 = arith.minimumf %156, %155 : vector<121x32xf32>
    %c0_111 = arith.constant 0 : index
    %c0_112 = arith.constant 0 : index
    %158 = vector.load %arg17[%c0_111, %c0_112] : memref<121x1xf32, #tpu.memory_space<vmem>>, vector<121x1xf32>
    %159 = vector.broadcast %158 : vector<121x1xf32> to vector<121x32xf32>
    %160 = arith.mulf %157, %159 : vector<121x32xf32>
    %161 = vector.broadcast %11 : vector<1x32xf32> to vector<121x32xf32>
    %162 = arith.mulf %160, %161 : vector<121x32xf32>
    %c24_113 = arith.constant 24 : index
    %c0_114 = arith.constant 0 : index
    %163 = vector.load %arg20[%c24_113, %c0_114] : memref<169x32xf32, #tpu.memory_space<vmem>>, vector<121x32xf32>
    tpu.vector_store %arg20[%c24_113, %c0_114], %162 {strides = array<i32>} : memref<169x32xf32, #tpu.memory_space<vmem>>, vector<121x32xf32>,
    %cst_115 = arith.constant 0.000000e+00 : f32
    %164 = vector.broadcast %cst_115 : f32 to vector<121x32xf32>
    %c12_116 = arith.constant 12 : index
    %c0_117 = arith.constant 0 : index
    %165 = vector.load %arg20[%c12_116, %c0_117] : memref<169x32xf32, #tpu.memory_space<vmem>>, vector<121x32xf32>
    %c0_118 = arith.constant 0 : index
    %c0_119 = arith.constant 0 : index
    %c0_120 = arith.constant 0 : index
    %166 = vector.load %arg10[%c0_118, %c0_119, %c0_120] : memref<9x32x32xf32, #tpu.memory_space<vmem>>, vector<1x32x32xf32>
    %167 = vector.shape_cast %166 : vector<1x32x32xf32> to vector<32x32xf32>
    %cst_121 = arith.constant dense<0.000000e+00> : vector<121x32xf32>
    %168 = tpu.matmul %165, %167, %cst_121 {dimension_numbers = #tpu.dot_dimension_numbers<[1], [0], [0], [1], [0, 0, 1, 1], [], []>} : vector<121x32xf32>, vector<32x32xf32>, vector<121x32xf32> -> vector<121x32xf32>
    %169 = arith.addf %164, %168 : vector<121x32xf32>
    %c13_122 = arith.constant 13 : index
    %c0_123 = arith.constant 0 : index
    %170 = vector.load %arg20[%c13_122, %c0_123] : memref<169x32xf32, #tpu.memory_space<vmem>>, vector<121x32xf32>
    %c1_124 = arith.constant 1 : index
    %c0_125 = arith.constant 0 : index
    %c0_126 = arith.constant 0 : index
    %171 = vector.load %arg10[%c1_124, %c0_125, %c0_126] : memref<9x32x32xf32, #tpu.memory_space<vmem>>, vector<1x32x32xf32>
    %172 = vector.shape_cast %171 : vector<1x32x32xf32> to vector<32x32xf32>
    %cst_127 = arith.constant dense<0.000000e+00> : vector<121x32xf32>
    %173 = tpu.matmul %170, %172, %cst_127 {dimension_numbers = #tpu.dot_dimension_numbers<[1], [0], [0], [1], [0, 0, 1, 1], [], []>} : vector<121x32xf32>, vector<32x32xf32>, vector<121x32xf32> -> vector<121x32xf32>
    %174 = arith.addf %169, %173 : vector<121x32xf32>
    %c14_128 = arith.constant 14 : index
    %c0_129 = arith.constant 0 : index
    %175 = vector.load %arg20[%c14_128, %c0_129] : memref<169x32xf32, #tpu.memory_space<vmem>>, vector<121x32xf32>
    %c2_130 = arith.constant 2 : index
    %c0_131 = arith.constant 0 : index
    %c0_132 = arith.constant 0 : index
    %176 = vector.load %arg10[%c2_130, %c0_131, %c0_132] : memref<9x32x32xf32, #tpu.memory_space<vmem>>, vector<1x32x32xf32>
    %177 = vector.shape_cast %176 : vector<1x32x32xf32> to vector<32x32xf32>
    %cst_133 = arith.constant dense<0.000000e+00> : vector<121x32xf32>
    %178 = tpu.matmul %175, %177, %cst_133 {dimension_numbers = #tpu.dot_dimension_numbers<[1], [0], [0], [1], [0, 0, 1, 1], [], []>} : vector<121x32xf32>, vector<32x32xf32>, vector<121x32xf32> -> vector<121x32xf32>
    %179 = arith.addf %174, %178 : vector<121x32xf32>
    %c23_134 = arith.constant 23 : index
    %c0_135 = arith.constant 0 : index
    %180 = vector.load %arg20[%c23_134, %c0_135] : memref<169x32xf32, #tpu.memory_space<vmem>>, vector<121x32xf32>
    %c3_136 = arith.constant 3 : index
    %c0_137 = arith.constant 0 : index
    %c0_138 = arith.constant 0 : index
    %181 = vector.load %arg10[%c3_136, %c0_137, %c0_138] : memref<9x32x32xf32, #tpu.memory_space<vmem>>, vector<1x32x32xf32>
    %182 = vector.shape_cast %181 : vector<1x32x32xf32> to vector<32x32xf32>
    %cst_139 = arith.constant dense<0.000000e+00> : vector<121x32xf32>
    %183 = tpu.matmul %180, %182, %cst_139 {dimension_numbers = #tpu.dot_dimension_numbers<[1], [0], [0], [1], [0, 0, 1, 1], [], []>} : vector<121x32xf32>, vector<32x32xf32>, vector<121x32xf32> -> vector<121x32xf32>
    %184 = arith.addf %179, %183 : vector<121x32xf32>
    %c24_140 = arith.constant 24 : index
    %c0_141 = arith.constant 0 : index
    %185 = vector.load %arg20[%c24_140, %c0_141] : memref<169x32xf32, #tpu.memory_space<vmem>>, vector<121x32xf32>
    %c4_142 = arith.constant 4 : index
    %c0_143 = arith.constant 0 : index
    %c0_144 = arith.constant 0 : index
    %186 = vector.load %arg10[%c4_142, %c0_143, %c0_144] : memref<9x32x32xf32, #tpu.memory_space<vmem>>, vector<1x32x32xf32>
    %187 = vector.shape_cast %186 : vector<1x32x32xf32> to vector<32x32xf32>
    %cst_145 = arith.constant dense<0.000000e+00> : vector<121x32xf32>
    %188 = tpu.matmul %185, %187, %cst_145 {dimension_numbers = #tpu.dot_dimension_numbers<[1], [0], [0], [1], [0, 0, 1, 1], [], []>} : vector<121x32xf32>, vector<32x32xf32>, vector<121x32xf32> -> vector<121x32xf32>
    %189 = arith.addf %184, %188 : vector<121x32xf32>
    %c25_146 = arith.constant 25 : index
    %c0_147 = arith.constant 0 : index
    %190 = vector.load %arg20[%c25_146, %c0_147] : memref<169x32xf32, #tpu.memory_space<vmem>>, vector<121x32xf32>
    %c5_148 = arith.constant 5 : index
    %c0_149 = arith.constant 0 : index
    %c0_150 = arith.constant 0 : index
    %191 = vector.load %arg10[%c5_148, %c0_149, %c0_150] : memref<9x32x32xf32, #tpu.memory_space<vmem>>, vector<1x32x32xf32>
    %192 = vector.shape_cast %191 : vector<1x32x32xf32> to vector<32x32xf32>
    %cst_151 = arith.constant dense<0.000000e+00> : vector<121x32xf32>
    %193 = tpu.matmul %190, %192, %cst_151 {dimension_numbers = #tpu.dot_dimension_numbers<[1], [0], [0], [1], [0, 0, 1, 1], [], []>} : vector<121x32xf32>, vector<32x32xf32>, vector<121x32xf32> -> vector<121x32xf32>
    %194 = arith.addf %189, %193 : vector<121x32xf32>
    %c34_152 = arith.constant 34 : index
    %c0_153 = arith.constant 0 : index
    %195 = vector.load %arg20[%c34_152, %c0_153] : memref<169x32xf32, #tpu.memory_space<vmem>>, vector<121x32xf32>
    %c6_154 = arith.constant 6 : index
    %c0_155 = arith.constant 0 : index
    %c0_156 = arith.constant 0 : index
    %196 = vector.load %arg10[%c6_154, %c0_155, %c0_156] : memref<9x32x32xf32, #tpu.memory_space<vmem>>, vector<1x32x32xf32>
    %197 = vector.shape_cast %196 : vector<1x32x32xf32> to vector<32x32xf32>
    %cst_157 = arith.constant dense<0.000000e+00> : vector<121x32xf32>
    %198 = tpu.matmul %195, %197, %cst_157 {dimension_numbers = #tpu.dot_dimension_numbers<[1], [0], [0], [1], [0, 0, 1, 1], [], []>} : vector<121x32xf32>, vector<32x32xf32>, vector<121x32xf32> -> vector<121x32xf32>
    %199 = arith.addf %194, %198 : vector<121x32xf32>
    %c35_158 = arith.constant 35 : index
    %c0_159 = arith.constant 0 : index
    %200 = vector.load %arg20[%c35_158, %c0_159] : memref<169x32xf32, #tpu.memory_space<vmem>>, vector<121x32xf32>
    %c7_160 = arith.constant 7 : index
    %c0_161 = arith.constant 0 : index
    %c0_162 = arith.constant 0 : index
    %201 = vector.load %arg10[%c7_160, %c0_161, %c0_162] : memref<9x32x32xf32, #tpu.memory_space<vmem>>, vector<1x32x32xf32>
    %202 = vector.shape_cast %201 : vector<1x32x32xf32> to vector<32x32xf32>
    %cst_163 = arith.constant dense<0.000000e+00> : vector<121x32xf32>
    %203 = tpu.matmul %200, %202, %cst_163 {dimension_numbers = #tpu.dot_dimension_numbers<[1], [0], [0], [1], [0, 0, 1, 1], [], []>} : vector<121x32xf32>, vector<32x32xf32>, vector<121x32xf32> -> vector<121x32xf32>
    %204 = arith.addf %199, %203 : vector<121x32xf32>
    %c36_164 = arith.constant 36 : index
    %c0_165 = arith.constant 0 : index
    %205 = vector.load %arg20[%c36_164, %c0_165] : memref<169x32xf32, #tpu.memory_space<vmem>>, vector<121x32xf32>
    %c8_166 = arith.constant 8 : index
    %c0_167 = arith.constant 0 : index
    %c0_168 = arith.constant 0 : index
    %206 = vector.load %arg10[%c8_166, %c0_167, %c0_168] : memref<9x32x32xf32, #tpu.memory_space<vmem>>, vector<1x32x32xf32>
    %207 = vector.shape_cast %206 : vector<1x32x32xf32> to vector<32x32xf32>
    %cst_169 = arith.constant dense<0.000000e+00> : vector<121x32xf32>
    %208 = tpu.matmul %205, %207, %cst_169 {dimension_numbers = #tpu.dot_dimension_numbers<[1], [0], [0], [1], [0, 0, 1, 1], [], []>} : vector<121x32xf32>, vector<32x32xf32>, vector<121x32xf32> -> vector<121x32xf32>
    %209 = arith.addf %204, %208 : vector<121x32xf32>
    %210 = arith.mulf %11, %11 : vector<1x32xf32>
    %c0_170 = arith.constant 0 : index
    %c0_171 = arith.constant 0 : index
    %211 = vector.load %arg11[%c0_170, %c0_171] : memref<32x32xf32, #tpu.memory_space<vmem>>, vector<32x32xf32>
    %cst_172 = arith.constant dense<0.000000e+00> : vector<1x32xf32>
    %212 = tpu.matmul %210, %211, %cst_172 {dimension_numbers = #tpu.dot_dimension_numbers<[1], [0], [0], [1], [0, 0, 1, 1], [], []>} : vector<1x32xf32>, vector<32x32xf32>, vector<1x32xf32> -> vector<1x32xf32>
    %cst_173 = arith.constant 9.99999993E-9 : f32
    %213 = vector.broadcast %cst_173 : f32 to vector<1x32xf32>
    %214 = arith.addf %212, %213 : vector<1x32xf32>
    %215 = math.rsqrt %214 : vector<1x32xf32>
    %216 = vector.broadcast %215 : vector<1x32xf32> to vector<121x32xf32>
    %217 = arith.mulf %209, %216 : vector<121x32xf32>
    %c0_174 = arith.constant 0 : index
    %c0_175 = arith.constant 0 : index
    %218 = vector.load %arg13[%c0_174, %c0_175] : memref<121x1xf32, #tpu.memory_space<vmem>>, vector<121x1xf32>
    %219 = vector.broadcast %218 : vector<121x1xf32> to vector<121x32xf32>
    %220 = arith.addf %217, %219 : vector<121x32xf32>
    %c0_176 = arith.constant 0 : index
    %c0_177 = arith.constant 0 : index
    %221 = vector.load %arg12[%c0_176, %c0_177] : memref<1x32xf32, #tpu.memory_space<vmem>>, vector<1x32xf32>
    %222 = vector.broadcast %221 : vector<1x32xf32> to vector<121x32xf32>
    %223 = arith.addf %220, %222 : vector<121x32xf32>
    %cst_178 = arith.constant 0.000000e+00 : f32
    %224 = vector.broadcast %cst_178 : f32 to vector<121x32xf32>
    %225 = arith.cmpf oge, %223, %224 : vector<121x32xf32>
    %cst_179 = arith.constant 2.000000e-01 : f32
    %226 = vector.broadcast %cst_179 : f32 to vector<121x32xf32>
    %227 = arith.mulf %226, %223 : vector<121x32xf32>
    %228 = arith.select %225, %223, %227 : vector<121x32xi1>, vector<121x32xf32>
    %cst_180 = arith.constant 1.41421354 : f32
    %229 = vector.broadcast %cst_180 : f32 to vector<121x32xf32>
    %230 = arith.mulf %228, %229 : vector<121x32xf32>
    %cst_181 = arith.constant -2.560000e+02 : f32
    %cst_182 = arith.constant 2.560000e+02 : f32
    %231 = vector.broadcast %cst_181 : f32 to vector<121x32xf32>
    %232 = arith.maximumf %231, %230 : vector<121x32xf32>
    %233 = vector.broadcast %cst_182 : f32 to vector<121x32xf32>
    %234 = arith.minimumf %233, %232 : vector<121x32xf32>
    %c0_183 = arith.constant 0 : index
    %c0_184 = arith.constant 0 : index
    %c0_185 = arith.constant 0 : index
    %235 = vector.load %arg18[%c0_183, %c0_184, %c0_185] : memref<1x121x32xf32, #tpu.memory_space<vmem>>, vector<1x121x32xf32>
    %236 = vector.shape_cast %235 : vector<1x121x32xf32> to vector<121x32xf32>
    %237 = vector.shape_cast %234 : vector<121x32xf32> to vector<1x121x32xf32>
    tpu.vector_store %arg18[%c0_183, %c0_184, %c0_185], %237 {strides = array<i32>} : memref<1x121x32xf32, #tpu.memory_space<vmem>>, vector<1x121x32xf32>,
    %238 = vector.broadcast %12 : vector<1x32xf32> to vector<121x32xf32>
    %239 = arith.mulf %234, %238 : vector<121x32xf32>
    %c0_186 = arith.constant 0 : index
    %c0_187 = arith.constant 0 : index
    %240 = vector.load %arg14[%c0_186, %c0_187] : memref<32x3xf32, #tpu.memory_space<vmem>>, vector<32x3xf32>
    %cst_188 = arith.constant dense<0.000000e+00> : vector<121x3xf32>
    %241 = tpu.matmul %239, %240, %cst_188 {dimension_numbers = #tpu.dot_dimension_numbers<[1], [0], [0], [1], [0, 0, 1, 1], [], []>} : vector<121x32xf32>, vector<32x3xf32>, vector<121x3xf32> -> vector<121x3xf32>
    %c0_189 = arith.constant 0 : index
    %c0_190 = arith.constant 0 : index
    %242 = vector.load %arg15[%c0_189, %c0_190] : memref<1x3xf32, #tpu.memory_space<vmem>>, vector<1x3xf32>
    %243 = vector.broadcast %242 : vector<1x3xf32> to vector<121x3xf32>
    %244 = arith.addf %241, %243 : vector<121x3xf32>
    %cst_191 = arith.constant -2.560000e+02 : f32
    %cst_192 = arith.constant 2.560000e+02 : f32
    %245 = vector.broadcast %cst_191 : f32 to vector<121x3xf32>
    %246 = arith.maximumf %245, %244 : vector<121x3xf32>
    %247 = vector.broadcast %cst_192 : f32 to vector<121x3xf32>
    %248 = arith.minimumf %247, %246 : vector<121x3xf32>
    %c0_193 = arith.constant 0 : index
    %c0_194 = arith.constant 0 : index
    %c0_195 = arith.constant 0 : index
    %249 = vector.load %arg3[%c0_193, %c0_194, %c0_195] : memref<1x121x3xf32, #tpu.memory_space<vmem>>, vector<1x121x3xf32>
    %250 = vector.shape_cast %249 : vector<1x121x3xf32> to vector<121x3xf32>
    %c24_196 = arith.constant 24 : index
    %c0_197 = arith.constant 0 : index
    %251 = vector.load %arg20[%c24_196, %c0_197] : memref<169x32xf32, #tpu.memory_space<vmem>>, vector<121x3xf32>
    tpu.vector_store %arg20[%c24_196, %c0_197], %250 {strides = array<i32>} : memref<169x32xf32, #tpu.memory_space<vmem>>, vector<121x3xf32>,
    %cst_198 = arith.constant 0.000000e+00 : f32
    %252 = vector.broadcast %cst_198 : f32 to vector<121x3xf32>
    %c12_199 = arith.constant 12 : index
    %c0_200 = arith.constant 0 : index
    %253 = vector.load %arg20[%c12_199, %c0_200] : memref<169x32xf32, #tpu.memory_space<vmem>>, vector<121x3xf32>
    %cst_201 = arith.constant 6.250000e-02 : f32
    %254 = vector.broadcast %cst_201 : f32 to vector<121x3xf32>
    %255 = arith.mulf %254, %253 : vector<121x3xf32>
    %256 = arith.addf %252, %255 : vector<121x3xf32>
    %c13_202 = arith.constant 13 : index
    %c0_203 = arith.constant 0 : index
    %257 = vector.load %arg20[%c13_202, %c0_203] : memref<169x32xf32, #tpu.memory_space<vmem>>, vector<121x3xf32>
    %cst_204 = arith.constant 1.875000e-01 : f32
    %258 = vector.broadcast %cst_204 : f32 to vector<121x3xf32>
    %259 = arith.mulf %258, %257 : vector<121x3xf32>
    %260 = arith.addf %256, %259 : vector<121x3xf32>
    %c14_205 = arith.constant 14 : index
    %c0_206 = arith.constant 0 : index
    %261 = vector.load %arg20[%c14_205, %c0_206] : memref<169x32xf32, #tpu.memory_space<vmem>>, vector<121x3xf32>
    %cst_207 = arith.constant 1.875000e-01 : f32
    %262 = vector.broadcast %cst_207 : f32 to vector<121x3xf32>
    %263 = arith.mulf %262, %261 : vector<121x3xf32>
    %264 = arith.addf %260, %263 : vector<121x3xf32>
    %c15 = arith.constant 15 : index
    %c0_208 = arith.constant 0 : index
    %265 = vector.load %arg20[%c15, %c0_208] : memref<169x32xf32, #tpu.memory_space<vmem>>, vector<121x3xf32>
    %cst_209 = arith.constant 6.250000e-02 : f32
    %266 = vector.broadcast %cst_209 : f32 to vector<121x3xf32>
    %267 = arith.mulf %266, %265 : vector<121x3xf32>
    %268 = arith.addf %264, %267 : vector<121x3xf32>
    %c23_210 = arith.constant 23 : index
    %c0_211 = arith.constant 0 : index
    %269 = vector.load %arg20[%c23_210, %c0_211] : memref<169x32xf32, #tpu.memory_space<vmem>>, vector<121x3xf32>
    %cst_212 = arith.constant 1.875000e-01 : f32
    %270 = vector.broadcast %cst_212 : f32 to vector<121x3xf32>
    %271 = arith.mulf %270, %269 : vector<121x3xf32>
    %272 = arith.addf %268, %271 : vector<121x3xf32>
    %c24_213 = arith.constant 24 : index
    %c0_214 = arith.constant 0 : index
    %273 = vector.load %arg20[%c24_213, %c0_214] : memref<169x32xf32, #tpu.memory_space<vmem>>, vector<121x3xf32>
    %cst_215 = arith.constant 5.625000e-01 : f32
    %274 = vector.broadcast %cst_215 : f32 to vector<121x3xf32>
    %275 = arith.mulf %274, %273 : vector<121x3xf32>
    %276 = arith.addf %272, %275 : vector<121x3xf32>
    %c25_216 = arith.constant 25 : index
    %c0_217 = arith.constant 0 : index
    %277 = vector.load %arg20[%c25_216, %c0_217] : memref<169x32xf32, #tpu.memory_space<vmem>>, vector<121x3xf32>
    %cst_218 = arith.constant 5.625000e-01 : f32
    %278 = vector.broadcast %cst_218 : f32 to vector<121x3xf32>
    %279 = arith.mulf %278, %277 : vector<121x3xf32>
    %280 = arith.addf %276, %279 : vector<121x3xf32>
    %c26_219 = arith.constant 26 : index
    %c0_220 = arith.constant 0 : index
    %281 = vector.load %arg20[%c26_219, %c0_220] : memref<169x32xf32, #tpu.memory_space<vmem>>, vector<121x3xf32>
    %cst_221 = arith.constant 1.875000e-01 : f32
    %282 = vector.broadcast %cst_221 : f32 to vector<121x3xf32>
    %283 = arith.mulf %282, %281 : vector<121x3xf32>
    %284 = arith.addf %280, %283 : vector<121x3xf32>
    %c34_222 = arith.constant 34 : index
    %c0_223 = arith.constant 0 : index
    %285 = vector.load %arg20[%c34_222, %c0_223] : memref<169x32xf32, #tpu.memory_space<vmem>>, vector<121x3xf32>
    %cst_224 = arith.constant 1.875000e-01 : f32
    %286 = vector.broadcast %cst_224 : f32 to vector<121x3xf32>
    %287 = arith.mulf %286, %285 : vector<121x3xf32>
    %288 = arith.addf %284, %287 : vector<121x3xf32>
    %c35_225 = arith.constant 35 : index
    %c0_226 = arith.constant 0 : index
    %289 = vector.load %arg20[%c35_225, %c0_226] : memref<169x32xf32, #tpu.memory_space<vmem>>, vector<121x3xf32>
    %cst_227 = arith.constant 5.625000e-01 : f32
    %290 = vector.broadcast %cst_227 : f32 to vector<121x3xf32>
    %291 = arith.mulf %290, %289 : vector<121x3xf32>
    %292 = arith.addf %288, %291 : vector<121x3xf32>
    %c36_228 = arith.constant 36 : index
    %c0_229 = arith.constant 0 : index
    %293 = vector.load %arg20[%c36_228, %c0_229] : memref<169x32xf32, #tpu.memory_space<vmem>>, vector<121x3xf32>
    %cst_230 = arith.constant 5.625000e-01 : f32
    %294 = vector.broadcast %cst_230 : f32 to vector<121x3xf32>
    %295 = arith.mulf %294, %293 : vector<121x3xf32>
    %296 = arith.addf %292, %295 : vector<121x3xf32>
    %c37_231 = arith.constant 37 : index
    %c0_232 = arith.constant 0 : index
    %297 = vector.load %arg20[%c37_231, %c0_232] : memref<169x32xf32, #tpu.memory_space<vmem>>, vector<121x3xf32>
    %cst_233 = arith.constant 1.875000e-01 : f32
    %298 = vector.broadcast %cst_233 : f32 to vector<121x3xf32>
    %299 = arith.mulf %298, %297 : vector<121x3xf32>
    %300 = arith.addf %296, %299 : vector<121x3xf32>
    %c45 = arith.constant 45 : index
    %c0_234 = arith.constant 0 : index
    %301 = vector.load %arg20[%c45, %c0_234] : memref<169x32xf32, #tpu.memory_space<vmem>>, vector<121x3xf32>
    %cst_235 = arith.constant 6.250000e-02 : f32
    %302 = vector.broadcast %cst_235 : f32 to vector<121x3xf32>
    %303 = arith.mulf %302, %301 : vector<121x3xf32>
    %304 = arith.addf %300, %303 : vector<121x3xf32>
    %c46_236 = arith.constant 46 : index
    %c0_237 = arith.constant 0 : index
    %305 = vector.load %arg20[%c46_236, %c0_237] : memref<169x32xf32, #tpu.memory_space<vmem>>, vector<121x3xf32>
    %cst_238 = arith.constant 1.875000e-01 : f32
    %306 = vector.broadcast %cst_238 : f32 to vector<121x3xf32>
    %307 = arith.mulf %306, %305 : vector<121x3xf32>
    %308 = arith.addf %304, %307 : vector<121x3xf32>
    %c47_239 = arith.constant 47 : index
    %c0_240 = arith.constant 0 : index
    %309 = vector.load %arg20[%c47_239, %c0_240] : memref<169x32xf32, #tpu.memory_space<vmem>>, vector<121x3xf32>
    %cst_241 = arith.constant 1.875000e-01 : f32
    %310 = vector.broadcast %cst_241 : f32 to vector<121x3xf32>
    %311 = arith.mulf %310, %309 : vector<121x3xf32>
    %312 = arith.addf %308, %311 : vector<121x3xf32>
    %c48_242 = arith.constant 48 : index
    %c0_243 = arith.constant 0 : index
    %313 = vector.load %arg20[%c48_242, %c0_243] : memref<169x32xf32, #tpu.memory_space<vmem>>, vector<121x3xf32>
    %cst_244 = arith.constant 6.250000e-02 : f32
    %314 = vector.broadcast %cst_244 : f32 to vector<121x3xf32>
    %315 = arith.mulf %314, %313 : vector<121x3xf32>
    %316 = arith.addf %312, %315 : vector<121x3xf32>
    %317 = arith.addf %316, %248 : vector<121x3xf32>
    %c0_245 = arith.constant 0 : index
    %c0_246 = arith.constant 0 : index
    %c0_247 = arith.constant 0 : index
    %318 = vector.load %arg19[%c0_245, %c0_246, %c0_247] : memref<1x121x3xf32, #tpu.memory_space<vmem>>, vector<1x121x3xf32>
    %319 = vector.shape_cast %318 : vector<1x121x3xf32> to vector<121x3xf32>
    %320 = vector.shape_cast %317 : vector<121x3xf32> to vector<1x121x3xf32>
    tpu.vector_store %arg19[%c0_245, %c0_246, %c0_247], %320 {strides = array<i32>} : memref<1x121x3xf32, #tpu.memory_space<vmem>>, vector<1x121x3xf32>,
    return
  }
  func.func @transform_0(%arg0: i32) -> (i32, i32, i32) {
    %c0_i32 = arith.constant 0 : i32
    %c0_i32_0 = arith.constant 0 : i32
    %c0_i32_1 = arith.constant 0 : i32
    return %arg0, %c0_i32, %c0_i32_0 : i32, i32, i32
  }
  func.func @transform_1(%arg0: i32) -> (i32, i32, i32) {
    %c0_i32 = arith.constant 0 : i32
    %c0_i32_0 = arith.constant 0 : i32
    %c0_i32_1 = arith.constant 0 : i32
    return %arg0, %c0_i32, %c0_i32_0 : i32, i32, i32
  }
  func.func @transform_2(%arg0: i32) -> (i32, i32, i32) {
    %c0_i32 = arith.constant 0 : i32
    %c0_i32_0 = arith.constant 0 : i32
    %c0_i32_1 = arith.constant 0 : i32
    return %arg0, %c0_i32, %c0_i32_0 : i32, i32, i32
  }
  func.func @transform_3(%arg0: i32) -> (i32, i32) {
    %c0_i32 = arith.constant 0 : i32
    %c0_i32_0 = arith.constant 0 : i32
    %c0_i32_1 = arith.constant 0 : i32
    return %c0_i32, %c0_i32_0 : i32, i32
  }
  func.func @transform_4(%arg0: i32) -> (i32, i32) {
    %c0_i32 = arith.constant 0 : i32
    %c0_i32_0 = arith.constant 0 : i32
    %c0_i32_1 = arith.constant 0 : i32
    return %c0_i32, %c0_i32_0 : i32, i32
  }
  func.func @transform_5(%arg0: i32) -> (i32, i32, i32) {
    %c0_i32 = arith.constant 0 : i32
    %c0_i32_0 = arith.constant 0 : i32
    %c0_i32_1 = arith.constant 0 : i32
    %c0_i32_2 = arith.constant 0 : i32
    return %c0_i32, %c0_i32_0, %c0_i32_1 : i32, i32, i32
  }
  func.func @transform_6(%arg0: i32) -> (i32, i32) {
    %c0_i32 = arith.constant 0 : i32
    %c0_i32_0 = arith.constant 0 : i32
    %c0_i32_1 = arith.constant 0 : i32
    return %c0_i32, %c0_i32_0 : i32, i32
  }
  func.func @transform_7(%arg0: i32) -> (i32, i32) {
    %c0_i32 = arith.constant 0 : i32
    %c0_i32_0 = arith.constant 0 : i32
    %c0_i32_1 = arith.constant 0 : i32
    return %c0_i32, %c0_i32_0 : i32, i32
  }
  func.func @transform_8(%arg0: i32) -> (i32, i32) {
    %c0_i32 = arith.constant 0 : i32
    %c0_i32_0 = arith.constant 0 : i32
    %c0_i32_1 = arith.constant 0 : i32
    return %c0_i32, %c0_i32_0 : i32, i32
  }
  func.func @transform_9(%arg0: i32) -> (i32, i32, i32) {
    %c0_i32 = arith.constant 0 : i32
    %c0_i32_0 = arith.constant 0 : i32
    %c0_i32_1 = arith.constant 0 : i32
    %c0_i32_2 = arith.constant 0 : i32
    return %c0_i32, %c0_i32_0, %c0_i32_1 : i32, i32, i32
  }
  func.func @transform_10(%arg0: i32) -> (i32, i32) {
    %c0_i32 = arith.constant 0 : i32
    %c0_i32_0 = arith.constant 0 : i32
    %c0_i32_1 = arith.constant 0 : i32
    return %c0_i32, %c0_i32_0 : i32, i32
  }
  func.func @transform_11(%arg0: i32) -> (i32, i32) {
    %c0_i32 = arith.constant 0 : i32
    %c0_i32_0 = arith.constant 0 : i32
    %c0_i32_1 = arith.constant 0 : i32
    return %c0_i32, %c0_i32_0 : i32, i32
  }
  func.func @transform_12(%arg0: i32) -> (i32, i32) {
    %c0_i32 = arith.constant 0 : i32
    %c0_i32_0 = arith.constant 0 : i32
    %c0_i32_1 = arith.constant 0 : i32
    return %c0_i32, %c0_i32_0 : i32, i32
  }
  func.func @transform_13(%arg0: i32) -> (i32, i32) {
    %c0_i32 = arith.constant 0 : i32
    %c0_i32_0 = arith.constant 0 : i32
    %c0_i32_1 = arith.constant 0 : i32
    return %c0_i32, %c0_i32_0 : i32, i32
  }
  func.func @transform_14(%arg0: i32) -> (i32, i32) {
    %c0_i32 = arith.constant 0 : i32
    %c0_i32_0 = arith.constant 0 : i32
    %c0_i32_1 = arith.constant 0 : i32
    return %c0_i32, %c0_i32_0 : i32, i32
  }
  func.func @transform_15(%arg0: i32) -> (i32, i32) {
    %c0_i32 = arith.constant 0 : i32
    %c0_i32_0 = arith.constant 0 : i32
    %c0_i32_1 = arith.constant 0 : i32
    return %c0_i32, %c0_i32_0 : i32, i32
  }
  func.func @transform_16(%arg0: i32) -> (i32, i32) {
    %c0_i32 = arith.constant 0 : i32
    %c0_i32_0 = arith.constant 0 : i32
    %c0_i32_1 = arith.constant 0 : i32
    return %c0_i32, %c0_i32_0 : i32, i32
  }
  func.func @transform_17(%arg0: i32) -> (i32, i32, i32) {
    %c0_i32 = arith.constant 0 : i32
    %c0_i32_0 = arith.constant 0 : i32
    %c0_i32_1 = arith.constant 0 : i32
    return %arg0, %c0_i32, %c0_i32_0 : i32, i32, i32
  }
  func.func @transform_18(%arg0: i32) -> (i32, i32, i32) {
    %c0_i32 = arith.constant 0 : i32
    %c0_i32_0 = arith.constant 0 : i32
    %c0_i32_1 = arith.constant 0 : i32
    return %arg0, %c0_i32, %c0_i32_0 : i32, i32, i32
  }
}

</mosaic_0001>

<bundles_post_ra>
// kernel: _forward.1
= control target key start
LH: loop header
LB: loop body
LE: loop exit
PB: predicated region body
PF: predicated region fallthrough
CT: control target
= control target key end

     0   :  { %s9379_s27 = smov 0   ;;  %s11451_s0 = inlined_call_operand.vmem [shape: f32[2,3,32], index: 0, kind: input, shape index: {}]   ;;  %s11452_s1 = inlined_call_operand.vmem [shape: f32[2,121,16], index: 1, kind: input, shape index: {}]   ;;  %s11453_s2 = inlined_call_operand.vmem [shape: f32[2,121,3], index: 2, kind: input, shape index: {}]   ;;  %s11454_s3 = inlined_call_operand.vmem [shape: f32[32,80], index: 3, kind: input, shape index: {}]   ;;  %s11455_s4 = inlined_call_operand.vmem [shape: f32[1,80], index: 4, kind: input, shape index: {}]   ;;  %s11456_s5 = inlined_call_operand.vmem [shape: f32[9,16,32], index: 5, kind: input, shape index: {}]   ;;  %s11457_s6 = inlined_call_operand.vmem [shape: f32[16,32], index: 6, kind: input, shape index: {}]   ;;  %s11458_s7 = inlined_call_operand.vmem [shape: f32[1,32], index: 7, kind: input, shape index: {}]   ;;  %s11459_s8 = inlined_call_operand.vmem [shape: f32[121,1], index: 8, kind: input, shape index: {}]   ;;  %s11460_s9 = inlined_call_operand.vmem [shape: f32[9,32,32], index: 9, kind: input, shape index: {}]   ;;  %s11461_s10 = inlined_call_operand.vmem [shape: f32[32,32], index: 10, kind: input, shape index: {}]   ;;  %s11462_s11 = inlined_call_operand.vmem [shape: f32[1,32], index: 11, kind: input, shape index: {}]   ;;  %s11463_s12 = inlined_call_operand.vmem [shape: f32[121,1], index: 12, kind: input, shape index: {}]   ;;  %s11464_s13 = inlined_call_operand.vmem [shape: f32[32,3], index: 13, kind: input, shape index: {}]   ;;  %s11465_s14 = inlined_call_operand.vmem [shape: f32[1,3], index: 14, kind: input, shape index: {}]   ;;  %s11466_s15 = inlined_call_operand.vmem [shape: f32[121,1], index: 15, kind: input, shape index: {}]   ;;  %s11467_s16 = inlined_call_operand.vmem [shape: f32[121,1], index: 16, kind: input, shape index: {}]   ;;  %s11468_s17 = inlined_call_operand.vmem [shape: f32[2,121,32], index: 17, kind: output, shape index: {0}]   ;;  %s11469_s18 = inlined_call_operand.vmem [shape: f32[2,121,3], index: 18, kind: output, shape index: {1}]  }
   0x1   :  { %11529 = sst [smem:[#allocation90_spill]] %s11451_s0 }
   0x2   :  { %11530 = sst [smem:[#allocation91_spill]] %s11452_s1 }
   0x3   :  { %11531 = sst [smem:[#allocation92_spill]] %s11453_s2 }
   0x4 LB: > { %s7458_s28 = sadd.s32 4294967295, %s9276_s27   ;;  %p7462_p0 = scmp.ge.s32.totalorder %s9276_s27, 1  ;;  %s9276_s27 = sphi %s9379_s27, %s29_s27  }
   0x5   : > { %p534_p1 = scmp.lt.s32.totalorder %s9276_s27, 3 }
   0x7   : > { %p535_p2 = pnand %p7462_p0, %p534_p1 }
   0x9   : > { %538 = sbr.rel (%p535_p2) target bundleno = 1616 (0x650), region = 88 }
  0x10   : > { %v634_v0 = vld [vmem:[%s11454_s3] sm:$0xff]  ;;  %v635_v1 = vld [vmem:[%s11454_s3 + $0x8] sm:$0xff]  ;;  %v636_v2 = vld [vmem:[%s11454_s3 + $0x10] sm:$0xff]  ;;  %vm626_vm0 = vcmask 261120   ;;  %v9278_v3 = vmov 0.0|0.0   ;;  %v9279_v6 = vmov 0.0   ;;  %v734_v57 = vlaneseq }
  0x11   : > { %8861 = vmatprep.subr.bf16.mxu0 %v9278_v3  ;;  %v8862_v4 = vpack.c.bf16 %v635_v1, %v634_v0  ;;  %v637_v5 = vld [vmem:[%s11454_s3 + $0x18] sm:$0xff]  ;;  %627 = vst.msk [vmem:[#allocation2] sm:$0xff] %vm626_vm0, %v9279_v6  ;;  %628 = vst.msk [vmem:[#allocation2 + $0x8] sm:$0xff] %vm626_vm0, %v9279_v6  ;;  %p602_p3 = scmp.lt.s32.totalorder %s7458_s28, 1  ;;  %v2793_v7 = vld [vmem:[%s11466_s15 + $0x10] sm:$0xff]  ;;  %vm9280_vm1 = vmmov 0  }
  0x12   : > { %629 = vst.msk [vmem:[#allocation2 + $0x10] sm:$0xff] %vm626_vm0, %v9279_v6  ;;  %630 = vst.msk [vmem:[#allocation2 + $0x91] sm:$0xff] %vm626_vm0, %v9279_v6  ;;  %8268 = vmatprep.mubr.msk.f32.mxu0 %vm9280_vm1, %v9279_v6  ;;  %v9281_v8 = vmov 0   ;;  %v8865_v9 = vpack.c.bf16 %v637_v5, %v636_v2  ;;  %v2791_v10 = vld [vmem:[%s11466_s15] sm:$0xff]  ;;  %v2794_v11 = vld [vmem:[%s11466_s15 + $0x18] sm:$0xff]  ;;  %s11532_s1 = sld [smem:[#allocation90_spill]] }
  0x13   : > { %631 = vst.msk [vmem:[#allocation2 + $0x99] sm:$0xff] %vm626_vm0, %v9279_v6  ;;  %632 = vst.msk [vmem:[#allocation2 + $0xa1] sm:$0xff] %vm626_vm0, %v9279_v6  ;;  %9265 = vset.pattern.permute.xlu1 %v9281_v8  ;;  %8863 = vmatpush3.bf16.msra.mxu0 %v8862_v4  ;;  %s11716_s28 = smov (!%p602_p3, %s7458_s28), 1  ;;  %v2792_v12 = vld [vmem:[%s11466_s15 + $0x8] sm:$0xff]  ;;  %v2795_v15 = vld [vmem:[%s11466_s15 + $0x20] sm:$0xff]  ;;  %v9564_v58 = vshrl.u32 %v734_v57, 7 }
  0x14   : > { %2819 = vperm.xlu1 %9265, %v2793_v7   ;;  %8864 = vmatprep.subr.bf16.mxu0 %v9278_v3  ;;  %s7463_s30 = sshll.u32 %s11716_s28, 2  ;;  %v2796_v14 = vld [vmem:[%s11466_s15 + $0x28] sm:$0xff]  ;;  %v2798_v16 = vld [vmem:[%s11466_s15 + $0x38] sm:$0xff]  ;;  %v2797_v17 = vld [vmem:[%s11466_s15 + $0x30] sm:$0xff]  ;;  %s9562_s26 = sshll.u32 %s11716_s28, 7  ;;  %vm754_vm2 = vcmask 130048  }
  0x15   : > { %9264 = vset.pattern.permute.xlu0 %v9281_v8  ;;  %v2800_v18 = vld [vmem:[%s11466_s15 + $0x48] sm:$0xff]  ;;  %v2799_v19 = vld [vmem:[%s11466_s15 + $0x40] sm:$0xff]  ;;  %v2802_v20 = vld [vmem:[%s11466_s15 + $0x58] sm:$0xff]  ;;  %s11533_s0 = sld [smem:[#allocation91_spill]]  ;;  %v9576_v60 = vsub.s32 0, %v9564_v58  ;;  %v3980_v61 = vsub.s32 1, %v9564_v58  ;;  %s10916_s24 = scalar_lea.vmem %s11468_s17, %s9562_s26 }
  0x16   : > { %2809 = vperm.xlu0 %9264, %v2791_v10   ;;  %v2801_v21 = vld [vmem:[%s11466_s15 + $0x50] sm:$0xff]  ;;  %v2804_v22 = vld [vmem:[%s11466_s15 + $0x68] sm:$0xff]  ;;  %v2803_v23 = vld [vmem:[%s11466_s15 + $0x60] sm:$0xff]  ;;  %vm770_vm3 = vcmask 122880   ;;  %s9282_s28 = smov 112   ;;  %vm11528_vm4 = vcmask 253952   ;;  %s11366_s21 = scalar_lea.vmem %s11469_s18, %s9562_s26 }
  0x17   : > { %8866 = vmatpush3.bf16.msra.mxu0 %v8865_v9  ;;  %v2805_v24 = vld [vmem:[%s11466_s15 + $0x70] sm:$0xff]  ;;  %v3635_v25 = vld [vmem:[%s11459_s8] sm:$0xff]  ;;  %v3636_v27 = vld [vmem:[%s11459_s8 + $0x8] sm:$0xff]  ;;  %11534 = vst [vmem:[#allocation3_spill] sm:$0xff] %v9576_v60 }
  0x18   : > { %s605_s20 = scalar_lea.vmem %s11532_s1, %s7463_s30  ;;  %2824 = vperm.xlu1 %9265, %v2794_v11   ;;  %v3637_v26 = vld [vmem:[%s11459_s8 + $0x10] sm:$0xff]  ;;  %v3638_v28 = vld [vmem:[%s11459_s8 + $0x18] sm:$0xff]  ;;  %v3640_v30 = vld [vmem:[%s11459_s8 + $0x28] sm:$0xff]  ;;  %s9283_s1 = smov 80  }
  0x19   : > { %v633_v13 = vld [vmem:[%s605_s20] sm:$0x7]  ;;  %v2806_v29 = vld [vmem:[%s11466_s15 + $0x78] sm:$0x1]  ;;  %v3641_v32 = vld [vmem:[%s11459_s8 + $0x30] sm:$0xff]  ;;  %s11710_s30 = sld [smem:[#allocation92_spill]] }
  0x1a   : > { %2814 = vperm.xlu0 %9264, %v2792_v12   ;;  %8269 = vmatmul.mubr.msk.f32.vlgmr.msra.gmra.mrb[0].mxu0 %vm626_vm0, %v633_v13  ;;  %v3639_v31 = vld [vmem:[%s11459_s8 + $0x20] sm:$0xff]  ;;  %v3642_v34 = vld [vmem:[%s11459_s8 + $0x38] sm:$0xff]  ;;  %v3867_v35 = vld [vmem:[%s11467_s16 + $0x8] sm:$0xff] }
  0x1b   : > { %v3866_v33 = vld [vmem:[%s11467_s16] sm:$0xff]  ;;  %v3868_v37 = vld [vmem:[%s11467_s16 + $0x10] sm:$0xff]  ;;  %v3644_v38 = vld [vmem:[%s11459_s8 + $0x48] sm:$0xff]  ;;  %s9570_s19 = scalar_lea.vmem %s11533_s0, %s9562_s26 }
  0x1c   : > { %2834 = vperm.xlu1 %9265, %v2796_v14   ;;  %v3643_v36 = vld [vmem:[%s11459_s8 + $0x40] sm:$0xff]  ;;  %v3869_v39 = vld [vmem:[%s11467_s16 + $0x18] sm:$0xff]  ;;  %v3645_v40 = vld [vmem:[%s11459_s8 + $0x50] sm:$0xff] }
  0x1d   : > { %v3870_v41 = vld [vmem:[%s11467_s16 + $0x20] sm:$0xff]  ;;  %v3871_v42 = vld [vmem:[%s11467_s16 + $0x28] sm:$0xff]  ;;  %v3646_v43 = vld [vmem:[%s11459_s8 + $0x58] sm:$0xff] }
  0x1e   : > { %2829 = vperm.xlu0 %9264, %v2795_v15   ;;  %v3872_v44 = vld [vmem:[%s11467_s16 + $0x30] sm:$0xff]  ;;  %v3873_v45 = vld [vmem:[%s11467_s16 + $0x38] sm:$0xff]  ;;  %v3874_v46 = vld [vmem:[%s11467_s16 + $0x40] sm:$0xff] }
  0x1f   : > { %v3876_v47 = vld [vmem:[%s11467_s16 + $0x50] sm:$0xff]  ;;  %v3878_v48 = vld [vmem:[%s11467_s16 + $0x60] sm:$0xff]  ;;  %v3650_v50 = vld [vmem:[%s11459_s8 + $0x78] sm:$0x1]  ;;  %s11021_s0 = scalar_lea.vmem %s11710_s30, %s9562_s26 }
  0x20   : > { %2844 = vperm.xlu1 %9265, %v2798_v16   ;;  %v3649_v49 = vld [vmem:[%s11459_s8 + $0x70] sm:$0xff]  ;;  %v7475_v52 = vld [vmem:[%s11456_s5 + $0x18] sm:$0xff]  ;;  %v788_v54 = vld [vmem:[%s11456_s5] sm:$0xff] }
  0x21   : > { %v7474_v51 = vld [vmem:[%s11456_s5 + $0x10] sm:$0xff]  ;;  %v789_v55 = vld [vmem:[%s11456_s5 + $0x8] sm:$0xff]  ;;  %v7472_v59 = vld [vmem:[%s11455_s4] ss:$0 sm:$0xff] }
  0x22   : > { %2839 = vperm.xlu0 %9264, %v2797_v17   ;;  %v8867_v53 = vpack.c.bf16 %v7475_v52, %v7474_v51  ;;  %v9558_v56 = vpack.c.bf16 %v789_v55, %v788_v54  ;;  %v718_v1 = vld [vmem:[%s9570_s19] sm:$0xff]  ;;  %v719_v2 = vld [vmem:[%s9570_s19 + $0x8] sm:$0xff]  ;;  %v724_v4 = vld [vmem:[%s9570_s19 + $0x30] sm:$0xff] }
  0x23   : > { %v725_v5 = vld [vmem:[%s9570_s19 + $0x38] sm:$0xff]  ;;  %v720_v7 = vld [vmem:[%s9570_s19 + $0x10] sm:$0xff]  ;;  %v726_v8 = vld [vmem:[%s9570_s19 + $0x40] sm:$0xff] }
  0x24   : > { %2854 = vperm.xlu1 %9265, %v2800_v18   ;;  %8992 = vmatprep.subr.bf16.mxu1 %v8867_v53  ;;  %v721_v12 = vld [vmem:[%s9570_s19 + $0x18] sm:$0xff]  ;;  %v727_v13 = vld [vmem:[%s9570_s19 + $0x48] sm:$0xff]  ;;  %v722_v14 = vld [vmem:[%s9570_s19 + $0x20] sm:$0xff] }
  0x25   : > { %8868 = vmatprep.subr.bf16.mxu0 %v8867_v53  ;;  %8993 = vmatpush3.bf16.msra.mxu1 %v8867_v53  ;;  %v728_v15 = vld [vmem:[%s9570_s19 + $0x50] sm:$0xff]  ;;  %v723_v16 = vld [vmem:[%s9570_s19 + $0x28] sm:$0xff]  ;;  %v729_v17 = vld [vmem:[%s9570_s19 + $0x58] sm:$0xff] }
  0x26   : > { %2849 = vperm.xlu0 %9264, %v2799_v19   ;;  %8870 = vmatpush3.bf16.msra.mxu0 %v8867_v53  ;;  %v3877_v54 = vld [vmem:[%s11467_s16 + $0x58] sm:$0xff] }
  0x27   : > { %8903 = vmatprep.subr.bf16.mxu0 %v9278_v3  ;;  %8872 = vmatprep.subr.bf16.mxu1 %v9558_v56 }
  0x28   : > { %2864 = vperm.xlu1 %9265, %v2802_v20  }
  0x2a   : > { %2859 = vperm.xlu0 %9264, %v2801_v21  }
  0x2c   : > { %2874 = vperm.xlu1 %9265, %v2804_v22   ;;  %v730_v22 = vld [vmem:[%s9570_s19 + $0x60] sm:$0xff] }
  0x2e   : > { %2869 = vperm.xlu0 %9264, %v2803_v23   ;;  %v731_v23 = vld [vmem:[%s9570_s19 + $0x68] sm:$0xff] }
  0x30   : > { %2879 = vperm.xlu1 %9265, %v2805_v24   ;;  %v732_v24 = vld [vmem:[%s9570_s19 + $0x70] sm:$0xff] }
  0x32   : > { %3653 = vperm.xlu0 %9264, %v3635_v25   ;;  %v3647_v25 = vld [vmem:[%s11459_s8 + $0x60] sm:$0xff] }
  0x34   : > { %3663 = vperm.xlu1 %9265, %v3637_v26  }
  0x36   : > { %3658 = vperm.xlu0 %9264, %v3636_v27  }
  0x38   : > { %3668 = vperm.xlu1 %9265, %v3638_v28  }
  0x3a   : > { %2884 = vperm.xlu0 %9264, %v2806_v29  }
  0x3c   : > { %3678 = vperm.xlu1 %9265, %v3640_v30   ;;  %v733_v30 = vld [vmem:[%s9570_s19 + $0x78] sm:$0x1] }
  0x3e   : > { %3673 = vperm.xlu0 %9264, %v3639_v31  }
  0x40   : > { %3683 = vperm.xlu1 %9265, %v3641_v32  }
  0x42   : > { %3884 = vperm.xlu0 %9264, %v3866_v33  }
  0x44   : > { %3688 = vperm.xlu1 %9265, %v3642_v34  }
  0x46   : > { %3889 = vperm.xlu0 %9264, %v3867_v35  }
  0x48   : > { %3693 = vperm.xlu1 %9265, %v3643_v36  }
  0x4a   : > { %3894 = vperm.xlu0 %9264, %v3868_v37  }
  0x4c   : > { %3698 = vperm.xlu1 %9265, %v3644_v38  }
  0x4e   : > { %3899 = vperm.xlu0 %9264, %v3869_v39  }
  0x50   : > { %3703 = vperm.xlu1 %9265, %v3645_v40   ;;  %v3648_v40 = vld [vmem:[%s11459_s8 + $0x68] sm:$0xff] }
  0x52   : > { %3904 = vperm.xlu0 %9264, %v3870_v41   ;;  %v3539_v41 = vld [vmem:[%s11457_s6] sm:$0xff] }
  0x54   : > { %3909 = vperm.xlu1 %9265, %v3871_v42   ;;  %v3540_v42 = vld [vmem:[%s11457_s6 + $0x8] sm:$0xff] }
  0x56   : > { %3708 = vperm.xlu0 %9264, %v3646_v43   ;;  %v7508_v43 = vld [vmem:[%s11456_s5 + $0x20] sm:$0xff] }
  0x58   : > { %3914 = vperm.xlu1 %9265, %v3872_v44   ;;  %v7509_v44 = vld [vmem:[%s11456_s5 + $0x28] sm:$0xff] }
  0x59   : > { %v8875_v51 = vpack.c.bf16 %v7509_v44, %v7508_v43 }
  0x5c   : > { %3919 = vperm.xlu1 %9265, %v3873_v45  }
  0x60   : > { %3924 = vperm.xlu1 %9265, %v3874_v46   ;;  %v3875_v46 = vld [vmem:[%s11467_s16 + $0x48] sm:$0xff] }
  0x64   : > { %3934 = vperm.xlu1 %9265, %v3876_v47  }
  0x68   : > { %3944 = vperm.xlu1 %9265, %v3878_v48  }
  0x6c   : > { %3723 = vperm.xlu1 %9265, %v3649_v49  }
  0x70   : > { %3728 = vperm.xlu1 %9265, %v3650_v50   ;;  %v8904_v50 = vpack.c.bf16 %v3540_v42, %v3539_v41 }
  0xed   : > { %v714_v62 = vpop.f32.mrb[0].mxu0 }
  0xee   : > { %v9579_v63 = vadd.f32 %v7472_v59, %v714_v62  ;;  %v8270_v0 = vpop.f32.mrb[1].mxu0 }
  0xf0   : > { %v737_v9 = vrot.slane %v9579_v63, %v9576_v60  ;;  %v3981_v10 = vrot.slane %v9579_v63, %v3980_v61  ;;  %v9592_v11 = vmul.f32 %v9579_v63, %v9579_v63  ;;  %v3879_v61 = vld [vmem:[%s11467_s16 + $0x68] sm:$0xff] }
  0xf2   : > { %3983 = vrot.lane.b32.xlu0 %v3981_v10, %s9282_s28  ;;  %v6059_v18 = vrot.slane %v9592_v11, 1  ;;  %v738_v19 = vmul.f32 %v737_v9, %v718_v1  ;;  %v739_v20 = vmul.f32 %v737_v9, %v719_v2  ;;  %v744_v21 = vmul.f32 %v737_v9, %v724_v4  ;;  %v3880_v2 = vld [vmem:[%s11467_s16 + $0x70] sm:$0xff]  ;;  %v7527_v10 = vld [vmem:[%s11456_s5 + $0x38] sm:$0xff] }
  0xf3   : > { %v745_v26 = vmul.f32 %v737_v9, %v725_v5  ;;  %v740_v27 = vmul.f32 %v737_v9, %v720_v7  ;;  %v746_v28 = vmul.f32 %v737_v9, %v726_v8  ;;  %v741_v29 = vmul.f32 %v737_v9, %v721_v12  ;;  %v805_v7 = vld [vmem:[#allocation2 + $0x91] sm:$0x1]  ;;  %v3881_v8 = vld [vmem:[%s11467_s16 + $0x78] sm:$0x1]  ;;  %v6155_v12 = vld [vmem:[%s11463_s12] sm:$0xff] }
  0xf4   : > { %6060 = vrot.lane.b32.xlu1 %v6059_v18, %s9282_s28  ;;  %755 = vst.msk [vmem:[#allocation2 + $0x18] sm:$0xff] %vm754_vm2, %v738_v19  ;;  %756 = vst.msk [vmem:[#allocation2 + $0x20] sm:$0xff] %vm754_vm2, %v739_v20  ;;  %v747_v31 = vmul.f32 %v737_v9, %v727_v13  ;;  %v742_v32 = vmul.f32 %v737_v9, %v722_v14  ;;  %v748_v33 = vmul.f32 %v737_v9, %v728_v15  ;;  %v6159_v19 = vld [vmem:[%s11463_s12 + $0x20] sm:$0xff] }
  0xf5   : > { %761 = vst.msk [vmem:[#allocation2 + $0x48] sm:$0xff] %vm754_vm2, %v744_v21  ;;  %v743_v34 = vmul.f32 %v737_v9, %v723_v16  ;;  %762 = vst.msk [vmem:[#allocation2 + $0x50] sm:$0xff] %vm754_vm2, %v745_v26  ;;  %v749_v35 = vmul.f32 %v737_v9, %v729_v17  ;;  %v750_v36 = vmul.f32 %v737_v9, %v730_v22  ;;  %v6157_v16 = vld [vmem:[%s11463_s12 + $0x10] sm:$0xff]  ;;  %v6404_v26 = vsub.s32 2, %v9564_v58 }
  0xf6   : > { %757 = vst.msk [vmem:[#allocation2 + $0x28] sm:$0xff] %vm754_vm2, %v740_v27  ;;  %763 = vst.msk [vmem:[#allocation2 + $0x58] sm:$0xff] %vm754_vm2, %v746_v28  ;;  %v751_v37 = vmul.f32 %v737_v9, %v731_v23  ;;  %v752_v38 = vmul.f32 %v737_v9, %v732_v24  ;;  %3713 = vperm.xlu0 %9264, %v3647_v25   ;;  %v753_v39 = vmul.f32 %v737_v9, %v733_v30  ;;  %v7526_v9 = vld [vmem:[%s11456_s5 + $0x30] sm:$0xff]  ;;  %v6163_v25 = vld [vmem:[%s11463_s12 + $0x40] sm:$0xff] }
  0xf7   : > { %758 = vst.msk [vmem:[#allocation2 + $0x30] sm:$0xff] %vm754_vm2, %v741_v29  ;;  %764 = vst.msk [vmem:[#allocation2 + $0x60] sm:$0xff] %vm754_vm2, %v747_v31  ;;  %v8879_v13 = vpack.c.bf16 %v7527_v10, %v7526_v9  ;;  %v6161_v22 = vld [vmem:[%s11463_s12 + $0x30] sm:$0xff]  ;;  %v6405_v29 = vrot.slane %v9579_v63, %v6404_v26 }
  0xf8   : > { %759 = vst.msk [vmem:[#allocation2 + $0x38] sm:$0xff] %vm754_vm2, %v742_v32  ;;  %765 = vst.msk [vmem:[#allocation2 + $0x68] sm:$0xff] %vm754_vm2, %v748_v33  ;;  %v7544_v33 = vld [vmem:[%s11456_s5 + $0x40] sm:$0xff]  ;;  %v1437_v9 = vld [vmem:[#allocation2 + $0x93] sm:$0xff] }
  0xf9   : > { %760 = vst.msk [vmem:[#allocation2 + $0x40] sm:$0xff] %vm754_vm2, %v743_v34  ;;  %766 = vst.msk [vmem:[#allocation2 + $0x70] sm:$0xff] %vm754_vm2, %v749_v35  ;;  %v7545_v34 = vld [vmem:[%s11456_s5 + $0x48] sm:$0xff] }
  0xfa   : > { %767 = vst.msk [vmem:[#allocation2 + $0x78] sm:$0xff] %vm754_vm2, %v750_v36  ;;  %768 = vst.msk [vmem:[#allocation2 + $0x80] sm:$0xff] %vm754_vm2, %v751_v37  ;;  %3718 = vperm.xlu0 %9264, %v3648_v40   ;;  %v8883_v36 = vpack.c.bf16 %v7545_v34, %v7544_v33  ;;  %v9809_v34 = vpop.permute.xlu1 %2819 }
  0xfb   : > { %769 = vst.msk [vmem:[#allocation2 + $0x88] sm:$0xff] %vm754_vm2, %v752_v38  ;;  %v790_v45 = vld [vmem:[#allocation2 + $0x19] sm:$0xff] }
  0xfc   : > { %771 = vst.msk [vmem:[#allocation2 + $0x90] sm:$0x1] %vm770_vm3, %v753_v39  ;;  %8275 = vmatprep.mubr.msk.f32.mxu0 %vm754_vm2, %v790_v45  ;;  %v796_v47 = vld [vmem:[#allocation2 + $0x49] sm:$0xff]  ;;  %v773_v14 = vld [vmem:[#allocation2 + $0x20] sm:$0xff] }
  0xfd   : > { %v791_v48 = vld [vmem:[#allocation2 + $0x21] sm:$0xff]  ;;  %v797_v49 = vld [vmem:[#allocation2 + $0x51] sm:$0xff]  ;;  %8284 = vmatprep.mubr.msk.f32.mxu1 %vm754_vm2, %v796_v47 }
  0xfe   : > { %8276 = vmatmul.mubr.msk.f32.vlgmr.msra.gmra.mrb[2].mxu0 %vm754_vm2, %v791_v48  ;;  %8285 = vmatmul.mubr.msk.f32.vlgmr.msra.gmra.mrb[0].mxu1 %vm754_vm2, %v797_v49  ;;  %v792_v52 = vld [vmem:[#allocation2 + $0x29] sm:$0xff]  ;;  %v798_v53 = vld [vmem:[#allocation2 + $0x59] sm:$0xff] }
  0xff   : > { %3929 = vperm.xlu0 %9264, %v3875_v46   ;;  %8874 = vmatpush3.bf16.msra.mxu1 %v9558_v56  ;;  %v793_v55 = vld [vmem:[#allocation2 + $0x31] sm:$0xff]  ;;  %v799_v57 = vld [vmem:[#allocation2 + $0x61] sm:$0xff] }
 0x100   : > { %8278 = vmatprep.mubr.msk.f32.mxu0 %vm754_vm2, %v792_v52  ;;  %8287 = vmatprep.mubr.msk.f32.mxu1 %vm754_vm2, %v798_v53  ;;  %v794_v59 = vld [vmem:[#allocation2 + $0x39] sm:$0xff]  ;;  %v800_v56 = vld [vmem:[#allocation2 + $0x69] sm:$0xff]  ;;  %v795_v62 = vld [vmem:[#allocation2 + $0x41] sm:$0xff] }
 0x101   : > { %8905 = vmatpush3.bf16.msra.mxu0 %v8904_v50  ;;  %8876 = vmatprep.subr.bf16.mxu1 %v8875_v51  ;;  %v801_v0 = vld [vmem:[#allocation2 + $0x71] sm:$0xff]  ;;  %v802_v1 = vld [vmem:[#allocation2 + $0x79] sm:$0xff]  ;;  %v774_v15 = vld [vmem:[#allocation2 + $0x28] sm:$0xff] }
 0x102   : > { %8279 = vmatmul.mubr.msk.f32.gmra.mrb[4].mxu0 %vm754_vm2, %v793_v55  ;;  %8288 = vmatmul.mubr.msk.f32.gmra.mrb[2].mxu1 %vm754_vm2, %v799_v57  ;;  %v803_v4 = vld [vmem:[#allocation2 + $0x81] sm:$0xff]  ;;  %v9690_v17 = vld [vmem:[#allocation2 + $0x30] sm:$0xff]  ;;  %v9694_v18 = vld [vmem:[#allocation2 + $0x38] sm:$0xff] }
 0x103   : > { %3939 = vperm.xlu0 %9264, %v3877_v54   ;;  %8281 = vmatprep.mubr.msk.f32.mxu0 %vm754_vm2, %v794_v59  ;;  %v804_v5 = vld [vmem:[#allocation2 + $0x89] sm:$0xff]  ;;  %v9701_v20 = vld [vmem:[#allocation2 + $0x40] sm:$0xff]  ;;  %v9716_v24 = vld [vmem:[#allocation2 + $0x58] sm:$0xff] }
 0x104   : > { %8290 = vmatprep.mubr.msk.f32.mxu1 %vm754_vm2, %v800_v56  ;;  %v9705_v21 = vld [vmem:[#allocation2 + $0x48] sm:$0xff]  ;;  %v9712_v23 = vld [vmem:[#allocation2 + $0x50] sm:$0xff]  ;;  %v9724_v27 = vld [vmem:[#allocation2 + $0x60] sm:$0xff] }
 0x105   : > { %v9728_v28 = vld [vmem:[#allocation2 + $0x68] sm:$0xff]  ;;  %v9733_v30 = vld [vmem:[#allocation2 + $0x70] sm:$0xff]  ;;  %v9737_v58 = vld [vmem:[#allocation2 + $0x78] sm:$0xff] }
 0x106   : > { %8282 = vmatmul.mubr.msk.f32.gmra.mrb[6].mxu0 %vm754_vm2, %v795_v62  ;;  %8291 = vmatmul.mubr.msk.f32.gmra.mrb[4].mxu1 %vm754_vm2, %v801_v0  ;;  %v9741_v31 = vld [vmem:[#allocation2 + $0x80] sm:$0xff]  ;;  %v9745_v32 = vld [vmem:[#allocation2 + $0x88] sm:$0xff]  ;;  %v787_v63 = vld [vmem:[#allocation2 + $0x90] sm:$0x1] }
 0x107   : > { %3949 = vperm.xlu0 %9264, %v3879_v61   ;;  %8293 = vmatprep.mubr.msk.f32.mxu1 %vm754_vm2, %v802_v1  ;;  %v1195_v35 = vld [vmem:[#allocation2 + $0x1a] sm:$0xff]  ;;  %v1196_v37 = vld [vmem:[#allocation2 + $0x22] sm:$0xff]  ;;  %v1197_v38 = vld [vmem:[#allocation2 + $0x2a] sm:$0xff] }
 0x108   : > { %8527 = vmatprep.mubr.msk.f32.mxu0 %vm9280_vm1, %v9279_v6  ;;  %v1198_v39 = vld [vmem:[#allocation2 + $0x32] sm:$0xff]  ;;  %v1199_v40 = vld [vmem:[#allocation2 + $0x3a] sm:$0xff]  ;;  %v1200_v41 = vld [vmem:[#allocation2 + $0x42] sm:$0xff] }
 0x109   : > { %v1201_v42 = vld [vmem:[#allocation2 + $0x4a] sm:$0xff]  ;;  %v1202_v43 = vld [vmem:[#allocation2 + $0x52] sm:$0xff]  ;;  %v1203_v44 = vld [vmem:[#allocation2 + $0x5a] sm:$0xff] }
 0x10a   : > { %8528 = vmatmul.mubr.msk.f32.vlgmr.msra.gmra.mrb[8].mxu0 %vm754_vm2, %v9592_v11  ;;  %8294 = vmatmul.mubr.msk.f32.gmra.mrb[6].mxu1 %vm754_vm2, %v803_v4  ;;  %v772_v11 = vld [vmem:[#allocation2 + $0x18] sm:$0xff]  ;;  %v1204_v45 = vld [vmem:[#allocation2 + $0x62] sm:$0xff]  ;;  %v1205_v46 = vld [vmem:[#allocation2 + $0x6a] sm:$0xff] }
 0x10b   : > { %3954 = vperm.xlu0 %9264, %v3880_v2   ;;  %8296 = vmatprep.mubr.msk.f32.mxu1 %vm754_vm2, %v804_v5  ;;  %v1206_v47 = vld [vmem:[#allocation2 + $0x72] sm:$0xff]  ;;  %v1207_v48 = vld [vmem:[#allocation2 + $0x7a] sm:$0xff]  ;;  %v1208_v49 = vld [vmem:[#allocation2 + $0x82] sm:$0xff] }
 0x10c   : > { %v1209_v50 = vld [vmem:[#allocation2 + $0x8a] sm:$0xff]  ;;  %v7563_v53 = vld [vmem:[%s11456_s5 + $0x58] sm:$0xff] }
 0x10d   : > { %v7562_v52 = vld [vmem:[%s11456_s5 + $0x50] sm:$0xff]  ;;  %v1423_v54 = vld [vmem:[#allocation2 + $0x23] sm:$0xff]  ;;  %v1426_v56 = vld [vmem:[#allocation2 + $0x3b] sm:$0xff] }
 0x10e   : > { %8297 = vmatmul.mubr.msk.f32.gmra.mrb[8].mxu1 %vm754_vm2, %v805_v7  ;;  %v8887_v55 = vpack.c.bf16 %v7563_v53, %v7562_v52  ;;  %v1424_v57 = vld [vmem:[#allocation2 + $0x2b] sm:$0xff]  ;;  %v1425_v59 = vld [vmem:[#allocation2 + $0x33] sm:$0xff]  ;;  %v1427_v61 = vld [vmem:[#allocation2 + $0x43] sm:$0xff] }
 0x10f   : > { %3959 = vperm.xlu0 %9264, %v3881_v8   ;;  %8303 = vmatprep.mubr.msk.f32.mxu1 %vm754_vm2, %v772_v11  ;;  %v1428_v62 = vld [vmem:[#allocation2 + $0x4b] sm:$0xff]  ;;  %v1429_v0 = vld [vmem:[#allocation2 + $0x53] sm:$0xff]  ;;  %v1430_v1 = vld [vmem:[#allocation2 + $0x5b] sm:$0xff] }
 0x110   : > { %v1431_v2 = vld [vmem:[#allocation2 + $0x63] sm:$0xff]  ;;  %v1432_v4 = vld [vmem:[#allocation2 + $0x6b] sm:$0xff]  ;;  %v1433_v5 = vld [vmem:[#allocation2 + $0x73] sm:$0xff] }
 0x111   : > { %v1434_v7 = vld [vmem:[#allocation2 + $0x7b] sm:$0xff]  ;;  %v1435_v8 = vld [vmem:[#allocation2 + $0x83] sm:$0xff]  ;;  %v1436_v10 = vld [vmem:[#allocation2 + $0x8b] sm:$0xff] }
 0x112   : > { %8304 = vmatmul.mubr.msk.f32.vlgmr.msra.gmra.mrb[10].mxu1 %vm754_vm2, %v773_v14  ;;  %v1438_v11 = vld [vmem:[#allocation2 + $0x9b] sm:$0x1]  ;;  %v1651_v14 = vld [vmem:[#allocation2 + $0x24] sm:$0xff]  ;;  %v1656_v26 = vld [vmem:[#allocation2 + $0x4c] sm:$0xff] }
 0x113   : > { %6173 = vperm.xlu0 %9264, %v6155_v12   ;;  %8878 = vmatpush3.bf16.msra.mxu1 %v8875_v51  ;;  %v1210_v51 = vld [vmem:[#allocation2 + $0x92] sm:$0x1]  ;;  %v7580_v12 = vld [vmem:[%s11456_s5 + $0x60] sm:$0xff]  ;;  %v6166_v52 = vld [vmem:[%s11463_s12 + $0x58] sm:$0xff] }
 0x114   : > { %8306 = vmatprep.mubr.msk.f32.mxu1 %vm754_vm2, %v774_v15  ;;  %8880 = vmatprep.subr.bf16.mxu1 %v8879_v13  ;;  %v1659_v33 = vld [vmem:[#allocation2 + $0x64] sm:$0xff] }
 0x115   : > { %v1882_v53 = vld [vmem:[#allocation2 + $0x3d] sm:$0xff] }
 0x116   : > { %8307 = vmatmul.mubr.msk.f32.gmra.mrb[12].mxu1 %vm754_vm2, %v9690_v17 }
 0x117   : > { %6183 = vperm.xlu0 %9264, %v6157_v16   ;;  %8309 = vmatprep.mubr.msk.f32.mxu1 %vm754_vm2, %v9694_v18  ;;  %v1652_v16 = vld [vmem:[#allocation2 + $0x2c] sm:$0xff] }
 0x11a   : > { %8310 = vmatmul.mubr.msk.f32.gmra.mrb[14].mxu1 %vm754_vm2, %v9701_v20 }
 0x11b   : > { %6193 = vperm.xlu0 %9264, %v6159_v19   ;;  %8312 = vmatprep.mubr.msk.f32.mxu1 %vm754_vm2, %v9705_v21  ;;  %v1653_v19 = vld [vmem:[#allocation2 + $0x34] sm:$0xff] }
 0x11e   : > { %8313 = vmatmul.mubr.msk.f32.gmra.mrb[0].mxu1 %vm754_vm2, %v9712_v23 }
 0x11f   : > { %6203 = vperm.xlu0 %9264, %v6161_v22   ;;  %8315 = vmatprep.mubr.msk.f32.mxu1 %vm754_vm2, %v9716_v24  ;;  %v1654_v22 = vld [vmem:[#allocation2 + $0x3c] sm:$0xff] }
 0x122   : > { %8316 = vmatmul.mubr.msk.f32.gmra.mrb[2].mxu1 %vm754_vm2, %v9724_v27 }
 0x123   : > { %6213 = vperm.xlu0 %9264, %v6163_v25   ;;  %8318 = vmatprep.mubr.msk.f32.mxu1 %vm754_vm2, %v9728_v28  ;;  %v1655_v25 = vld [vmem:[#allocation2 + $0x44] sm:$0xff] }
 0x126   : > { %8319 = vmatmul.mubr.msk.f32.gmra.mrb[4].mxu1 %vm754_vm2, %v9733_v30 }
 0x127   : > { %6407 = vrot.lane.b32.xlu0 %v6405_v29, %s9283_s1  ;;  %8321 = vmatprep.mubr.msk.f32.mxu1 %vm754_vm2, %v9737_v58  ;;  %v1657_v29 = vld [vmem:[#allocation2 + $0x54] sm:$0xff] }
 0x12a   : > { %8322 = vmatmul.mubr.msk.f32.gmra.mrb[6].mxu1 %vm754_vm2, %v9741_v31 }
 0x12b   : > { %8324 = vmatprep.mubr.msk.f32.mxu1 %vm754_vm2, %v9745_v32  ;;  %6228 = vperm.xlu0 %9264, %v6166_v52   ;;  %v2118_v52 = vld [vmem:[#allocation2 + $0x86] sm:$0xff] }
 0x12e   : > { %8325 = vmatmul.mubr.msk.f32.gmra.mrb[8].mxu1 %vm754_vm2, %v787_v63  ;;  %v1658_v63 = vld [vmem:[#allocation2 + $0x5c] sm:$0xff] }
 0x12f   : > { %8331 = vmatprep.mubr.msk.f32.mxu1 %vm754_vm2, %v1195_v35  ;;  %v1660_v35 = vld [vmem:[#allocation2 + $0x6c] sm:$0xff] }
 0x132   : > { %8332 = vmatmul.mubr.msk.f32.vlgmr.msra.gmra.mrb[10].mxu1 %vm754_vm2, %v1196_v37  ;;  %v1662_v37 = vld [vmem:[#allocation2 + $0x7c] sm:$0xff] }
 0x133   : > { %8882 = vmatpush3.bf16.msra.mxu1 %v8879_v13  ;;  %8334 = vmatprep.mubr.msk.f32.mxu1 %vm754_vm2, %v1197_v38  ;;  %v7581_v13 = vld [vmem:[%s11456_s5 + $0x68] sm:$0xff] }
 0x134   : > { %8884 = vmatprep.subr.bf16.mxu1 %v8883_v36  ;;  %v8891_v15 = vpack.c.bf16 %v7581_v13, %v7580_v12  ;;  %v1663_v38 = vld [vmem:[#allocation2 + $0x84] sm:$0xff]  ;;  %v6165_v12 = vld [vmem:[%s11463_s12 + $0x50] sm:$0xff] }
 0x135   : > { %v1891_v13 = vld [vmem:[#allocation2 + $0x85] sm:$0xff] }
 0x136   : > { %8335 = vmatmul.mubr.msk.f32.gmra.mrb[12].mxu1 %vm754_vm2, %v1198_v39  ;;  %v9814_v39 = vpop.permute.xlu1 %2824 }
 0x137   : > { %8337 = vmatprep.mubr.msk.f32.mxu1 %vm754_vm2, %v1199_v40  ;;  %v1665_v40 = vld [vmem:[#allocation2 + $0x94] sm:$0xff] }
 0x13a   : > { %8338 = vmatmul.mubr.msk.f32.gmra.mrb[14].mxu1 %vm754_vm2, %v1200_v41  ;;  %v1664_v41 = vld [vmem:[#allocation2 + $0x8c] sm:$0xff] }
 0x13b   : > { %8340 = vmatprep.mubr.msk.f32.mxu1 %vm754_vm2, %v1201_v42  ;;  %v1666_v42 = vld [vmem:[#allocation2 + $0x9c] sm:$0x1] }
 0x13e   : > { %8341 = vmatmul.mubr.msk.f32.gmra.mrb[0].mxu1 %vm754_vm2, %v1202_v43  ;;  %v9819_v43 = vpop.permute.xlu1 %2834 }
 0x13f   : > { %8343 = vmatprep.mubr.msk.f32.mxu1 %vm754_vm2, %v1203_v44  ;;  %v7598_v44 = vld [vmem:[%s11456_s5 + $0x70] sm:$0xff] }
 0x142   : > { %8344 = vmatmul.mubr.msk.f32.gmra.mrb[2].mxu1 %vm754_vm2, %v1204_v45  ;;  %v7599_v45 = vld [vmem:[%s11456_s5 + $0x78] sm:$0xff] }
 0x143   : > { %8346 = vmatprep.mubr.msk.f32.mxu1 %vm754_vm2, %v1205_v46  ;;  %v1879_v46 = vld [vmem:[#allocation2 + $0x25] sm:$0xff] }
 0x146   : > { %8347 = vmatmul.mubr.msk.f32.gmra.mrb[4].mxu1 %vm754_vm2, %v1206_v47  ;;  %v9829_v47 = vpack.c.bf16 %v7599_v45, %v7598_v44  ;;  %v2113_v44 = vld [vmem:[#allocation2 + $0x5e] sm:$0xff] }
 0x147   : > { %8349 = vmatprep.mubr.msk.f32.mxu1 %vm754_vm2, %v1207_v48  ;;  %v1880_v48 = vld [vmem:[#allocation2 + $0x2d] sm:$0xff] }
 0x14a   : > { %8350 = vmatmul.mubr.msk.f32.gmra.mrb[6].mxu1 %vm754_vm2, %v1208_v49  ;;  %v1881_v49 = vld [vmem:[#allocation2 + $0x35] sm:$0xff] }
 0x14b   : > { %8352 = vmatprep.mubr.msk.f32.mxu1 %vm754_vm2, %v1209_v50  ;;  %v6156_v50 = vld [vmem:[%s11463_s12 + $0x8] sm:$0xff] }
 0x14c   : > { %6178 = vperm.xlu1 %9265, %v6156_v50  }
 0x14e   : > { %8353 = vmatmul.mubr.msk.f32.gmra.mrb[8].mxu1 %vm754_vm2, %v1210_v51  ;;  %v9835_v51 = vpop.permute.xlu1 %2844 }
 0x14f   : > { %8359 = vmatprep.mubr.msk.f32.mxu1 %vm754_vm2, %v1423_v54  ;;  %v6158_v54 = vld [vmem:[%s11463_s12 + $0x18] sm:$0xff] }
 0x150   : > { %6188 = vperm.xlu1 %9265, %v6158_v54   ;;  %v2120_v54 = vld [vmem:[#allocation2 + $0x96] sm:$0xff] }
 0x152   : > { %8360 = vmatmul.mubr.msk.f32.vlgmr.msra.gmra.mrb[10].mxu1 %vm754_vm2, %v1424_v57  ;;  %v6168_v57 = vld [vmem:[%s11463_s12 + $0x68] sm:$0xff] }
 0x153   : > { %8886 = vmatpush3.bf16.msra.mxu1 %v8883_v36  ;;  %8362 = vmatprep.mubr.msk.f32.mxu1 %vm754_vm2, %v1425_v59  ;;  %v1661_v36 = vld [vmem:[#allocation2 + $0x74] sm:$0xff]  ;;  %v9850_v59 = vpop.permute.xlu1 %2854 }
 0x154   : > { %8888 = vmatprep.subr.bf16.mxu1 %v8887_v55  ;;  %6238 = vperm.xlu0 %9264, %v6168_v57  }
 0x156   : > { %8363 = vmatmul.mubr.msk.f32.gmra.mrb[12].mxu1 %vm754_vm2, %v1426_v56  ;;  %v1884_v56 = vld [vmem:[#allocation2 + $0x4d] sm:$0xff] }
 0x157   : > { %8365 = vmatprep.mubr.msk.f32.mxu1 %vm754_vm2, %v1427_v61  ;;  %v6160_v61 = vld [vmem:[%s11463_s12 + $0x28] sm:$0xff] }
 0x158   : > { %6198 = vperm.xlu1 %9265, %v6160_v61   ;;  %v2335_v61 = vld [vmem:[#allocation2 + $0x2f] sm:$0xff] }
 0x15a   : > { %8366 = vmatmul.mubr.msk.f32.gmra.mrb[14].mxu1 %vm754_vm2, %v1428_v62  ;;  %v1885_v62 = vld [vmem:[#allocation2 + $0x55] sm:$0xff] }
 0x15b   : > { %8368 = vmatprep.mubr.msk.f32.mxu1 %vm754_vm2, %v1429_v0  ;;  %v6170_v0 = vld [vmem:[%s11463_s12 + $0x78] sm:$0x1] }
 0x15c   : > { %6248 = vperm.xlu0 %9264, %v6170_v0  }
 0x15e   : > { %8369 = vmatmul.mubr.msk.f32.gmra.mrb[0].mxu1 %vm754_vm2, %v1430_v1  ;;  %v1886_v1 = vld [vmem:[#allocation2 + $0x5d] sm:$0xff] }
 0x15f   : > { %8371 = vmatprep.mubr.msk.f32.mxu1 %vm754_vm2, %v1431_v2  ;;  %v6162_v2 = vld [vmem:[%s11463_s12 + $0x38] sm:$0xff] }
 0x160   : > { %6208 = vperm.xlu1 %9265, %v6162_v2   ;;  %v2336_v2 = vld [vmem:[#allocation2 + $0x37] sm:$0xff] }
 0x162   : > { %8372 = vmatmul.mubr.msk.f32.gmra.mrb[2].mxu1 %vm754_vm2, %v1432_v4  ;;  %v1887_v4 = vld [vmem:[#allocation2 + $0x65] sm:$0xff] }
 0x163   : > { %8374 = vmatprep.mubr.msk.f32.mxu1 %vm754_vm2, %v1433_v5  ;;  %v9864_v5 = vpop.permute.xlu1 %2864 }
 0x166   : > { %8375 = vmatmul.mubr.msk.f32.gmra.mrb[4].mxu1 %vm754_vm2, %v1434_v7  ;;  %v1888_v7 = vld [vmem:[#allocation2 + $0x6d] sm:$0xff] }
 0x167   : > { %8377 = vmatprep.mubr.msk.f32.mxu1 %vm754_vm2, %v1435_v8  ;;  %v6164_v8 = vld [vmem:[%s11463_s12 + $0x48] sm:$0xff] }
 0x168   : > { %6218 = vperm.xlu1 %9265, %v6164_v8  }
 0x16a   : > { %8378 = vmatmul.mubr.msk.f32.gmra.mrb[6].mxu1 %vm754_vm2, %v1436_v10  ;;  %v9872_v10 = vpop.permute.xlu1 %2874 }
 0x16b   : > { %8380 = vmatprep.mubr.msk.f32.mxu1 %vm754_vm2, %v1437_v9  ;;  %v1889_v9 = vld [vmem:[#allocation2 + $0x75] sm:$0xff] }
 0x16c   : > { %6223 = vperm.xlu1 %9265, %v6165_v12   ;;  %v2339_v12 = vld [vmem:[#allocation2 + $0x4f] sm:$0xff] }
 0x16e   : > { %8381 = vmatmul.mubr.msk.f32.gmra.mrb[8].mxu1 %vm754_vm2, %v1438_v11  ;;  %v1890_v11 = vld [vmem:[#allocation2 + $0x7d] sm:$0xff] }
 0x16f   : > { %8387 = vmatprep.mubr.msk.f32.mxu1 %vm754_vm2, %v1651_v14  ;;  %v1893_v14 = vld [vmem:[#allocation2 + $0x95] sm:$0xff] }
 0x172   : > { %8388 = vmatmul.mubr.msk.f32.vlgmr.msra.gmra.mrb[10].mxu1 %vm754_vm2, %v1652_v16  ;;  %v6167_v16 = vld [vmem:[%s11463_s12 + $0x60] sm:$0xff] }
 0x173   : > { %8890 = vmatpush3.bf16.msra.mxu1 %v8887_v55  ;;  %8390 = vmatprep.mubr.msk.f32.mxu1 %vm754_vm2, %v1653_v19  ;;  %v1883_v55 = vld [vmem:[#allocation2 + $0x45] sm:$0xff]  ;;  %v9883_v19 = vpop.permute.xlu1 %2879 }
 0x174   : > { %8892 = vmatprep.subr.bf16.mxu1 %v8891_v15  ;;  %6233 = vperm.xlu1 %9265, %v6167_v16   ;;  %v2341_v16 = vld [vmem:[#allocation2 + $0x5f] sm:$0xff] }
 0x176   : > { %8391 = vmatmul.mubr.msk.f32.gmra.mrb[12].mxu1 %vm754_vm2, %v1654_v22  ;;  %v1894_v22 = vld [vmem:[#allocation2 + $0x9d] sm:$0x1] }
 0x177   : > { %8393 = vmatprep.mubr.msk.f32.mxu1 %vm754_vm2, %v1655_v25  ;;  %v7616_v25 = vld [vmem:[%s11456_s5 + $0x80] sm:$0xff] }
 0x17a   : > { %8394 = vmatmul.mubr.msk.f32.gmra.mrb[14].mxu1 %vm754_vm2, %v1656_v26  ;;  %v7617_v26 = vld [vmem:[%s11456_s5 + $0x88] sm:$0xff] }
 0x17b   : > { %8396 = vmatprep.mubr.msk.f32.mxu1 %vm754_vm2, %v1657_v29  ;;  %v6169_v29 = vld [vmem:[%s11463_s12 + $0x70] sm:$0xff] }
 0x17c   : > { %6243 = vperm.xlu1 %9265, %v6169_v29  }
 0x17e   : > { %8397 = vmatmul.mubr.msk.f32.gmra.mrb[0].mxu1 %vm754_vm2, %v1658_v63  ;;  %v2107_v63 = vld [vmem:[#allocation2 + $0x2e] sm:$0xff] }
 0x17f   : > { %8399 = vmatprep.mubr.msk.f32.mxu1 %vm754_vm2, %v1659_v33  ;;  %v8899_v33 = vpack.c.bf16 %v7617_v26, %v7616_v25  ;;  %v2342_v26 = vld [vmem:[#allocation2 + $0x67] sm:$0xff] }
 0x182   : > { %8400 = vmatmul.mubr.msk.f32.gmra.mrb[2].mxu1 %vm754_vm2, %v1660_v35  ;;  %v9897_v35 = vpop.permute.xlu1 %3663 }
 0x183   : > { %8402 = vmatprep.mubr.msk.f32.mxu1 %vm754_vm2, %v1661_v36  ;;  %11535 = vst [vmem:[#allocation4_spill] sm:$0xff] %v9897_v35  ;;  %v2108_v36 = vld [vmem:[#allocation2 + $0x36] sm:$0xff] }
 0x186   : > { %8403 = vmatmul.mubr.msk.f32.gmra.mrb[4].mxu1 %vm754_vm2, %v1662_v37  ;;  %v2109_v37 = vld [vmem:[#allocation2 + $0x3e] sm:$0xff] }
 0x187   : > { %8405 = vmatprep.mubr.msk.f32.mxu1 %vm754_vm2, %v1663_v38  ;;  %v2110_v38 = vld [vmem:[#allocation2 + $0x46] sm:$0xff] }
 0x18a   : > { %8406 = vmatmul.mubr.msk.f32.gmra.mrb[6].mxu1 %vm754_vm2, %v1664_v41  ;;  %v9903_v41 = vpop.permute.xlu1 %3668 }
 0x18b   : > { %8408 = vmatprep.mubr.msk.f32.mxu1 %vm754_vm2, %v1665_v40  ;;  %v2111_v40 = vld [vmem:[#allocation2 + $0x4e] sm:$0xff]  ;;  %11536 = vst [vmem:[#allocation5_spill] sm:$0xff] %v9903_v41 }
 0x18e   : > { %8409 = vmatmul.mubr.msk.f32.gmra.mrb[8].mxu1 %vm754_vm2, %v1666_v42  ;;  %v2112_v42 = vld [vmem:[#allocation2 + $0x56] sm:$0xff]  ;;  %v9908_v45 = vpop.permute.xlu1 %3678 }
 0x18f   : > { %8415 = vmatprep.mubr.msk.f32.mxu1 %vm754_vm2, %v1879_v46  ;;  %11537 = vst [vmem:[#allocation6_spill] sm:$0xff] %v9908_v45  ;;  %v2114_v46 = vld [vmem:[#allocation2 + $0x66] sm:$0xff] }
 0x192   : > { %8416 = vmatmul.mubr.msk.f32.vlgmr.msra.gmra.mrb[10].mxu1 %vm754_vm2, %v1880_v48  ;;  %v2116_v48 = vld [vmem:[#allocation2 + $0x76] sm:$0xff]  ;;  %v9913_v50 = vpop.permute.xlu1 %3683 }
 0x193   : > { %8894 = vmatpush3.bf16.msra.mxu1 %v8891_v15  ;;  %8418 = vmatprep.mubr.msk.f32.mxu1 %vm754_vm2, %v1881_v49  ;;  %v1892_v15 = vld [vmem:[#allocation2 + $0x8d] sm:$0xff]  ;;  %v2117_v49 = vld [vmem:[#allocation2 + $0x7e] sm:$0xff]  ;;  %11538 = vst [vmem:[#allocation7_spill] sm:$0xff] %v9913_v50 }
 0x194   : > { %8896 = vmatprep.subr.bf16.mxu1 %v9829_v47 }
 0x196   : > { %8419 = vmatmul.mubr.msk.f32.gmra.mrb[12].mxu1 %vm754_vm2, %v1882_v53  ;;  %v2119_v53 = vld [vmem:[#allocation2 + $0x8e] sm:$0xff]  ;;  %v9918_v57 = vpop.permute.xlu1 %3688 }
 0x197   : > { %8421 = vmatprep.mubr.msk.f32.mxu1 %vm754_vm2, %v1883_v55  ;;  %v2121_v55 = vld [vmem:[#allocation2 + $0x9e] sm:$0xff]  ;;  %11539 = vst [vmem:[#allocation8_spill] sm:$0xff] %v9918_v57 }
 0x19a   : > { %8422 = vmatmul.mubr.msk.f32.gmra.mrb[14].mxu1 %vm754_vm2, %v1884_v56  ;;  %v2122_v56 = vld [vmem:[#allocation2 + $0xa6] sm:$0x1] }
 0x19b   : > { %8424 = vmatprep.mubr.msk.f32.mxu1 %vm754_vm2, %v1885_v62  ;;  %v9923_v62 = vpop.permute.xlu1 %3693 }
 0x19c   : > { %11540 = vst [vmem:[#allocation9_spill] sm:$0xff] %v9923_v62 }
 0x19e   : > { %8425 = vmatmul.mubr.msk.f32.gmra.mrb[0].mxu1 %vm754_vm2, %v1886_v1 }
 0x19f   : > { %8427 = vmatprep.mubr.msk.f32.mxu1 %vm754_vm2, %v1887_v4  ;;  %v2337_v4 = vld [vmem:[#allocation2 + $0x3f] sm:$0xff]  ;;  %v9935_v8 = vpop.permute.xlu1 %3698 }
 0x1a0   : > { %11541 = vst [vmem:[#allocation10_spill] sm:$0xff] %v9935_v8 }
 0x1a2   : > { %8428 = vmatmul.mubr.msk.f32.gmra.mrb[2].mxu1 %vm754_vm2, %v1888_v7 }
 0x1a3   : > { %8430 = vmatprep.mubr.msk.f32.mxu1 %vm754_vm2, %v1889_v9 }
 0x1a6   : > { %8431 = vmatmul.mubr.msk.f32.gmra.mrb[4].mxu1 %vm754_vm2, %v1890_v11  ;;  %v2338_v11 = vld [vmem:[#allocation2 + $0x47] sm:$0xff] }
 0x1a7   : > { %8433 = vmatprep.mubr.msk.f32.mxu1 %vm754_vm2, %v1891_v13 }
 0x1aa   : > { %8434 = vmatmul.mubr.msk.f32.gmra.mrb[6].mxu1 %vm754_vm2, %v1892_v15  ;;  %v2340_v15 = vld [vmem:[#allocation2 + $0x57] sm:$0xff] }
 0x1ab   : > { %8436 = vmatprep.mubr.msk.f32.mxu1 %vm754_vm2, %v1893_v14 }
 0x1ae   : > { %8437 = vmatmul.mubr.msk.f32.gmra.mrb[8].mxu1 %vm754_vm2, %v1894_v22  ;;  %v9946_v22 = vpop.permute.xlu1 %3703 }
 0x1af   : > { %8443 = vmatprep.mubr.msk.f32.mxu1 %vm754_vm2, %v2107_v63  ;;  %11542 = vst [vmem:[#allocation11_spill] sm:$0xff] %v9946_v22  ;;  %v2343_v63 = vld [vmem:[#allocation2 + $0x6f] sm:$0xff] }
 0x1b2   : > { %8444 = vmatmul.mubr.msk.f32.vlgmr.msra.gmra.mrb[10].mxu1 %vm754_vm2, %v2108_v36  ;;  %v2344_v36 = vld [vmem:[#allocation2 + $0x77] sm:$0xff] }
 0x1b3   : > { %8898 = vmatpush3.bf16.msra.mxu1 %v9829_v47  ;;  %8446 = vmatprep.mubr.msk.f32.mxu1 %vm754_vm2, %v2109_v37  ;;  %v2115_v47 = vld [vmem:[#allocation2 + $0x6e] sm:$0xff]  ;;  %v2345_v37 = vld [vmem:[#allocation2 + $0x7f] sm:$0xff] }
 0x1b4   : > { %8900 = vmatprep.subr.bf16.mxu1 %v8899_v33 }
 0x1b6   : > { %8447 = vmatmul.mubr.msk.f32.gmra.mrb[12].mxu1 %vm754_vm2, %v2110_v38  ;;  %v2346_v38 = vld [vmem:[#allocation2 + $0x87] sm:$0xff] }
 0x1b7   : > { %8449 = vmatprep.mubr.msk.f32.mxu1 %vm754_vm2, %v2111_v40  ;;  %v2347_v40 = vld [vmem:[#allocation2 + $0x8f] sm:$0xff] }
 0x1ba   : > { %8450 = vmatmul.mubr.msk.f32.gmra.mrb[14].mxu1 %vm754_vm2, %v2112_v42 }
 0x1bb   : > { %8452 = vmatprep.mubr.msk.f32.mxu1 %vm754_vm2, %v2113_v44  ;;  %v2348_v44 = vld [vmem:[#allocation2 + $0x97] sm:$0xff] }
 0x1be   : > { %8453 = vmatmul.mubr.msk.f32.gmra.mrb[0].mxu1 %vm754_vm2, %v2114_v46  ;;  %v2349_v46 = vld [vmem:[#allocation2 + $0x9f] sm:$0xff] }
 0x1bf   : > { %8455 = vmatprep.mubr.msk.f32.mxu1 %vm754_vm2, %v2115_v47  ;;  %v2350_v47 = vld [vmem:[#allocation2 + $0xa7] sm:$0x1] }
 0x1c2   : > { %8456 = vmatmul.mubr.msk.f32.gmra.mrb[2].mxu1 %vm754_vm2, %v2116_v48  ;;  %v6055_v48 = vld [vmem:[%s11461_s10] sm:$0xff] }
 0x1c3   : > { %8458 = vmatprep.mubr.msk.f32.mxu1 %vm754_vm2, %v2117_v49  ;;  %v6056_v49 = vld [vmem:[%s11461_s10 + $0x8] sm:$0xff] }
 0x1c6   : > { %8459 = vmatmul.mubr.msk.f32.gmra.mrb[4].mxu1 %vm754_vm2, %v2118_v52 }
 0x1c7   : > { %8461 = vmatprep.mubr.msk.f32.mxu1 %vm754_vm2, %v2119_v53  ;;  %v8979_v53 = vpack.c.bf16 %v6056_v49, %v6055_v48 }
 0x1ca   : > { %8462 = vmatmul.mubr.msk.f32.gmra.mrb[6].mxu1 %vm754_vm2, %v2120_v54  ;;  %v6057_v54 = vld [vmem:[%s11461_s10 + $0x10] sm:$0xff] }
 0x1cb   : > { %8464 = vmatprep.mubr.msk.f32.mxu1 %vm754_vm2, %v2121_v55  ;;  %v6058_v55 = vld [vmem:[%s11461_s10 + $0x18] sm:$0xff] }
 0x1ce   : > { %8465 = vmatmul.mubr.msk.f32.gmra.mrb[8].mxu1 %vm754_vm2, %v2122_v56 }
 0x1cf   : > { %8471 = vmatprep.mubr.msk.f32.mxu1 %vm754_vm2, %v2335_v61  ;;  %v8982_v61 = vpack.c.bf16 %v6058_v55, %v6057_v54 }
 0x1d1   : > { %v9926_v0 = vpop.f32.mrb[2].mxu0 }
 0x1d2   : > { %v9928_v1 = vpop.f32.mrb[3].mxu0  ;;  %8472 = vmatmul.mubr.msk.f32.vlgmr.msra.gmra.mrb[10].mxu1 %vm754_vm2, %v2336_v2 }
 0x1d3   : > { %8902 = vmatpush3.bf16.msra.mxu1 %v8899_v33  ;;  %8474 = vmatprep.mubr.msk.f32.mxu1 %vm754_vm2, %v2337_v4  ;;  %v9953_v33 = vpop.permute.xlu1 %3909  ;;  %v10032_v4 = vld [vmem:[#allocation2 + $0xd] sm:$0xff] }
 0x1d4   : > { %8978 = vmatprep.subr.bf16.mxu1 %v9278_v3  ;;  %11543 = vst [vmem:[#allocation12_spill] sm:$0xff] %v9953_v33  ;;  %8538 = vmatprep.mubr.msk.f32.mxu0 %vm626_vm0, %v10032_v4 }
 0x1d5   : > { %v9932_v7 = vpop.f32.mrb[4].mxu0 }
 0x1d6   : > { %v9937_v9 = vpop.f32.mrb[5].mxu0  ;;  %8475 = vmatmul.mubr.msk.f32.gmra.mrb[12].mxu1 %vm754_vm2, %v2338_v11  ;;  %v2810_v11 = vpop.permute.xlu0 %2809 }
 0x1d7   : > { %8477 = vmatprep.mubr.msk.f32.mxu1 %vm754_vm2, %v2339_v12  ;;  %v9958_v42 = vpop.permute.xlu1 %3914 }
 0x1d8   : > { %11544 = vst [vmem:[#allocation13_spill] sm:$0xff] %v9958_v42 }
 0x1d9   : > { %v9941_v13 = vpop.f32.mrb[6].mxu0 }
 0x1da   : > { %v9943_v14 = vpop.f32.mrb[7].mxu0  ;;  %8478 = vmatmul.mubr.msk.f32.gmra.mrb[14].mxu1 %vm754_vm2, %v2340_v15  ;;  %v2815_v12 = vpop.permute.xlu0 %2814 }
 0x1db   : > { %8480 = vmatprep.mubr.msk.f32.mxu1 %vm754_vm2, %v2341_v16  ;;  %v9969_v52 = vpop.permute.xlu1 %3919  ;;  %v2920_v16 = vld [vmem:[#allocation2] sm:$0xff] }
 0x1dc   : > { %11545 = vst [vmem:[#allocation14_spill] sm:$0xff] %v9969_v52 }
 0x1dd   : > { %v9949_v25 = vpop.f32.mrb[8].mxu0 }
 0x1de   : > { %v8529_v29 = vpop.f32.mrb[9].mxu0  ;;  %8481 = vmatmul.mubr.msk.f32.gmra.mrb[0].mxu1 %vm754_vm2, %v2342_v26  ;;  %v2830_v15 = vpop.permute.xlu0 %2829  ;;  %v2968_v26 = vld [vmem:[#allocation2 + $0x1] sm:$0xff] }
 0x1df   : > { %8483 = vmatprep.mubr.msk.f32.mxu1 %vm754_vm2, %v2343_v63  ;;  %v9982_v56 = vpop.permute.xlu1 %3924  ;;  %v2936_v63 = vmul.f32 0.0625, %v2920_v16  ;;  %v3146_v16 = vld [vmem:[#allocation2 + $0xc] sm:$0xff] }
 0x1e0   : > { %11546 = vst [vmem:[#allocation15_spill] sm:$0xff] %v9982_v56 }
 0x1e2   : > { %8484 = vmatmul.mubr.msk.f32.gmra.mrb[2].mxu1 %vm754_vm2, %v2344_v36  ;;  %v10036_v29 = vpop.permute.xlu0 %2839  ;;  %v2984_v36 = vmul.f32 0.1875, %v2968_v26  ;;  %v3017_v26 = vld [vmem:[#allocation2 + $0xa] sm:$0xff] }
 0x1e3   : > { %8486 = vmatprep.mubr.msk.f32.mxu1 %vm754_vm2, %v2345_v37  ;;  %v3016_v37 = vld [vmem:[#allocation2 + $0x2] sm:$0xff] }
 0x1e6   : > { %8487 = vmatmul.mubr.msk.f32.gmra.mrb[4].mxu1 %vm754_vm2, %v2346_v38  ;;  %v3611_v38 = vadd.f32 1e-08, %v9949_v25 }
 0x1e7   : > { %8489 = vmatprep.mubr.msk.f32.mxu1 %vm754_vm2, %v2347_v40  ;;  %v3000_v40 = vadd.f32 %v2984_v36, %v2936_v63 }
 0x1e8   : > { %9266 = vrsqrt.f32 %v3611_v38 }
 0x1ea   : > { %8490 = vmatmul.mubr.msk.f32.gmra.mrb[6].mxu1 %vm754_vm2, %v2348_v44  ;;  %v3032_v44 = vmul.f32 0.1875, %v3016_v37  ;;  %v3162_v37 = vmul.f32 0.5625, %v3146_v16 }
 0x1eb   : > { %8492 = vmatprep.mubr.msk.f32.mxu1 %vm754_vm2, %v2349_v46  ;;  %v3064_v46 = vld [vmem:[#allocation2 + $0x3] sm:$0xff] }
 0x1ec   : > { %v3048_v49 = vadd.f32 %v3032_v44, %v3000_v40 }
 0x1ee   : > { %8493 = vmatmul.mubr.msk.f32.gmra.mrb[8].mxu1 %vm754_vm2, %v2350_v47  ;;  %v10039_v47 = vpop.permute.xlu0 %2849 }
 0x1ef   : > { %8499 = vmatprep.mubr.msk.f32.mxu1 %vm754_vm2, %v9690_v17  ;;  %v9991_v17 = vpop.permute.xlu1 %3934 }
 0x1f0   : > { %11547 = vst [vmem:[#allocation16_spill] sm:$0xff] %v9991_v17 }
 0x1f2   : > { %8500 = vmatmul.mubr.msk.f32.vlgmr.msra.gmra.mrb[10].mxu1 %vm754_vm2, %v9694_v18  ;;  %v9267_v38 = vpop.eup %9266 }
 0x1f3   : > { %8502 = vmatprep.mubr.msk.f32.mxu1 %vm754_vm2, %v9701_v20  ;;  %8980 = vmatpush3.bf16.msra.mxu1 %v8979_v53  ;;  %v9999_v18 = vpop.permute.xlu1 %3944  ;;  %v2575_v20 = vld [vmem:[#allocation2 + $0x90] sm:$0xff]  ;;  %v3080_v53 = vmul.f32 0.0625, %v3064_v46  ;;  %v3033_v46 = vmul.f32 0.1875, %v3017_v26 }
 0x1f4   : > { %8981 = vmatprep.subr.bf16.mxu1 %v9278_v3  ;;  %11548 = vst [vmem:[#allocation17_spill] sm:$0xff] %v9999_v18 }
 0x1f6   : > { %8503 = vmatmul.mubr.msk.f32.gmra.mrb[12].mxu1 %vm754_vm2, %v9705_v21  ;;  %v2576_v21 = vld [vmem:[#allocation2 + $0x98] sm:$0xff] }
 0x1f7   : > { %8505 = vmatprep.mubr.msk.f32.mxu1 %vm754_vm2, %v9712_v23  ;;  %8983 = vmatpush3.bf16.msra.mxu1 %v8982_v61  ;;  %v10007_v3 = vpop.permute.xlu1 %3723  ;;  %v2577_v23 = vld [vmem:[#allocation2 + $0xa0] sm:$0xff]  ;;  %v3065_v61 = vld [vmem:[#allocation2 + $0xb] sm:$0xff] }
 0x1f8   : > { %11549 = vst [vmem:[#allocation18_spill] sm:$0xff] %v10007_v3 }
 0x1fa   : > { %8506 = vmatmul.mubr.msk.f32.gmra.mrb[14].mxu1 %vm754_vm2, %v9716_v24 }
 0x1fb   : > { %8508 = vmatprep.mubr.msk.f32.mxu1 %vm754_vm2, %v9724_v27  ;;  %v10013_v24 = vpop.permute.xlu1 %3728  ;;  %v2578_v27 = vld [vmem:[#allocation2 + $0xa8] sm:$0x1] }
 0x1fc   : > { %11550 = vst [vmem:[#allocation19_spill] sm:$0xff] %v10013_v24 }
 0x1fe   : > { %8509 = vmatmul.mubr.msk.f32.gmra.mrb[0].mxu1 %vm754_vm2, %v9728_v28 }
 0x1ff   : > { %8511 = vmatprep.mubr.msk.f32.mxu1 %vm754_vm2, %v9733_v30  ;;  %v6061_v28 = vpop.permute.xlu1 %6060  ;;  %v7652_v30 = vld [vmem:[%s11460_s9 + $0x20] sm:$0xff] }
 0x202   : > { %8512 = vmatmul.mubr.msk.f32.gmra.mrb[2].mxu1 %vm754_vm2, %v9737_v58  ;;  %v7653_v58 = vld [vmem:[%s11460_s9 + $0x28] sm:$0xff] }
 0x203   : > { %8514 = vmatprep.mubr.msk.f32.mxu1 %vm754_vm2, %v9741_v31  ;;  %v7654_v31 = vld [vmem:[%s11460_s9 + $0x30] sm:$0xff] }
 0x206   : > { %8515 = vmatmul.mubr.msk.f32.gmra.mrb[4].mxu1 %vm754_vm2, %v9745_v32  ;;  %v8906_v32 = vpack.c.bf16 %v7653_v58, %v7652_v30  ;;  %v3096_v58 = vadd.f32 %v3080_v53, %v3048_v49  ;;  %v3242_v49 = vld [vmem:[#allocation2 + $0xe] sm:$0xff] }
 0x207   : > { %8517 = vmatprep.mubr.msk.f32.mxu1 %vm754_vm2, %v2575_v20  ;;  %v3418_v53 = vld [vmem:[#allocation2 + $0x91] sm:$0xff]  ;;  %v3258_v26 = vmul.f32 0.1875, %v3242_v49 }
 0x208   : > { %8907 = vmatprep.subr.bf16.mxu0 %v8906_v32 }
 0x209   : > { %8909 = vmatpush3.bf16.msra.mxu0 %v8906_v32 }
 0x20a   : > { %8518 = vmatmul.mubr.msk.f32.gmra.mrb[6].mxu1 %vm754_vm2, %v2576_v21  ;;  %v2921_v21 = vld [vmem:[#allocation2 + $0x8] sm:$0xff] }
 0x20b   : > { %8520 = vmatprep.mubr.msk.f32.mxu1 %vm754_vm2, %v2577_v23  ;;  %v2969_v23 = vld [vmem:[#allocation2 + $0x9] sm:$0xff] }
 0x20e   : > { %8521 = vmatmul.mubr.msk.f32.gmra.mrb[8].mxu1 %vm754_vm2, %v2578_v27 }
 0x20f   : > { %8826 = vmatprep.mubr.msk.f32.mxu1 %vm9280_vm1, %v9279_v6  ;;  %v7655_v6 = vld [vmem:[%s11460_s9 + $0x38] sm:$0xff] }
 0x210   : > { %v8910_v2 = vpack.c.bf16 %v7655_v6, %v7654_v31  ;;  %v3114_v31 = vmul.f32 0.1875, %v3065_v61 }
 0x212   : > { %8827 = vmatmul.mubr.msk.f32.vlgmr.msra.gmra.mrb[16].mxu1 %vm626_vm0, %v6061_v28  ;;  %8911 = vmatprep.subr.bf16.mxu0 %v8910_v2  ;;  %v10043_v28 = vpop.permute.xlu0 %2859  ;;  %v3130_v36 = vadd.f32 %v3114_v31, %v3096_v58 }
 0x213   : > { %8913 = vmatpush3.bf16.msra.mxu0 %v8910_v2  ;;  %v2937_v2 = vmul.f32 0.0625, %v2921_v21  ;;  %v3210_v21 = vmul.f32 0.5625, %v10032_v4 }
 0x2c5   : > { %v8501_v48 = vpop.f32.mrb[10].mxu1 }
 0x2c6   : > { %v8994_v54 = vadd.f32 %v8501_v48, %v9926_v0  ;;  %v2696_v55 = vpop.f32.mrb[11].mxu1  ;;  %v2985_v0 = vmul.f32 0.1875, %v2969_v23  ;;  %v10053_v48 = vpop.permute.xlu0 %2869  ;;  %v3455_v23 = vld [vmem:[#allocation2 + $0x92] sm:$0xff] }
 0x2c7   : > { %v8995_v20 = vadd.f32 %v2696_v55, %v9928_v1 }
 0x2c8   : > { %v2888_v27 = vmul.f32 %v8994_v54, %v2815_v12  ;;  %v3001_v44 = vadd.f32 %v2985_v0, %v2937_v2  ;;  %v10059_v54 = vrot.slane %v9267_v38, %v9576_v60  ;;  %v3081_v2 = vmul.f32 0.0625, %v3065_v61 }
 0x2c9   : > { %v2887_v25 = vmul.f32 %v8995_v20, %v2810_v11  ;;  %v8504_v30 = vpop.f32.mrb[12].mxu1 }
 0x2ca   : > { %2904 = vst.msk [vmem:[#allocation2 + $0x20] sm:$0xff] %vm626_vm0, %v2888_v27  ;;  %v8996_v32 = vadd.f32 %v8504_v30, %v9932_v7  ;;  %v2706_v6 = vpop.f32.mrb[13].mxu1  ;;  %11551 = vst [vmem:[#allocation20_spill] sm:$0xff] %v10059_v54  ;;  %v3480_v27 = vld [vmem:[#allocation2 + $0x93] sm:$0xff] }
 0x2cb   : > { %2903 = vst.msk [vmem:[#allocation2 + $0x18] sm:$0xff] %vm626_vm0, %v2887_v25  ;;  %v8997_v1 = vadd.f32 %v2706_v6, %v9937_v9  ;;  %v3504_v25 = vld [vmem:[#allocation2 + $0x94] sm:$0xff]  ;;  %v3049_v6 = vadd.f32 %v3033_v46, %v3001_v44 }
 0x2cc   : > { %v2890_v12 = vmul.f32 %v8996_v32, %v9814_v39  ;;  %v2922_v39 = vld [vmem:[#allocation2 + $0x10] sm:$0xff]  ;;  %v10077_v61 = vmul.f32 0.0625, %v3504_v25 }
 0x2cd   : > { %v2889_v11 = vmul.f32 %v8997_v1, %v9809_v34  ;;  %v8507_v63 = vpop.f32.mrb[14].mxu1  ;;  %v10064_v32 = vmul.f32 0.0625, %v2922_v39 }
 0x2ce   : > { %2906 = vst.msk [vmem:[#allocation2 + $0x30] sm:$0xff] %vm626_vm0, %v2890_v12  ;;  %v8998_v7 = vadd.f32 %v8507_v63, %v9941_v13  ;;  %v2716_v40 = vpop.f32.mrb[15].mxu1  ;;  %v3178_v13 = vadd.f32 %v3162_v37, %v3130_v36  ;;  %v10073_v63 = vmul.f32 0.1875, %v3455_v23  ;;  %v10075_v36 = vmul.f32 0.1875, %v3480_v27  ;;  %11556 = vst [vmem:[#allocation25_spill] sm:$0xff] %v10077_v61  ;;  %v10079_v37 = vpop.permute.xlu0 %3653 }
 0x2cf   : > { %2905 = vst.msk [vmem:[#allocation2 + $0x28] sm:$0xff] %vm626_vm0, %v2889_v11  ;;  %v8999_v9 = vadd.f32 %v2716_v40, %v9943_v14  ;;  %11557 = vst [vmem:[#allocation26_spill] sm:$0xff] %v10079_v37 }
 0x2d0   : > { %v2892_v34 = vmul.f32 %v8998_v7, %v9819_v43  ;;  %11554 = vst [vmem:[#allocation23_spill] sm:$0xff] %v10073_v63  ;;  %11555 = vst [vmem:[#allocation24_spill] sm:$0xff] %v10075_v36 }
 0x2d1   : > { %v2891_v55 = vmul.f32 %v8999_v9, %v2830_v15  ;;  %v8510_v20 = vpop.f32.mrb[0].mxu1  ;;  %v2924_v31 = vld [vmem:[#allocation2 + $0x20] sm:$0xff]  ;;  %v3226_v9 = vadd.f32 %v3210_v21, %v3178_v13 }
 0x2d2   : > { %v2923_v30 = vld [vmem:[#allocation2 + $0x18] sm:$0xff]  ;;  %2908 = vst.msk [vmem:[#allocation2 + $0x40] sm:$0xff] %vm626_vm0, %v2892_v34  ;;  %v2894_v14 = vmul.f32 %v8510_v20, %v9835_v51  ;;  %v2726_v43 = vpop.f32.mrb[1].mxu1  ;;  %v10071_v51 = vmul.f32 0.0625, %v3418_v53  ;;  %v2940_v44 = vmul.f32 0.0625, %v2924_v31  ;;  %v10083_v39 = vmul.f32 0.5625, %v2924_v31 }
 0x2d3   : > { %v2971_v58 = vld [vmem:[#allocation2 + $0x19] sm:$0xff]  ;;  %v2939_v15 = vmul.f32 0.0625, %v2923_v30  ;;  %2907 = vst.msk [vmem:[#allocation2 + $0x38] sm:$0xff] %vm626_vm0, %v2891_v55  ;;  %v2893_v1 = vmul.f32 %v10036_v29, %v2726_v43  ;;  %v2970_v46 = vld [vmem:[#allocation2 + $0x11] sm:$0xff] }
 0x2d4   : > { %v10066_v0 = vmul.f32 0.1875, %v2971_v58  ;;  %v3019_v16 = vld [vmem:[#allocation2 + $0x1a] sm:$0xff]  ;;  %2910 = vst.msk [vmem:[#allocation2 + $0x50] sm:$0xff] %vm626_vm0, %v2894_v14  ;;  %11553 = vst [vmem:[#allocation22_spill] sm:$0xff] %v10071_v51  ;;  %v2986_v27 = vmul.f32 0.1875, %v2970_v46 }
 0x2d5   : > { %v3067_v4 = vld [vmem:[#allocation2 + $0x1b] sm:$0xff]  ;;  %2909 = vst.msk [vmem:[#allocation2 + $0x48] sm:$0xff] %vm626_vm0, %v2893_v1  ;;  %v8513_v29 = vpop.f32.mrb[2].mxu1  ;;  %11558 = vst [vmem:[#allocation27_spill] sm:$0xff] %v10083_v39  ;;  %v3035_v34 = vmul.f32 0.1875, %v3019_v16  ;;  %v10086_v20 = vld [vmem:[#allocation2 + $0x30] sm:$0xff] }
 0x2d6   : > { %11552 = vst [vmem:[#allocation21_spill] sm:$0xff] %v10066_v0  ;;  %v3148_v12 = vld [vmem:[#allocation2 + $0x1c] sm:$0xff]  ;;  %v3003_v38 = vadd.f32 %v10066_v0, %v2939_v15  ;;  %v3083_v49 = vmul.f32 0.0625, %v3067_v4  ;;  %v2896_v53 = vmul.f32 %v8513_v29, %v9850_v59  ;;  %v2736_v55 = vpop.f32.mrb[3].mxu1  ;;  %v10090_v25 = vmul.f32 0.1875, %v3067_v4  ;;  %v10097_v21 = vld [vmem:[#allocation2 + $0x28] sm:$0xff] }
 0x2d7   : > { %v3196_v11 = vld [vmem:[#allocation2 + $0x1d] sm:$0xff]  ;;  %v10092_v58 = vmul.f32 0.5625, %v3148_v12  ;;  %v2895_v13 = vmul.f32 %v10039_v47, %v2736_v55  ;;  %v10099_v43 = vld [vmem:[#allocation2 + $0x29] sm:$0xff]  ;;  %v10105_v16 = vmul.f32 0.5625, %v2923_v30  ;;  %v3018_v4 = vld [vmem:[#allocation2 + $0x12] sm:$0xff]  ;;  %v10117_v30 = vadd.f32 %v3081_v2, %v3049_v6  ;;  %v10133_v6 = vpop.permute.xlu0 %3658 }
 0x2d8   : > { %v3244_v7 = vld [vmem:[#allocation2 + $0x1e] sm:$0xff]  ;;  %v10094_v14 = vmul.f32 0.5625, %v3196_v11  ;;  %11560 = vst [vmem:[#allocation29_spill] sm:$0xff] %v10099_v43  ;;  %v3051_v31 = vadd.f32 %v3035_v34, %v3003_v38  ;;  %2912 = vst.msk [vmem:[#allocation2 + $0x60] sm:$0xff] %vm626_vm0, %v2896_v53  ;;  %v2942_v11 = vmul.f32 0.0625, %v10086_v20  ;;  %v10119_v29 = vadd.f32 %v3258_v26, %v3226_v9  ;;  %v10209_v63 = vld [vmem:[#allocation2 + $0x2b] sm:$0xff] }
 0x2d9   : > { %v3311_v40 = vld [vmem:[#allocation2 + $0x1f] sm:$0xff]  ;;  %v10101_v59 = vmul.f32 0.1875, %v3244_v7  ;;  %11561 = vst [vmem:[#allocation30_spill] sm:$0xff] %v10105_v16  ;;  %2911 = vst.msk [vmem:[#allocation2 + $0x58] sm:$0xff] %vm626_vm0, %v2895_v13  ;;  %v8516_v12 = vpop.f32.mrb[4].mxu1  ;;  %v3021_v7 = vld [vmem:[#allocation2 + $0x2a] sm:$0xff]  ;;  %v3002_v18 = vadd.f32 %v2986_v27, %v10064_v32 }
 0x2da   : > { %v10088_v23 = vld [vmem:[#allocation2 + $0x21] sm:$0xff]  ;;  %v10103_v15 = vmul.f32 0.5625, %v3311_v40  ;;  %v10115_v40 = vld [vmem:[#allocation2 + $0x13] sm:$0xff]  ;;  %v2898_v46 = vmul.f32 %v8516_v12, %v9864_v5  ;;  %v2746_v34 = vpop.f32.mrb[5].mxu1  ;;  %v2941_v55 = vmul.f32 0.0625, %v10097_v21  ;;  %v10130_v24 = vmul.f32 0.1875, %v10099_v43 }
 0x2db   : > { %11559 = vst [vmem:[#allocation28_spill] sm:$0xff] %v10088_v23  ;;  %v3020_v1 = vld [vmem:[#allocation2 + $0x22] sm:$0xff]  ;;  %v10113_v38 = vmul.f32 0.1875, %v10088_v23  ;;  %v10122_v53 = vld [vmem:[#allocation2 + $0x38] sm:$0xff]  ;;  %11566 = vst [vmem:[#allocation35_spill] sm:$0xff] %v10133_v6  ;;  %v2897_v2 = vmul.f32 %v10043_v28, %v2746_v34  ;;  %v3034_v9 = vmul.f32 0.1875, %v3018_v4  ;;  %v10143_v17 = vadd.f32 %v3083_v49, %v3051_v31 }
 0x2dc   : > { %v10109_v47 = vld [vmem:[#allocation2 + $0x40] sm:$0xff]  ;;  %v10125_v13 = vld [vmem:[#allocation2 + $0x31] sm:$0xff]  ;;  %11565 = vst [vmem:[#allocation34_spill] sm:$0xff] %v10130_v24  ;;  %v10141_v12 = vmul.f32 0.1875, %v3020_v1  ;;  %2914 = vst.msk [vmem:[#allocation2 + $0x70] sm:$0xff] %vm626_vm0, %v2898_v46  ;;  %v2943_v32 = vmul.f32 0.0625, %v10122_v53  ;;  %v3005_v8 = vadd.f32 %v10130_v24, %v2941_v55 }
 0x2dd   : > { %11562 = vst [vmem:[#allocation31_spill] sm:$0xff] %v10113_v38  ;;  %11563 = vst [vmem:[#allocation32_spill] sm:$0xff] %v10125_v13  ;;  %v10127_v60 = vld [vmem:[#allocation2 + $0x39] sm:$0xff]  ;;  %v10136_v26 = vld [vmem:[#allocation2 + $0x50] sm:$0xff]  ;;  %v10139_v5 = vmul.f32 0.1875, %v10125_v13  ;;  %v10156_v34 = vmul.f32 0.1875, %v3021_v7  ;;  %v3004_v1 = vadd.f32 %v10113_v38, %v2940_v44  ;;  %v10178_v35 = vadd.f32 %v3034_v9, %v3002_v18 }
 0x2de   : > { %11564 = vst [vmem:[#allocation33_spill] sm:$0xff] %v10127_v60  ;;  %11568 = vst [vmem:[#allocation37_spill] sm:$0xff] %v10141_v12  ;;  %v10146_v56 = vld [vmem:[#allocation2 + $0x48] sm:$0xff]  ;;  %v10154_v28 = vmul.f32 0.1875, %v10127_v60  ;;  %v8519_v4 = vpop.f32.mrb[6].mxu1  ;;  %v2944_v49 = vmul.f32 0.0625, %v10109_v47 }
 0x2df   : > { %11567 = vst [vmem:[#allocation36_spill] sm:$0xff] %v10139_v5  ;;  %v10149_v27 = vld [vmem:[#allocation2 + $0x41] sm:$0xff]  ;;  %v10151_v52 = vld [vmem:[#allocation2 + $0x49] sm:$0xff]  ;;  %11572 = vst [vmem:[#allocation41_spill] sm:$0xff] %v10156_v34  ;;  %v10165_v33 = vmul.f32 0.0625, %v10115_v40  ;;  %v2900_v3 = vmul.f32 %v8519_v4, %v9872_v10  ;;  %v2756_v22 = vpop.f32.mrb[7].mxu1  ;;  %v3006_v50 = vadd.f32 %v10139_v5, %v2942_v11  ;;  %v2885_v11 = vpop.permute.xlu0 %2884 }
 0x2e0   : > { %11569 = vst [vmem:[#allocation38_spill] sm:$0xff] %v10149_v27  ;;  %11570 = vst [vmem:[#allocation39_spill] sm:$0xff] %v10151_v52  ;;  %v10161_v31 = vmul.f32 0.1875, %v10149_v27  ;;  %v3022_v46 = vld [vmem:[#allocation2 + $0x32] sm:$0xff]  ;;  %v3023_v42 = vld [vmem:[#allocation2 + $0x3a] sm:$0xff]  ;;  %v2945_v7 = vmul.f32 0.0625, %v10146_v56  ;;  %v2899_v62 = vmul.f32 %v10053_v48, %v2756_v22  ;;  %v3007_v22 = vadd.f32 %v10154_v28, %v2943_v32 }
 0x2e1   : > { %11571 = vst [vmem:[#allocation40_spill] sm:$0xff] %v10154_v28  ;;  %2913 = vst.msk [vmem:[#allocation2 + $0x68] sm:$0xff] %vm626_vm0, %v2897_v2  ;;  %v10170_v2 = vmul.f32 0.1875, %v10151_v52  ;;  %v10174_v57 = vld [vmem:[#allocation2 + $0x60] sm:$0xff]  ;;  %v2946_v44 = vmul.f32 0.0625, %v10136_v26  ;;  %v3025_v41 = vld [vmem:[#allocation2 + $0x4a] sm:$0xff]  ;;  %v3052_v32 = vadd.f32 %v10141_v12, %v3004_v1 }
 0x2e2   : > { %11573 = vst [vmem:[#allocation42_spill] sm:$0xff] %v10161_v31  ;;  %v3024_v45 = vld [vmem:[#allocation2 + $0x42] sm:$0xff]  ;;  %2916 = vst.msk [vmem:[#allocation2 + $0x80] sm:$0xff] %vm626_vm0, %v2900_v3  ;;  %v10181_v10 = vld [vmem:[#allocation2 + $0x58] sm:$0xff]  ;;  %v3008_v48 = vadd.f32 %v10161_v31, %v2944_v49  ;;  %v10189_v55 = vmul.f32 0.1875, %v3022_v46  ;;  %v10191_v37 = vmul.f32 0.1875, %v3023_v42 }
 0x2e3   : > { %11574 = vst [vmem:[#allocation43_spill] sm:$0xff] %v10170_v2  ;;  %v10183_v4 = vld [vmem:[#allocation2 + $0x51] sm:$0xff]  ;;  %v10185_v6 = vld [vmem:[#allocation2 + $0x59] sm:$0xff]  ;;  %2915 = vst.msk [vmem:[#allocation2 + $0x78] sm:$0xff] %vm626_vm0, %v2899_v62  ;;  %v8522_v18 = vpop.f32.mrb[8].mxu1  ;;  %v2947_v3 = vmul.f32 0.0625, %v10181_v10  ;;  %v3009_v42 = vadd.f32 %v10170_v2, %v2945_v7 }
 0x2e4   : > { %11575 = vst [vmem:[#allocation44_spill] sm:$0xff] %v10183_v4  ;;  %11576 = vst [vmem:[#allocation45_spill] sm:$0xff] %v10185_v6  ;;  %v10196_v9 = vmul.f32 0.1875, %v10183_v4  ;;  %v10199_v54 = vmul.f32 0.1875, %v10185_v6  ;;  %v10202_v61 = vld [vmem:[#allocation2 + $0x23] sm:$0xff]  ;;  %v2902_v49 = vmul.f32 %v8522_v18, %v2885_v11  ;;  %v2766_v46 = vpop.f32.mrb[9].mxu1  ;;  %v3053_v11 = vadd.f32 %v10156_v34, %v3005_v8 }
 0x2e5   : > { %11577 = vst [vmem:[#allocation46_spill] sm:$0xff] %v10189_v55  ;;  %11578 = vst [vmem:[#allocation47_spill] sm:$0xff] %v10191_v37  ;;  %v10205_v36 = vmul.f32 0.1875, %v3024_v45  ;;  %v10207_v62 = vmul.f32 0.1875, %v3025_v41  ;;  %v10211_v51 = vld [vmem:[#allocation2 + $0x33] sm:$0xff]  ;;  %v2901_v4 = vmul.f32 %v9883_v19, %v2766_v46  ;;  %v2948_v1 = vmul.f32 0.0625, %v10174_v57 }
 0x2e6   : > { %11579 = vst [vmem:[#allocation48_spill] sm:$0xff] %v10196_v9  ;;  %11580 = vst [vmem:[#allocation49_spill] sm:$0xff] %v10199_v54  ;;  %v10214_v6 = vld [vmem:[#allocation2 + $0x70] sm:$0xff]  ;;  %v3027_v52 = vld [vmem:[#allocation2 + $0x5a] sm:$0xff]  ;;  %v3054_v7 = vadd.f32 %v10189_v55, %v3006_v50  ;;  %v3010_v19 = vadd.f32 %v10196_v9, %v2946_v44  ;;  %v3055_v46 = vadd.f32 %v10191_v37, %v3007_v22  ;;  %v3084_v60 = vmul.f32 0.0625, %v10202_v61  ;;  %v10233_v50 = vpop.f32.mrb[16].mxu1 }
 0x2e7   : > { %11581 = vst [vmem:[#allocation50_spill] sm:$0xff] %v10205_v36  ;;  %11582 = vst [vmem:[#allocation51_spill] sm:$0xff] %v10207_v62  ;;  %v3026_v12 = vld [vmem:[#allocation2 + $0x52] sm:$0xff]  ;;  %v10229_v27 = vadd.f32 %v10205_v36, %v3008_v48  ;;  %v3011_v44 = vadd.f32 %v10199_v54, %v2947_v3  ;;  %v10243_v37 = vld [vmem:[#allocation2 + $0x3b] sm:$0xff]  ;;  %v8828_v48 = vpop.f32.mrb[17].mxu1  ;;  %v3085_v13 = vmul.f32 0.0625, %v10209_v63 }
 0x2e8   : > { %11583 = vst [vmem:[#allocation52_spill] sm:$0xff] %v10214_v6  ;;  %2919 = vst.msk [vmem:[#allocation2 + $0x90] sm:$0x1] %vm11528_vm4, %v2902_v49  ;;  %v10220_v41 = vld [vmem:[#allocation2 + $0x68] sm:$0xff]  ;;  %v10245_v34 = vmul.f32 0.1875, %v3026_v12  ;;  %v2950_v43 = vmul.f32 0.0625, %v10214_v6 }
 0x2e9   : > { %v10222_v45 = vld [vmem:[#allocation2 + $0x61] sm:$0xff]  ;;  %v10224_v18 = vld [vmem:[#allocation2 + $0x69] sm:$0xff]  ;;  %2917 = vst.msk [vmem:[#allocation2 + $0x88] sm:$0xff] %vm626_vm0, %v2901_v4  ;;  %11586 = vst [vmem:[#allocation55_spill] sm:$0xff] %v10233_v50  ;;  %v2949_v8 = vmul.f32 0.0625, %v10220_v41  ;;  %v10247_v4 = vmul.f32 0.1875, %v3027_v52  ;;  %v3057_v50 = vadd.f32 %v10207_v62, %v3009_v42  ;;  %v3098_v62 = vadd.f32 %v10165_v33, %v10178_v35 }
 0x2ea   : > { %11584 = vst [vmem:[#allocation53_spill] sm:$0xff] %v10222_v45  ;;  %11585 = vst [vmem:[#allocation54_spill] sm:$0xff] %v10224_v18  ;;  %v10237_v49 = vmul.f32 0.1875, %v10222_v45  ;;  %v10240_v55 = vmul.f32 0.1875, %v10224_v18  ;;  %v3028_v22 = vld [vmem:[#allocation2 + $0x62] sm:$0xff]  ;;  %v3029_v36 = vld [vmem:[#allocation2 + $0x6a] sm:$0xff]  ;;  %v3058_v12 = vadd.f32 %v10245_v34, %v3010_v19 }
 0x2eb   : > { %11589 = vst [vmem:[#allocation58_spill] sm:$0xff] %v10245_v34  ;;  %11590 = vst [vmem:[#allocation59_spill] sm:$0xff] %v10247_v4  ;;  %v3113_v45 = vld [vmem:[#allocation2 + $0x83] sm:$0x1]  ;;  %v3086_v23 = vmul.f32 0.0625, %v10211_v51  ;;  %v10255_v48 = vmul.f32 0.1875, %v3028_v22  ;;  %v3100_v22 = vadd.f32 %v3084_v60, %v3052_v32 }
 0x2ec   : > { %11587 = vst [vmem:[#allocation56_spill] sm:$0xff] %v10237_v49  ;;  %11588 = vst [vmem:[#allocation57_spill] sm:$0xff] %v10240_v55  ;;  %v3012_v18 = vadd.f32 %v10237_v49, %v2948_v1  ;;  %v3013_v3 = vadd.f32 %v10240_v55, %v2949_v8  ;;  %v2935_v54 = vld [vmem:[#allocation2 + $0x78] sm:$0x1]  ;;  %v3072_v52 = vld [vmem:[#allocation2 + $0x43] sm:$0xff]  ;;  %v3087_v42 = vmul.f32 0.0625, %v10243_v37  ;;  %v3059_v55 = vadd.f32 %v10247_v4, %v3011_v44 }
 0x2ed   : > { %11591 = vst [vmem:[#allocation60_spill] sm:$0xff] %v10255_v48  ;;  %v3073_v9 = vld [vmem:[#allocation2 + $0x4b] sm:$0xff]  ;;  %v3074_v2 = vld [vmem:[#allocation2 + $0x53] sm:$0xff]  ;;  %v10263_v8 = vmul.f32 0.1875, %v3029_v36  ;;  %v3101_v49 = vadd.f32 %v3085_v13, %v3053_v11  ;;  %v10266_v5 = vmul.f32 0.1875, %v3113_v45  ;;  %v2951_v19 = vmul.f32 0.0625, %v2935_v54 }
 0x2ee   : > { %v2983_v31 = vld [vmem:[#allocation2 + $0x79] sm:$0x1]  ;;  %v3031_v28 = vld [vmem:[#allocation2 + $0x7a] sm:$0x1]  ;;  %v10261_v1 = vld [vmem:[#allocation2 + $0x71] sm:$0xff]  ;;  %v3102_v0 = vadd.f32 %v3086_v23, %v3054_v7  ;;  %v3060_v33 = vadd.f32 %v10255_v48, %v3012_v18  ;;  %v3103_v44 = vadd.f32 %v3087_v42, %v3055_v46  ;;  %v10279_v11 = vadd.f32 %v10090_v25, %v3098_v62 }
 0x2ef   : > { %11592 = vst [vmem:[#allocation61_spill] sm:$0xff] %v10263_v8  ;;  %11593 = vst [vmem:[#allocation62_spill] sm:$0xff] %v10266_v5  ;;  %v3079_v34 = vld [vmem:[#allocation2 + $0x7b] sm:$0x1]  ;;  %v10269_v24 = vmul.f32 0.1875, %v10261_v1  ;;  %v3030_v38 = vld [vmem:[#allocation2 + $0x72] sm:$0xff]  ;;  %v3061_v39 = vadd.f32 %v10263_v8, %v3013_v3 }
 0x2f0   : > { %v2999_v35 = vmul.f32 0.1875, %v2983_v31  ;;  %v3075_v36 = vld [vmem:[#allocation2 + $0x5b] sm:$0xff]  ;;  %v3076_v16 = vld [vmem:[#allocation2 + $0x63] sm:$0xff]  ;;  %v3077_v6 = vld [vmem:[#allocation2 + $0x6b] sm:$0xff]  ;;  %v10273_v60 = vmul.f32 0.1875, %v3031_v28  ;;  %v10276_v54 = vmul.f32 0.1875, %v3030_v38 }
 0x2f1   : > { %v3014_v13 = vadd.f32 %v10269_v24, %v2950_v43  ;;  %v3078_v32 = vld [vmem:[#allocation2 + $0x73] sm:$0xff]  ;;  %v10281_v23 = vmul.f32 0.0625, %v3079_v34  ;;  %v3088_v31 = vmul.f32 0.0625, %v3072_v52  ;;  %v3089_v7 = vmul.f32 0.0625, %v3073_v9 }
 0x2f2   : > { %11594 = vst [vmem:[#allocation63_spill] sm:$0xff] %v10273_v60  ;;  %v3090_v45 = vmul.f32 0.0625, %v3074_v2  ;;  %v3091_v3 = vmul.f32 0.0625, %v3075_v36  ;;  %v3092_v5 = vmul.f32 0.0625, %v3076_v16  ;;  %v3093_v46 = vmul.f32 0.0625, %v3077_v6 }
 0x2f3   : > { %11595 = vst [vmem:[#allocation64_spill] sm:$0xff] %v10281_v23  ;;  %v3062_v18 = vadd.f32 %v10276_v54, %v3014_v13  ;;  %v10284_v28 = vadd.f32 %v2999_v35, %v2951_v19  ;;  %v3094_v42 = vmul.f32 0.0625, %v3078_v32  ;;  %v3104_v43 = vadd.f32 %v3088_v31, %v10229_v27  ;;  %v3112_v23 = vld [vmem:[#allocation2 + $0x7b] sm:$0xff] }
 0x2f4   : > { %v3105_v38 = vadd.f32 %v3089_v7, %v3057_v50  ;;  %v3106_v60 = vadd.f32 %v3090_v45, %v3058_v12  ;;  %v3107_v8 = vadd.f32 %v3091_v3, %v3059_v55  ;;  %v3108_v25 = vadd.f32 %v3092_v5, %v3060_v33  ;;  %v10323_v35 = vld [vmem:[#allocation2 + $0x34] sm:$0xff]  ;;  %v10348_v3 = vld [vmem:[#allocation2 + $0x6c] sm:$0xff] }
 0x2f5   : > { %11596 = vst [vmem:[#allocation65_spill] sm:$0xff] %v10284_v28  ;;  %v3109_v62 = vadd.f32 %v3093_v46, %v3061_v39  ;;  %v3110_v34 = vadd.f32 %v3094_v42, %v3062_v18  ;;  %v3115_v48 = vmul.f32 0.1875, %v10115_v40  ;;  %v10289_v4 = vmul.f32 0.1875, %v10202_v61  ;;  %11611 = vst [vmem:[#allocation80_spill] sm:$0xff] %v10323_v35  ;;  %v10339_v7 = vld [vmem:[#allocation2 + $0x54] sm:$0xff]  ;;  %v10352_v42 = vld [vmem:[#allocation2 + $0x7c] sm:$0xff] }
 0x2f6   : > { %v10292_v13 = vmul.f32 0.1875, %v10209_v63  ;;  %v10295_v19 = vmul.f32 0.1875, %v10211_v51  ;;  %v10298_v27 = vmul.f32 0.1875, %v10243_v37  ;;  %v10300_v50 = vmul.f32 0.1875, %v3072_v52  ;;  %v3147_v63 = vld [vmem:[#allocation2 + $0x14] sm:$0xff]  ;;  %11615 = vst [vmem:[#allocation84_spill] sm:$0xff] %v10339_v7 }
 0x2f7   : > { %11597 = vst [vmem:[#allocation66_spill] sm:$0xff] %v10289_v4  ;;  %v10302_v5 = vmul.f32 0.1875, %v3073_v9  ;;  %v10304_v39 = vmul.f32 0.1875, %v3074_v2  ;;  %v10306_v55 = vmul.f32 0.1875, %v3075_v36  ;;  %v10308_v40 = vmul.f32 0.1875, %v3076_v16  ;;  %v10319_v9 = vld [vmem:[#allocation2 + $0x24] sm:$0xff] }
 0x2f8   : > { %11598 = vst [vmem:[#allocation67_spill] sm:$0xff] %v10292_v13  ;;  %11599 = vst [vmem:[#allocation68_spill] sm:$0xff] %v10295_v19  ;;  %v10310_v61 = vmul.f32 0.1875, %v3077_v6  ;;  %v10312_v12 = vmul.f32 0.1875, %v3078_v32  ;;  %v10314_v51 = vmul.f32 0.1875, %v3112_v23  ;;  %v3131_v37 = vadd.f32 %v3115_v48, %v10117_v30  ;;  %v10321_v2 = vld [vmem:[#allocation2 + $0x2c] sm:$0xff] }
 0x2f9   : > { %11600 = vst [vmem:[#allocation69_spill] sm:$0xff] %v10298_v27  ;;  %11601 = vst [vmem:[#allocation70_spill] sm:$0xff] %v10300_v50  ;;  %v3133_v52 = vadd.f32 %v10289_v4, %v10143_v17  ;;  %v3134_v16 = vadd.f32 %v10292_v13, %v3100_v22  ;;  %v3135_v6 = vadd.f32 %v10295_v19, %v3101_v49  ;;  %v10329_v32 = vld [vmem:[#allocation2 + $0x3c] sm:$0xff]  ;;  %v10331_v30 = vld [vmem:[#allocation2 + $0x44] sm:$0xff] }
 0x2fa   : > { %11602 = vst [vmem:[#allocation71_spill] sm:$0xff] %v10302_v5  ;;  %11603 = vst [vmem:[#allocation72_spill] sm:$0xff] %v10304_v39  ;;  %v3136_v33 = vadd.f32 %v10298_v27, %v3102_v0  ;;  %v3137_v36 = vadd.f32 %v10300_v50, %v3103_v44  ;;  %v10333_v48 = vld [vmem:[#allocation2 + $0x4c] sm:$0xff]  ;;  %v3138_v17 = vadd.f32 %v10302_v5, %v3104_v43  ;;  %v10341_v49 = vld [vmem:[#allocation2 + $0x5c] sm:$0xff]  ;;  %v3166_v43 = vmul.f32 0.5625, %v10321_v2 }
 0x2fb   : > { %11604 = vst [vmem:[#allocation73_spill] sm:$0xff] %v10306_v55  ;;  %11605 = vst [vmem:[#allocation74_spill] sm:$0xff] %v10308_v40  ;;  %v3139_v23 = vadd.f32 %v10304_v39, %v3105_v38  ;;  %v3140_v31 = vadd.f32 %v10306_v55, %v3106_v60  ;;  %v3141_v22 = vadd.f32 %v10308_v40, %v3107_v8  ;;  %v10343_v0 = vld [vmem:[#allocation2 + $0x64] sm:$0xff]  ;;  %v10350_v46 = vld [vmem:[#allocation2 + $0x74] sm:$0xff]  ;;  %v3163_v60 = vmul.f32 0.5625, %v3147_v63 }
 0x2fc   : > { %11606 = vst [vmem:[#allocation75_spill] sm:$0xff] %v10310_v61  ;;  %11607 = vst [vmem:[#allocation76_spill] sm:$0xff] %v10312_v12  ;;  %v3142_v44 = vadd.f32 %v10310_v61, %v3108_v25  ;;  %v3143_v45 = vadd.f32 %v10312_v12, %v3109_v62  ;;  %v3144_v18 = vadd.f32 %v10314_v51, %v3110_v34  ;;  %v3165_v8 = vmul.f32 0.5625, %v10319_v9  ;;  %v3195_v61 = vld [vmem:[#allocation2 + $0x15] sm:$0xff]  ;;  %v3198_v55 = vld [vmem:[#allocation2 + $0x2d] sm:$0xff] }
 0x2fd   : > { %11608 = vst [vmem:[#allocation77_spill] sm:$0xff] %v10314_v51  ;;  %11609 = vst [vmem:[#allocation78_spill] sm:$0xff] %v10319_v9  ;;  %v3167_v38 = vmul.f32 0.5625, %v10323_v35  ;;  %v3168_v28 = vmul.f32 0.5625, %v10329_v32  ;;  %v3169_v25 = vmul.f32 0.5625, %v10331_v30  ;;  %v3170_v62 = vmul.f32 0.5625, %v10333_v48 }
 0x2fe   : > { %11610 = vst [vmem:[#allocation79_spill] sm:$0xff] %v10321_v2  ;;  %11612 = vst [vmem:[#allocation81_spill] sm:$0xff] %v10329_v32  ;;  %v3171_v34 = vmul.f32 0.5625, %v10339_v7  ;;  %v3172_v51 = vmul.f32 0.5625, %v10341_v49  ;;  %v3173_v12 = vmul.f32 0.5625, %v10343_v0  ;;  %v3174_v63 = vmul.f32 0.5625, %v10348_v3 }
 0x2ff   : > { %11613 = vst [vmem:[#allocation82_spill] sm:$0xff] %v10331_v30  ;;  %11614 = vst [vmem:[#allocation83_spill] sm:$0xff] %v10333_v48  ;;  %v3175_v9 = vmul.f32 0.5625, %v10350_v46  ;;  %v3176_v2 = vmul.f32 0.5625, %v10352_v42  ;;  %v3179_v35 = vadd.f32 %v3163_v60, %v3131_v37  ;;  %v3180_v32 = vadd.f32 %v10092_v58, %v10279_v11  ;;  %v3197_v48 = vld [vmem:[#allocation2 + $0x25] sm:$0xff]  ;;  %v3199_v7 = vld [vmem:[#allocation2 + $0x35] sm:$0xff] }
 0x300   : > { %11616 = vst [vmem:[#allocation85_spill] sm:$0xff] %v10341_v49  ;;  %11617 = vst [vmem:[#allocation86_spill] sm:$0xff] %v10343_v0  ;;  %v3181_v30 = vadd.f32 %v3165_v8, %v3133_v52  ;;  %v3182_v40 = vadd.f32 %v3166_v43, %v3134_v16  ;;  %v3183_v39 = vadd.f32 %v3167_v38, %v3135_v6  ;;  %v3200_v50 = vld [vmem:[#allocation2 + $0x3d] sm:$0xff]  ;;  %v3202_v27 = vld [vmem:[#allocation2 + $0x4d] sm:$0xff]  ;;  %v3211_v43 = vmul.f32 0.5625, %v3195_v61 }
 0x301   : > { %11618 = vst [vmem:[#allocation87_spill] sm:$0xff] %v10348_v3  ;;  %11619 = vst [vmem:[#allocation88_spill] sm:$0xff] %v10350_v46  ;;  %v3184_v49 = vadd.f32 %v3168_v28, %v3136_v33  ;;  %v3185_v5 = vadd.f32 %v3169_v25, %v3137_v36  ;;  %v3186_v0 = vadd.f32 %v3170_v62, %v3138_v17  ;;  %v3201_v3 = vld [vmem:[#allocation2 + $0x45] sm:$0xff]  ;;  %v3203_v37 = vld [vmem:[#allocation2 + $0x55] sm:$0xff]  ;;  %v3213_v6 = vmul.f32 0.5625, %v3197_v48 }
 0x302   : > { %11620 = vst [vmem:[#allocation89_spill] sm:$0xff] %v10352_v42  ;;  %v3187_v46 = vadd.f32 %v3171_v34, %v3139_v23  ;;  %v3188_v19 = vadd.f32 %v3172_v51, %v3140_v31  ;;  %v3189_v42 = vadd.f32 %v3173_v12, %v3141_v22  ;;  %v3190_v13 = vadd.f32 %v3174_v63, %v3142_v44  ;;  %v3204_v60 = vld [vmem:[#allocation2 + $0x5d] sm:$0xff]  ;;  %v3205_v4 = vld [vmem:[#allocation2 + $0x65] sm:$0xff]  ;;  %v3206_v52 = vld [vmem:[#allocation2 + $0x6d] sm:$0xff] }
 0x303   : > { %v3191_v58 = vadd.f32 %v3175_v9, %v3143_v45  ;;  %v3192_v11 = vadd.f32 %v3176_v2, %v3144_v18  ;;  %v3207_v16 = vld [vmem:[#allocation2 + $0x75] sm:$0xff]  ;;  %v3208_v8 = vld [vmem:[#allocation2 + $0x7d] sm:$0xff]  ;;  %v3214_v28 = vmul.f32 0.5625, %v3198_v55  ;;  %v3215_v33 = vmul.f32 0.5625, %v3199_v7  ;;  %v3245_v9 = vld [vmem:[#allocation2 + $0x26] sm:$0xff] }
 0x304   : > { %v3216_v36 = vmul.f32 0.5625, %v3200_v50  ;;  %v3217_v17 = vmul.f32 0.5625, %v3201_v3  ;;  %v3218_v38 = vmul.f32 0.5625, %v3202_v27  ;;  %v3219_v25 = vmul.f32 0.5625, %v3203_v37  ;;  %v3243_v62 = vld [vmem:[#allocation2 + $0x16] sm:$0xff]  ;;  %v3246_v48 = vld [vmem:[#allocation2 + $0x2e] sm:$0xff] }
 0x305   : > { %v3220_v23 = vmul.f32 0.5625, %v3204_v60  ;;  %v3221_v51 = vmul.f32 0.5625, %v3205_v4  ;;  %v3222_v12 = vmul.f32 0.5625, %v3206_v52  ;;  %v3223_v31 = vmul.f32 0.5625, %v3207_v16  ;;  %v3247_v55 = vld [vmem:[#allocation2 + $0x36] sm:$0xff]  ;;  %v3248_v7 = vld [vmem:[#allocation2 + $0x3e] sm:$0xff] }
 0x306   : > { %v3224_v22 = vmul.f32 0.5625, %v3208_v8  ;;  %v3227_v44 = vadd.f32 %v3211_v43, %v3179_v35  ;;  %v3228_v2 = vadd.f32 %v10094_v14, %v3180_v32  ;;  %v3229_v45 = vadd.f32 %v3213_v6, %v3181_v30  ;;  %v3249_v63 = vld [vmem:[#allocation2 + $0x46] sm:$0xff]  ;;  %v3250_v4 = vld [vmem:[#allocation2 + $0x4e] sm:$0xff]  ;;  %v3251_v37 = vld [vmem:[#allocation2 + $0x56] sm:$0xff] }
 0x307   : > { %v3230_v18 = vadd.f32 %v3214_v28, %v3182_v40  ;;  %v3231_v61 = vadd.f32 %v3215_v33, %v3183_v39  ;;  %v3232_v50 = vadd.f32 %v3216_v36, %v3184_v49  ;;  %v3233_v3 = vadd.f32 %v3217_v17, %v3185_v5  ;;  %v3252_v8 = vld [vmem:[#allocation2 + $0x5e] sm:$0xff]  ;;  %v3253_v43 = vld [vmem:[#allocation2 + $0x66] sm:$0xff]  ;;  %v3254_v14 = vld [vmem:[#allocation2 + $0x6e] sm:$0xff] }
 0x308   : > { %v3234_v27 = vadd.f32 %v3218_v38, %v3186_v0  ;;  %v3235_v34 = vadd.f32 %v3219_v25, %v3187_v46  ;;  %v3236_v60 = vadd.f32 %v3220_v23, %v3188_v19  ;;  %v3237_v52 = vadd.f32 %v3221_v51, %v3189_v42  ;;  %v3255_v40 = vld [vmem:[#allocation2 + $0x76] sm:$0xff]  ;;  %v3256_v39 = vld [vmem:[#allocation2 + $0x7e] sm:$0xff] }
 0x309   : > { %v3238_v35 = vadd.f32 %v3222_v12, %v3190_v13  ;;  %v3239_v16 = vadd.f32 %v3223_v31, %v3191_v58  ;;  %v3240_v32 = vadd.f32 %v3224_v22, %v3192_v11  ;;  %v3259_v30 = vmul.f32 0.1875, %v3243_v62  ;;  %v3290_v12 = vld [vmem:[#allocation2 + $0x86] sm:$0xff] }
 0x30a   : > { %v3261_v6 = vmul.f32 0.1875, %v3245_v9  ;;  %v3262_v28 = vmul.f32 0.1875, %v3246_v48  ;;  %v3263_v49 = vmul.f32 0.1875, %v3247_v55  ;;  %v3264_v5 = vmul.f32 0.1875, %v3248_v7 }
 0x30b   : > { %v3265_v0 = vmul.f32 0.1875, %v3249_v63  ;;  %v3266_v46 = vmul.f32 0.1875, %v3250_v4  ;;  %v3267_v33 = vmul.f32 0.1875, %v3251_v37  ;;  %v3268_v36 = vmul.f32 0.1875, %v3252_v8  ;;  %v10370_v4 = vpop.permute.xlu0 %3673 }
 0x30c   : > { %v3269_v17 = vmul.f32 0.1875, %v3253_v43  ;;  %v3270_v19 = vmul.f32 0.1875, %v3254_v14  ;;  %v3271_v42 = vmul.f32 0.1875, %v3255_v40  ;;  %v3272_v13 = vmul.f32 0.1875, %v3256_v39  ;;  %v3317_v40 = vld [vmem:[#allocation2 + $0x4f] sm:$0xff]  ;;  %v3318_v39 = vld [vmem:[#allocation2 + $0x57] sm:$0xff] }
 0x30d   : > { %v3275_v58 = vadd.f32 %v3259_v30, %v3227_v44  ;;  %v3276_v38 = vadd.f32 %v10101_v59, %v3228_v2  ;;  %v3277_v25 = vadd.f32 %v3261_v6, %v3229_v45  ;;  %v3278_v11 = vadd.f32 %v3262_v28, %v3230_v18  ;;  %v3310_v18 = vld [vmem:[#allocation2 + $0x17] sm:$0xff] }
 0x30e   : > { %v3279_v23 = vadd.f32 %v3263_v49, %v3231_v61  ;;  %v3280_v51 = vadd.f32 %v3264_v5, %v3232_v50  ;;  %v3281_v31 = vadd.f32 %v3265_v0, %v3233_v3  ;;  %v3282_v22 = vadd.f32 %v3266_v46, %v3234_v27  ;;  %v3312_v61 = vld [vmem:[#allocation2 + $0x27] sm:$0xff]  ;;  %v3313_v50 = vld [vmem:[#allocation2 + $0x2f] sm:$0xff] }
 0x30f   : > { %v3283_v62 = vadd.f32 %v3267_v33, %v3235_v34  ;;  %v3284_v9 = vadd.f32 %v3268_v36, %v3236_v60  ;;  %v3285_v48 = vadd.f32 %v3269_v17, %v3237_v52  ;;  %v3286_v55 = vadd.f32 %v3270_v19, %v3238_v35  ;;  %v3314_v60 = vld [vmem:[#allocation2 + $0x37] sm:$0xff]  ;;  %v3315_v52 = vld [vmem:[#allocation2 + $0x3f] sm:$0xff]  ;;  %v3316_v35 = vld [vmem:[#allocation2 + $0x47] sm:$0xff] }
 0x310   : > { %v3287_v7 = vadd.f32 %v3271_v42, %v3239_v16  ;;  %v3288_v63 = vadd.f32 %v3272_v13, %v3240_v32  ;;  %v3292_v37 = vmul.f32 0.1875, %v3290_v12  ;;  %v3294_v44 = vadd.f32 %v10119_v29, %v3259_v30  ;;  %v3319_v29 = vld [vmem:[#allocation2 + $0x5f] sm:$0xff]  ;;  %v3321_v12 = vld [vmem:[#allocation2 + $0x6f] sm:$0xff] }
 0x311   : > { %v3295_v2 = vadd.f32 %v3275_v58, %v10101_v59  ;;  %v3296_v45 = vadd.f32 %v3276_v38, %v3261_v6  ;;  %v3297_v8 = vadd.f32 %v3277_v25, %v3262_v28  ;;  %v3298_v3 = vadd.f32 %v3278_v11, %v3263_v49  ;;  %v3320_v38 = vld [vmem:[#allocation2 + $0x67] sm:$0xff]  ;;  %v3322_v28 = vld [vmem:[#allocation2 + $0x77] sm:$0xff]  ;;  %v3323_v49 = vld [vmem:[#allocation2 + $0x7f] sm:$0xff] }
 0x312   : > { %v3299_v27 = vadd.f32 %v3279_v23, %v3264_v5  ;;  %v3300_v34 = vadd.f32 %v3280_v51, %v3265_v0  ;;  %v3301_v16 = vadd.f32 %v3281_v31, %v3266_v46  ;;  %v3302_v43 = vadd.f32 %v3282_v22, %v3267_v33  ;;  %v3324_v5 = vld [vmem:[#allocation2 + $0x87] sm:$0xff]  ;;  %v10374_v51 = vpop.permute.xlu0 %3884 }
 0x313   : > { %v3303_v14 = vadd.f32 %v3283_v62, %v3268_v36  ;;  %v3304_v32 = vadd.f32 %v3284_v9, %v3269_v17  ;;  %v3305_v30 = vadd.f32 %v3285_v48, %v3270_v19  ;;  %v3306_v59 = vadd.f32 %v3286_v55, %v3271_v42 }
 0x314   : > { %v3307_v6 = vadd.f32 %v3287_v7, %v3272_v13  ;;  %v3308_v58 = vadd.f32 %v3292_v37, %v3288_v63  ;;  %v3326_v0 = vmul.f32 0.5625, %v3310_v18  ;;  %v3328_v25 = vmul.f32 0.5625, %v3312_v61 }
 0x315   : > { %v3329_v11 = vmul.f32 0.5625, %v3313_v50  ;;  %v3330_v23 = vmul.f32 0.5625, %v3314_v60  ;;  %v3331_v46 = vmul.f32 0.5625, %v3315_v52  ;;  %v3332_v33 = vmul.f32 0.5625, %v3316_v35 }
 0x316   : > { %v3333_v36 = vmul.f32 0.5625, %v3317_v40  ;;  %v3334_v17 = vmul.f32 0.5625, %v3318_v39  ;;  %v3335_v31 = vmul.f32 0.5625, %v3319_v29  ;;  %v3336_v19 = vmul.f32 0.5625, %v3320_v38  ;;  %v3358_v29 = vld [vmem:[#allocation2 + $0x78] sm:$0xff] }
 0x317   : > { %v3337_v42 = vmul.f32 0.5625, %v3321_v12  ;;  %v3338_v13 = vmul.f32 0.5625, %v3322_v28  ;;  %v3339_v22 = vmul.f32 0.5625, %v3323_v49  ;;  %v3340_v62 = vmul.f32 0.5625, %v3324_v5  ;;  %v3359_v12 = vld [vmem:[#allocation2 + $0x80] sm:$0xff]  ;;  %v3360_v28 = vld [vmem:[#allocation2 + $0x88] sm:$0xff] }
 0x318   : > { %v3342_v9 = vadd.f32 %v3326_v0, %v3294_v44  ;;  %v3343_v48 = vadd.f32 %v10103_v15, %v3295_v2  ;;  %v3344_v55 = vadd.f32 %v3328_v25, %v3296_v45  ;;  %v3345_v7 = vadd.f32 %v3329_v11, %v3297_v8  ;;  %v10380_v45 = vpop.permute.xlu0 %3889  ;;  %v3395_v0 = vld [vmem:[#allocation2 + $0x81] sm:$0xff] }
 0x319   : > { %v3346_v63 = vadd.f32 %v3330_v23, %v3298_v3  ;;  %v3347_v37 = vadd.f32 %v3331_v46, %v3299_v27  ;;  %v3348_v18 = vadd.f32 %v3332_v33, %v3300_v34  ;;  %v3349_v61 = vadd.f32 %v3333_v36, %v3301_v16 }
 0x31a   : > { %v3350_v50 = vadd.f32 %v3334_v17, %v3302_v43  ;;  %v3351_v60 = vadd.f32 %v3335_v31, %v3303_v14  ;;  %v3352_v52 = vadd.f32 %v3336_v19, %v3304_v32  ;;  %v3353_v35 = vadd.f32 %v3337_v42, %v3305_v30  ;;  %v11621_v14 = vld [vmem:[#allocation52_spill] sm:$0xff] }
 0x31b   : > { %v3354_v40 = vadd.f32 %v3338_v13, %v3306_v59  ;;  %v3355_v39 = vadd.f32 %v3339_v22, %v3307_v6  ;;  %v3356_v38 = vadd.f32 %v3340_v62, %v3308_v58  ;;  %v3364_v44 = vmul.f32 0.5625, %v10097_v21  ;;  %v11623_v6 = vld [vmem:[#allocation27_spill] sm:$0xff]  ;;  %v11624_v22 = vld [vmem:[#allocation21_spill] sm:$0xff] }
 0x31c   : > { %v3365_v15 = vmul.f32 0.5625, %v10086_v20  ;;  %v3366_v2 = vmul.f32 0.5625, %v10122_v53  ;;  %v3367_v8 = vmul.f32 0.5625, %v10109_v47  ;;  %v3368_v3 = vmul.f32 0.5625, %v10146_v56  ;;  %v11622_v53 = vld [vmem:[#allocation30_spill] sm:$0xff]  ;;  %v10391_v17 = vpop.permute.xlu0 %3894 }
 0x31d   : > { %v3369_v27 = vmul.f32 0.5625, %v10136_v26  ;;  %v3370_v34 = vmul.f32 0.5625, %v10181_v10  ;;  %v3371_v16 = vmul.f32 0.5625, %v10174_v57  ;;  %v3372_v43 = vmul.f32 0.5625, %v10220_v41  ;;  %v3394_v26 = vld [vmem:[#allocation2 + $0x79] sm:$0xff]  ;;  %v3396_v10 = vld [vmem:[#allocation2 + $0x89] sm:$0xff] }
 0x31e   : > { %v3373_v21 = vmul.f32 0.5625, %v11621_v14  ;;  %v3374_v32 = vmul.f32 0.5625, %v3358_v29  ;;  %v3375_v20 = vmul.f32 0.5625, %v3359_v12  ;;  %v3376_v30 = vmul.f32 0.5625, %v3360_v28  ;;  %v11632_v29 = vld [vmem:[#allocation49_spill] sm:$0xff]  ;;  %v11633_v12 = vld [vmem:[#allocation56_spill] sm:$0xff] }
 0x31f   : > { %v3378_v59 = vadd.f32 %v11622_v53, %v3342_v9  ;;  %v3379_v58 = vadd.f32 %v11623_v6, %v3343_v48  ;;  %v3380_v47 = vadd.f32 %v3364_v44, %v3344_v55  ;;  %v3381_v49 = vadd.f32 %v3365_v15, %v3345_v7  ;;  %v11625_v9 = vld [vmem:[#allocation31_spill] sm:$0xff]  ;;  %v11626_v55 = vld [vmem:[#allocation34_spill] sm:$0xff]  ;;  %v11634_v44 = vld [vmem:[#allocation57_spill] sm:$0xff] }
 0x320   : > { %v3382_v56 = vadd.f32 %v3366_v2, %v3346_v63  ;;  %v3383_v5 = vadd.f32 %v3367_v8, %v3347_v37  ;;  %v3384_v25 = vadd.f32 %v3368_v3, %v3348_v18  ;;  %v3385_v57 = vadd.f32 %v3369_v27, %v3349_v61  ;;  %v11627_v63 = vld [vmem:[#allocation36_spill] sm:$0xff]  ;;  %v11639_v53 = vld [vmem:[#allocation38_spill] sm:$0xff]  ;;  %v10410_v6 = vpop.permute.xlu0 %3899 }
 0x321   : > { %v3386_v11 = vadd.f32 %v3370_v34, %v3350_v50  ;;  %v3387_v41 = vadd.f32 %v3371_v16, %v3351_v60  ;;  %v3388_v23 = vadd.f32 %v3372_v43, %v3352_v52  ;;  %v3389_v46 = vadd.f32 %v3373_v21, %v3353_v35  ;;  %v11628_v18 = vld [vmem:[#allocation40_spill] sm:$0xff]  ;;  %v11629_v50 = vld [vmem:[#allocation42_spill] sm:$0xff]  ;;  %v11630_v52 = vld [vmem:[#allocation43_spill] sm:$0xff] }
 0x322   : > { %v3390_v33 = vadd.f32 %v3374_v32, %v3354_v40  ;;  %v3391_v36 = vadd.f32 %v3375_v20, %v3355_v39  ;;  %v3392_v31 = vadd.f32 %v3376_v30, %v3356_v38  ;;  %v3398_v19 = vmul.f32 0.1875, %v3394_v26  ;;  %v11631_v40 = vld [vmem:[#allocation48_spill] sm:$0xff]  ;;  %v11636_v43 = vld [vmem:[#allocation29_spill] sm:$0xff] }
 0x323   : > { %v3399_v42 = vmul.f32 0.1875, %v3395_v0  ;;  %v3400_v13 = vmul.f32 0.1875, %v3396_v10  ;;  %v3402_v62 = vadd.f32 %v3378_v59, %v11624_v22  ;;  %v3403_v48 = vadd.f32 %v3379_v58, %v11625_v9  ;;  %v11635_v34 = vld [vmem:[#allocation28_spill] sm:$0xff]  ;;  %v11638_v20 = vld [vmem:[#allocation33_spill] sm:$0xff]  ;;  %v11640_v58 = vld [vmem:[#allocation39_spill] sm:$0xff] }
 0x324   : > { %v3404_v7 = vadd.f32 %v3380_v47, %v11626_v55  ;;  %v3405_v37 = vadd.f32 %v3381_v49, %v11627_v63  ;;  %v3406_v61 = vadd.f32 %v3382_v56, %v11628_v18  ;;  %v3407_v60 = vadd.f32 %v3383_v5, %v11629_v50  ;;  %v11637_v21 = vld [vmem:[#allocation32_spill] sm:$0xff]  ;;  %v3453_v18 = vld [vmem:[#allocation2 + $0x82] sm:$0xff]  ;;  %v3454_v50 = vld [vmem:[#allocation2 + $0x8a] sm:$0xff] }
 0x325   : > { %v3408_v35 = vadd.f32 %v3384_v25, %v11630_v52  ;;  %v3409_v39 = vadd.f32 %v3385_v57, %v11631_v40  ;;  %v3410_v38 = vadd.f32 %v3386_v11, %v11632_v29  ;;  %v3411_v28 = vadd.f32 %v3387_v41, %v11633_v12  ;;  %v11641_v49 = vld [vmem:[#allocation44_spill] sm:$0xff]  ;;  %v11643_v25 = vld [vmem:[#allocation53_spill] sm:$0xff]  ;;  %v11644_v11 = vld [vmem:[#allocation54_spill] sm:$0xff] }
 0x326   : > { %v3412_v15 = vadd.f32 %v3388_v23, %v11634_v44  ;;  %v3413_v2 = vadd.f32 %v3389_v46, %v10269_v24  ;;  %v3414_v8 = vadd.f32 %v3398_v19, %v3390_v33  ;;  %v3415_v3 = vadd.f32 %v3399_v42, %v3391_v36  ;;  %v11642_v24 = vld [vmem:[#allocation45_spill] sm:$0xff] }
 0x327   : > { %v3416_v27 = vadd.f32 %v3400_v13, %v3392_v31  ;;  %v3420_v16 = vmul.f32 0.0625, %v11635_v34  ;;  %v3421_v14 = vmul.f32 0.0625, %v11636_v43  ;;  %v3422_v32 = vmul.f32 0.0625, %v11637_v21  ;;  %v3452_v63 = vld [vmem:[#allocation2 + $0x7a] sm:$0xff] }
 0x328   : > { %v3423_v30 = vmul.f32 0.0625, %v11638_v20  ;;  %v3424_v59 = vmul.f32 0.0625, %v11639_v53  ;;  %v3425_v47 = vmul.f32 0.0625, %v11640_v58  ;;  %v3426_v56 = vmul.f32 0.0625, %v11641_v49 }
 0x329   : > { %v3427_v5 = vmul.f32 0.0625, %v11642_v24  ;;  %v3428_v57 = vmul.f32 0.0625, %v11643_v25  ;;  %v3429_v41 = vmul.f32 0.0625, %v11644_v11  ;;  %v3430_v23 = vmul.f32 0.0625, %v10261_v1 }
 0x32a   : > { %v3431_v46 = vmul.f32 0.0625, %v3394_v26  ;;  %v3432_v33 = vmul.f32 0.0625, %v3395_v0  ;;  %v3433_v36 = vmul.f32 0.0625, %v3396_v10  ;;  %v3436_v31 = vadd.f32 %v3420_v16, %v3402_v62  ;;  %v11645_v26 = vld [vmem:[#allocation22_spill] sm:$0xff]  ;;  %v10419_v10 = vpop.permute.xlu0 %3904 }
 0x32b   : > { %v3437_v19 = vadd.f32 %v3421_v14, %v3403_v48  ;;  %v3438_v42 = vadd.f32 %v3422_v32, %v3404_v7  ;;  %v3439_v13 = vadd.f32 %v3423_v30, %v3405_v37  ;;  %v3440_v22 = vadd.f32 %v3424_v59, %v3406_v61  ;;  %v11646_v37 = vld [vmem:[#allocation37_spill] sm:$0xff]  ;;  %v11648_v16 = vld [vmem:[#allocation46_spill] sm:$0xff]  ;;  %v11653_v32 = vld [vmem:[#allocation59_spill] sm:$0xff] }
 0x32c   : > { %v3441_v9 = vadd.f32 %v3425_v47, %v3407_v60  ;;  %v3442_v55 = vadd.f32 %v3426_v56, %v3408_v35  ;;  %v3443_v52 = vadd.f32 %v3427_v5, %v3409_v39  ;;  %v3444_v40 = vadd.f32 %v3428_v57, %v3410_v38  ;;  %v11647_v60 = vld [vmem:[#allocation41_spill] sm:$0xff]  ;;  %v11649_v39 = vld [vmem:[#allocation47_spill] sm:$0xff]  ;;  %v11654_v30 = vld [vmem:[#allocation60_spill] sm:$0xff] }
 0x32d   : > { %v3445_v29 = vadd.f32 %v3429_v41, %v3411_v28  ;;  %v3446_v12 = vadd.f32 %v3430_v23, %v3412_v15  ;;  %v3447_v44 = vadd.f32 %v3431_v46, %v3413_v2  ;;  %v3448_v34 = vadd.f32 %v3432_v33, %v3414_v8  ;;  %v11650_v28 = vld [vmem:[#allocation50_spill] sm:$0xff]  ;;  %v11655_v59 = vld [vmem:[#allocation61_spill] sm:$0xff]  ;;  %v11656_v5 = vld [vmem:[#allocation23_spill] sm:$0xff] }
 0x32e   : > { %v3449_v1 = vadd.f32 %v3433_v36, %v3415_v3  ;;  %v3450_v0 = vadd.f32 %v11645_v26, %v3416_v27  ;;  %v3457_v62 = vmul.f32 0.1875, %v3452_v63  ;;  %v3458_v48 = vmul.f32 0.1875, %v3453_v18  ;;  %v3478_v2 = vld [vmem:[#allocation2 + $0x83] sm:$0xff]  ;;  %v3479_v8 = vld [vmem:[#allocation2 + $0x8b] sm:$0xff]  ;;  %v11659_v36 = vld [vmem:[#allocation68_spill] sm:$0xff] }
 0x32f   : > { %v3459_v7 = vmul.f32 0.1875, %v3454_v50  ;;  %v3462_v61 = vadd.f32 %v3436_v31, %v11646_v37  ;;  %v3463_v35 = vadd.f32 %v3437_v19, %v11647_v60  ;;  %v3464_v43 = vadd.f32 %v3438_v42, %v11648_v16  ;;  %v11651_v3 = vld [vmem:[#allocation51_spill] sm:$0xff]  ;;  %v11652_v27 = vld [vmem:[#allocation58_spill] sm:$0xff]  ;;  %v11660_v19 = vld [vmem:[#allocation69_spill] sm:$0xff] }
 0x330   : > { %v3465_v38 = vadd.f32 %v3439_v13, %v11649_v39  ;;  %v3466_v15 = vadd.f32 %v3440_v22, %v11650_v28  ;;  %v3467_v14 = vadd.f32 %v3441_v9, %v11651_v3  ;;  %v3468_v21 = vadd.f32 %v3442_v55, %v11652_v27  ;;  %v11657_v41 = vld [vmem:[#allocation66_spill] sm:$0xff]  ;;  %v11658_v46 = vld [vmem:[#allocation67_spill] sm:$0xff]  ;;  %v10437_v13 = vpop.permute.xlu0 %3708  ;;  %v11663_v63 = vld [vmem:[#allocation72_spill] sm:$0xff] }
 0x331   : > { %v3469_v20 = vadd.f32 %v3443_v52, %v11653_v32  ;;  %v3470_v53 = vadd.f32 %v3444_v40, %v11654_v30  ;;  %v3471_v58 = vadd.f32 %v3445_v29, %v11655_v59  ;;  %v3472_v47 = vadd.f32 %v3446_v12, %v10276_v54  ;;  %v11661_v22 = vld [vmem:[#allocation70_spill] sm:$0xff]  ;;  %v11662_v54 = vld [vmem:[#allocation71_spill] sm:$0xff]  ;;  %v11664_v50 = vld [vmem:[#allocation73_spill] sm:$0xff] }
 0x332   : > { %v3473_v49 = vadd.f32 %v3457_v62, %v3447_v44  ;;  %v3474_v56 = vadd.f32 %v3458_v48, %v3448_v34  ;;  %v3475_v24 = vadd.f32 %v3459_v7, %v3449_v1  ;;  %v3476_v25 = vadd.f32 %v11656_v5, %v3450_v0  ;;  %v11665_v40 = vld [vmem:[#allocation74_spill] sm:$0xff]  ;;  %v11666_v12 = vld [vmem:[#allocation75_spill] sm:$0xff]  ;;  %v11667_v34 = vld [vmem:[#allocation76_spill] sm:$0xff] }
 0x333   : > { %v3482_v57 = vmul.f32 0.1875, %v3478_v2  ;;  %v3483_v11 = vmul.f32 0.1875, %v3479_v8  ;;  %v3486_v23 = vadd.f32 %v3462_v61, %v11657_v41  ;;  %v3487_v33 = vadd.f32 %v3463_v35, %v11658_v46  ;;  %v11668_v26 = vld [vmem:[#allocation77_spill] sm:$0xff]  ;;  %v11669_v7 = vld [vmem:[#allocation24_spill] sm:$0xff]  ;;  %v11670_v60 = vld [vmem:[#allocation78_spill] sm:$0xff] }
 0x334   : > { %v3488_v31 = vadd.f32 %v3464_v43, %v11659_v36  ;;  %v3489_v42 = vadd.f32 %v3465_v38, %v11660_v19  ;;  %v3490_v9 = vadd.f32 %v3466_v15, %v11661_v22  ;;  %v3491_v55 = vadd.f32 %v3467_v14, %v11662_v54  ;;  %v3502_v61 = vld [vmem:[#allocation2 + $0x84] sm:$0xff]  ;;  %v3503_v16 = vld [vmem:[#allocation2 + $0x8c] sm:$0xff]  ;;  %v11672_v38 = vld [vmem:[#allocation80_spill] sm:$0xff] }
 0x335   : > { %v3492_v18 = vadd.f32 %v3468_v21, %v11663_v63  ;;  %v3493_v52 = vadd.f32 %v3469_v20, %v11664_v50  ;;  %v3494_v29 = vadd.f32 %v3470_v53, %v11665_v40  ;;  %v3495_v44 = vadd.f32 %v3471_v58, %v11666_v12  ;;  %v11671_v43 = vld [vmem:[#allocation79_spill] sm:$0xff]  ;;  %v11673_v15 = vld [vmem:[#allocation81_spill] sm:$0xff]  ;;  %v11674_v8 = vld [vmem:[#allocation82_spill] sm:$0xff] }
 0x336   : > { %v3496_v1 = vadd.f32 %v3472_v47, %v11667_v34  ;;  %v3497_v0 = vadd.f32 %v3473_v49, %v11668_v26  ;;  %v3498_v62 = vadd.f32 %v3482_v57, %v3474_v56  ;;  %v3499_v48 = vadd.f32 %v3483_v11, %v3475_v24  ;;  %v11675_v14 = vld [vmem:[#allocation83_spill] sm:$0xff]  ;;  %v11676_v21 = vld [vmem:[#allocation84_spill] sm:$0xff]  ;;  %v11677_v20 = vld [vmem:[#allocation85_spill] sm:$0xff]  ;;  %v10460_v57 = vpop.permute.xlu0 %3983 }
 0x337   : > { %v3500_v37 = vadd.f32 %v11669_v7, %v3476_v25  ;;  %v3506_v35 = vmul.f32 0.0625, %v11670_v60  ;;  %v3507_v39 = vmul.f32 0.0625, %v11671_v43  ;;  %v3508_v28 = vmul.f32 0.0625, %v11672_v38  ;;  %v11678_v53 = vld [vmem:[#allocation86_spill] sm:$0xff]  ;;  %v11679_v58 = vld [vmem:[#allocation87_spill] sm:$0xff]  ;;  %v11680_v49 = vld [vmem:[#allocation88_spill] sm:$0xff] }
 0x338   : > { %v3509_v2 = vmul.f32 0.0625, %v11673_v15  ;;  %v3510_v3 = vmul.f32 0.0625, %v11674_v8  ;;  %v3511_v27 = vmul.f32 0.0625, %v11675_v14  ;;  %v3512_v32 = vmul.f32 0.0625, %v11676_v21  ;;  %v11681_v24 = vld [vmem:[#allocation89_spill] sm:$0xff]  ;;  %v11683_v15 = vld [vmem:[#allocation20_spill] sm:$0xff] }
 0x339   : > { %v3513_v30 = vmul.f32 0.0625, %v11677_v20  ;;  %v3514_v59 = vmul.f32 0.0625, %v11678_v53  ;;  %v3515_v47 = vmul.f32 0.0625, %v11679_v58  ;;  %v3516_v56 = vmul.f32 0.0625, %v11680_v49  ;;  %v11682_v43 = vld [vmem:[#allocation25_spill] sm:$0xff] }
 0x33a   : > { %v3517_v5 = vmul.f32 0.0625, %v11681_v24  ;;  %v3518_v25 = vmul.f32 0.0625, %v3502_v61  ;;  %v3519_v11 = vmul.f32 0.0625, %v3503_v16  ;;  %v3522_v41 = vadd.f32 %v3506_v35, %v3486_v23  ;;  %v3714_v61 = vpop.permute.xlu0 %3713  ;;  %v11685_v16 = vld [vmem:[#allocation35_spill] sm:$0xff]  ;;  %v10486_v21 = vld [vmem:[%s11458_s7] ss:$0 sm:$0xff] }
 0x33b   : > { %v3523_v46 = vadd.f32 %v3507_v39, %v3487_v33  ;;  %v3524_v36 = vadd.f32 %v3508_v28, %v3488_v31  ;;  %v3525_v19 = vadd.f32 %v3509_v2, %v3489_v42  ;;  %v3526_v22 = vadd.f32 %v3510_v3, %v3490_v9  ;;  %v11686_v28 = vld [vmem:[#allocation4_spill] sm:$0xff]  ;;  %v11687_v3 = vld [vmem:[#allocation5_spill] sm:$0xff]  ;;  %v11692_v24 = vld [vmem:[#allocation10_spill] sm:$0xff] }
 0x33c   : > { %v3527_v54 = vadd.f32 %v3511_v27, %v3491_v55  ;;  %v3528_v63 = vadd.f32 %v3512_v32, %v3492_v18  ;;  %v3529_v50 = vadd.f32 %v3513_v30, %v3493_v52  ;;  %v3530_v40 = vadd.f32 %v3514_v59, %v3494_v29  ;;  %v11688_v32 = vld [vmem:[#allocation6_spill] sm:$0xff]  ;;  %v11689_v30 = vld [vmem:[#allocation7_spill] sm:$0xff]  ;;  %v11690_v59 = vld [vmem:[#allocation8_spill] sm:$0xff] }
 0x33d   : > { %v3531_v12 = vadd.f32 %v3515_v47, %v3495_v44  ;;  %v3532_v34 = vadd.f32 %v3516_v56, %v3496_v1  ;;  %v3533_v26 = vadd.f32 %v3517_v5, %v3497_v0  ;;  %v3534_v7 = vadd.f32 %v3518_v25, %v3498_v62  ;;  %v11691_v47 = vld [vmem:[#allocation9_spill] sm:$0xff]  ;;  %v11693_v25 = vld [vmem:[#allocation11_spill] sm:$0xff] }
 0x33e   : > { %v3535_v60 = vadd.f32 %v3519_v11, %v3499_v48  ;;  %v3536_v38 = vadd.f32 %v11682_v43, %v3500_v37  ;;  %v3619_v8 = vmul.f32 %v11683_v15, %v3522_v41  ;;  %v3620_v23 = vmul.f32 %v11683_v15, %v3523_v46  ;;  %v11684_v37 = vld [vmem:[#allocation26_spill] sm:$0xff]  ;;  %v3719_v56 = vpop.permute.xlu0 %3718 }
 0x33f   : > { %v3621_v33 = vmul.f32 %v11683_v15, %v3524_v36  ;;  %v3622_v31 = vmul.f32 %v11683_v15, %v3525_v19  ;;  %v3623_v42 = vmul.f32 %v11683_v15, %v3526_v22  ;;  %v3624_v9 = vmul.f32 %v11683_v15, %v3527_v54  ;;  %v11694_v36 = vld [vmem:[#allocation18_spill] sm:$0xff] }
 0x340   : > { %v3625_v55 = vmul.f32 %v11683_v15, %v3528_v63  ;;  %v3626_v18 = vmul.f32 %v11683_v15, %v3529_v50  ;;  %v3627_v52 = vmul.f32 %v11683_v15, %v3530_v40  ;;  %v3628_v29 = vmul.f32 %v11683_v15, %v3531_v12 }
 0x341   : > { %v3629_v44 = vmul.f32 %v11683_v15, %v3532_v34  ;;  %v3630_v1 = vmul.f32 %v11683_v15, %v3533_v26  ;;  %v3631_v0 = vmul.f32 %v11683_v15, %v3534_v7  ;;  %v3632_v62 = vmul.f32 %v11683_v15, %v3535_v60 }
 0x342   : > { %v3633_v48 = vmul.f32 %v11683_v15, %v3536_v38  ;;  %v3731_v35 = vadd.f32 %v11684_v37, %v3619_v8  ;;  %v3732_v39 = vadd.f32 %v11685_v16, %v3620_v23  ;;  %v3733_v2 = vadd.f32 %v11686_v28, %v3621_v33  ;;  %v4034_v23 = vld [vmem:[%s11460_s9] sm:$0xff]  ;;  %v4035_v33 = vld [vmem:[%s11460_s9 + $0x8] sm:$0xff]  ;;  %v11696_v37 = vld [vmem:[#allocation63_spill] sm:$0xff] }
 0x343   : > { %v3734_v14 = vadd.f32 %v11687_v3, %v3622_v31  ;;  %v3735_v27 = vadd.f32 %v10370_v4, %v3623_v42  ;;  %v3736_v20 = vadd.f32 %v11688_v32, %v3624_v9  ;;  %v3737_v53 = vadd.f32 %v11689_v30, %v3625_v55 }
 0x344   : > { %v3738_v58 = vadd.f32 %v11690_v59, %v3626_v18  ;;  %v3739_v49 = vadd.f32 %v11691_v47, %v3627_v52  ;;  %v3740_v5 = vadd.f32 %v11692_v24, %v3628_v29  ;;  %v3741_v11 = vadd.f32 %v11693_v25, %v3629_v44  ;;  %v10519_v18 = vpop.permute.xlu0 %3929 }
 0x345   : > { %v3742_v4 = vadd.f32 %v10437_v13, %v3630_v1  ;;  %v3743_v41 = vadd.f32 %v3714_v61, %v3631_v0  ;;  %v3744_v46 = vadd.f32 %v3719_v56, %v3632_v62  ;;  %v3745_v19 = vadd.f32 %v11694_v36, %v3633_v48  ;;  %v11695_v48 = vld [vmem:[#allocation65_spill] sm:$0xff] }
 0x346   : > { %v3754_v22 = vadd.f32 %v10486_v21, %v3731_v35  ;;  %v3755_v54 = vadd.f32 %v10486_v21, %v3732_v39  ;;  %v3756_v63 = vadd.f32 %v10486_v21, %v3733_v2  ;;  %v3757_v50 = vadd.f32 %v10486_v21, %v3734_v14 }
 0x347   : > { %v3758_v40 = vadd.f32 %v10486_v21, %v3735_v27  ;;  %v3759_v12 = vadd.f32 %v10486_v21, %v3736_v20  ;;  %v3760_v34 = vadd.f32 %v10486_v21, %v3737_v53  ;;  %v3761_v13 = vadd.f32 %v10486_v21, %v3738_v58 }
 0x348   : > { %v3762_v26 = vadd.f32 %v10486_v21, %v3739_v49  ;;  %v3763_v7 = vadd.f32 %v10486_v21, %v3740_v5  ;;  %v3764_v60 = vadd.f32 %v10486_v21, %v3741_v11  ;;  %v3765_v43 = vadd.f32 %v10486_v21, %v3742_v4  ;;  %v3940_v56 = vpop.permute.xlu0 %3939 }
 0x349   : > { %v3766_v38 = vadd.f32 %v10486_v21, %v3743_v41  ;;  %v3767_v61 = vadd.f32 %v10486_v21, %v3744_v46  ;;  %v3768_v8 = vadd.f32 %v10486_v21, %v3745_v19  ;;  %vm3770_vm5 = vcmp.ge.f32.partialorder %v3754_v22, 0.0 }
 0x34a   : > { %vm3771_vm6 = vcmp.ge.f32.partialorder %v3755_v54, 0.0  ;;  %vm3772_vm7 = vcmp.ge.f32.partialorder %v3756_v63, 0.0  ;;  %vm3773_vm8 = vcmp.ge.f32.partialorder %v3757_v50, 0.0  ;;  %vm3774_vm9 = vcmp.ge.f32.partialorder %v3758_v40, 0.0 }
 0x34b   : > { %vm3775_vm10 = vcmp.ge.f32.partialorder %v3759_v12, 0.0  ;;  %vm3776_vm11 = vcmp.ge.f32.partialorder %v3760_v34, 0.0  ;;  %vm3777_vm12 = vcmp.ge.f32.partialorder %v3761_v13, 0.0  ;;  %vm3778_vm13 = vcmp.ge.f32.partialorder %v3762_v26, 0.0 }
 0x34c   : > { %vm3779_vm14 = vcmp.ge.f32.partialorder %v3763_v7, 0.0  ;;  %vm3780_vm15 = vcmp.ge.f32.partialorder %v3764_v60, 0.0  ;;  %vm3781_vm1 = vcmp.ge.f32.partialorder %v3765_v43, 0.0  ;;  %vm3782_vm2 = vcmp.ge.f32.partialorder %v3766_v38, 0.0 }
 0x34d   : > { %vm3783_vm3 = vcmp.ge.f32.partialorder %v3767_v61, 0.0  ;;  %vm3784_vm4 = vcmp.ge.f32.partialorder %v3768_v8, 0.0  ;;  %v3786_v31 = vmul.f32 0.2, %v3754_v22  ;;  %v3787_v42 = vmul.f32 0.2, %v3755_v54 }
 0x34e   : > { %v3788_v9 = vmul.f32 0.2, %v3756_v63  ;;  %v10517_v55 = vpack.c.bf16 %v4035_v33, %v4034_v23  ;;  %v3789_v52 = vmul.f32 0.2, %v3757_v50  ;;  %v3790_v29 = vmul.f32 0.2, %v3758_v40  ;;  %v3950_v23 = vpop.permute.xlu0 %3949 }
 0x34f   : > { %v3791_v44 = vmul.f32 0.2, %v3759_v12  ;;  %v3792_v1 = vmul.f32 0.2, %v3760_v34  ;;  %v3793_v0 = vmul.f32 0.2, %v3761_v13  ;;  %v3063_v35 = vadd.f32 %v11696_v37, %v11695_v48 }
 0x350   : > { %v3794_v62 = vmul.f32 0.2, %v3762_v26  ;;  %8915 = vmatprep.subr.bf16.mxu0 %v10517_v55  ;;  %v3795_v16 = vmul.f32 0.2, %v3763_v7  ;;  %v3796_v39 = vmul.f32 0.2, %v3764_v60  ;;  %v3802_v14 = vsel %vm3770_vm5, %v3754_v22, %v3786_v31 }
 0x351   : > { %v3797_v28 = vmul.f32 0.2, %v3765_v43  ;;  %v3798_v2 = vmul.f32 0.2, %v3766_v38  ;;  %v3799_v3 = vmul.f32 0.2, %v3767_v61  ;;  %v3803_v27 = vsel %vm3771_vm6, %v3755_v54, %v3787_v42 }
 0x352   : > { %v3800_v32 = vmul.f32 0.2, %v3768_v8  ;;  %v3804_v20 = vsel %vm3772_vm7, %v3756_v63, %v3788_v9  ;;  %v3805_v30 = vsel %vm3773_vm8, %v3757_v50, %v3789_v52  ;;  %v3806_v53 = vsel %vm3774_vm9, %v3758_v40, %v3790_v29 }
 0x353   : > { %v3807_v59 = vsel %vm3775_vm10, %v3759_v12, %v3791_v44  ;;  %v3808_v58 = vsel %vm3776_vm11, %v3760_v34, %v3792_v1  ;;  %v3809_v47 = vsel %vm3777_vm12, %v3761_v13, %v3793_v0  ;;  %v3810_v49 = vsel %vm3778_vm13, %v3762_v26, %v3794_v62 }
 0x354   : > { %v3811_v24 = vsel %vm3779_vm14, %v3763_v7, %v3795_v16  ;;  %v3812_v5 = vsel %vm3780_vm15, %v3764_v60, %v3796_v39  ;;  %v3813_v25 = vsel %vm3781_vm1, %v3765_v43, %v3797_v28  ;;  %v3814_v11 = vsel %vm3782_vm2, %v3766_v38, %v3798_v2  ;;  %v11697_v7 = vld [vmem:[#allocation64_spill] sm:$0xff] }
 0x355   : > { %v3815_v4 = vsel %vm3783_vm3, %v3767_v61, %v3799_v3  ;;  %v3818_v41 = vmul.f32 1.4142135, %v3802_v14  ;;  %v3819_v46 = vmul.f32 1.4142135, %v3803_v27  ;;  %v3820_v36 = vmul.f32 1.4142135, %v3804_v20 }
 0x356   : > { %v3816_v19 = vsel %vm3784_vm4, %v3768_v8, %v3800_v32  ;;  %v3821_v22 = vmul.f32 1.4142135, %v3805_v30  ;;  %v3822_v54 = vmul.f32 1.4142135, %v3806_v53  ;;  %v3823_v63 = vmul.f32 1.4142135, %v3807_v59 }
 0x357   : > { %v3824_v50 = vmul.f32 1.4142135, %v3808_v58  ;;  %v3825_v40 = vmul.f32 1.4142135, %v3809_v47  ;;  %v3826_v12 = vmul.f32 1.4142135, %v3810_v49  ;;  %v10540_v60 = vadd.f32 %v11697_v7, %v3063_v35  ;;  %v3955_v49 = vpop.permute.xlu0 %3954 }
 0x358   : > { %v3827_v34 = vmul.f32 1.4142135, %v3811_v24  ;;  %v3828_v13 = vmul.f32 1.4142135, %v3812_v5  ;;  %v3829_v26 = vmul.f32 1.4142135, %v3813_v25 }
 0x359   : > { %v3830_v43 = vmul.f32 1.4142135, %v3814_v11  ;;  %v3831_v38 = vmul.f32 1.4142135, %v3815_v4  ;;  %v3832_v61 = vmul.f32 1.4142135, %v3816_v19 }
 0x35a   : > { %v7636_v33 = vclamps-f32 %v3818_v41, 256.0  ;;  %v7637_v31 = vclamps-f32 %v3819_v46, 256.0  ;;  %v7638_v42 = vclamps-f32 %v3820_v36, 256.0  ;;  %v7639_v8 = vclamps-f32 %v3821_v22, 256.0  ;;  %v11698_v27 = vld [vmem:[#allocation12_spill] sm:$0xff]  ;;  %v11699_v20 = vld [vmem:[#allocation13_spill] sm:$0xff] }
 0x35b   : > { %v7640_v9 = vclamps-f32 %v3822_v54, 256.0  ;;  %v7641_v52 = vclamps-f32 %v3823_v63, 256.0  ;;  %v7642_v29 = vclamps-f32 %v3824_v50, 256.0  ;;  %v7643_v44 = vclamps-f32 %v3825_v40, 256.0  ;;  %v11700_v53 = vld [vmem:[#allocation14_spill] sm:$0xff]  ;;  %v11701_v58 = vld [vmem:[#allocation15_spill] sm:$0xff] }
 0x35c   : > { %v7644_v1 = vclamps-f32 %v3826_v12, 256.0  ;;  %v7645_v0 = vclamps-f32 %v3827_v34, 256.0  ;;  %v7646_v62 = vclamps-f32 %v3828_v13, 256.0  ;;  %v7647_v48 = vclamps-f32 %v3829_v26, 256.0  ;;  %v11703_v25 = vld [vmem:[#allocation17_spill] sm:$0xff] }
 0x35d   : > { %v7648_v37 = vclamps-f32 %v3830_v43, 256.0  ;;  %v7649_v16 = vclamps-f32 %v3831_v38, 256.0  ;;  %v7650_v35 = vclamps-f32 %v3832_v61, 256.0  ;;  %v3962_v39 = vmul.f32 %v7636_v33, %v10374_v51  ;;  %v11702_v51 = vld [vmem:[#allocation16_spill] sm:$0xff]  ;;  %v3161_v41 = vld [vmem:[#allocation2 + $0x84] sm:$0x1] }
 0x35e   : > { %v3963_v28 = vmul.f32 %v7637_v31, %v10380_v45  ;;  %v3964_v2 = vmul.f32 %v7638_v42, %v10391_v17  ;;  %v3965_v3 = vmul.f32 %v7639_v8, %v10410_v6  ;;  %v3966_v14 = vmul.f32 %v7640_v9, %v10419_v10  ;;  %v3209_v50 = vld [vmem:[#allocation2 + $0x85] sm:$0x1]  ;;  %v3257_v7 = vld [vmem:[#allocation2 + $0x86] sm:$0x1]  ;;  %v3291_v43 = vld [vmem:[#allocation2 + $0x8e] sm:$0x1] }
 0x35f   : > { %v3967_v32 = vmul.f32 %v7641_v52, %v11698_v27  ;;  %v3968_v30 = vmul.f32 %v7642_v29, %v11699_v20  ;;  %v3969_v59 = vmul.f32 %v7643_v44, %v11700_v53  ;;  %v3970_v47 = vmul.f32 %v7644_v1, %v11701_v58  ;;  %v11704_v61 = vld [vmem:[#allocation62_spill] sm:$0xff]  ;;  %v4036_v31 = vld [vmem:[%s11460_s9 + $0x10] sm:$0xff]  ;;  %v4037_v42 = vld [vmem:[%s11460_s9 + $0x18] sm:$0xff] }
 0x360   : > { %v3971_v24 = vmul.f32 %v7645_v0, %v10519_v18  ;;  %v3972_v5 = vmul.f32 %v7646_v62, %v11702_v51  ;;  %v3973_v45 = vmul.f32 %v7647_v48, %v3940_v56  ;;  %v3974_v17 = vmul.f32 %v7648_v37, %v11703_v25  ;;  %v3325_v33 = vld [vmem:[#allocation2 + $0x8f] sm:$0x1]  ;;  %v7688_v52 = vld [vmem:[%s11460_s9 + $0x40] sm:$0xff]  ;;  %v3419_v27 = vld [vmem:[#allocation2 + $0x99] sm:$0x1] }
 0x361   : > { %v3975_v11 = vmul.f32 %v7649_v16, %v3950_v23  ;;  %v3976_v6 = vmul.f32 %v7650_v35, %v3955_v49  ;;  %v3986_v10 = vmul.f32 %v10460_v57, %v3962_v39  ;;  %v3987_v4 = vmul.f32 %v10460_v57, %v3963_v28  ;;  %v7689_v62 = vld [vmem:[%s11460_s9 + $0x48] sm:$0xff]  ;;  %v3361_v16 = vld [vmem:[#allocation2 + $0x90] sm:$0x1]  ;;  %v3397_v39 = vld [vmem:[#allocation2 + $0x91] sm:$0x1] }
 0x362   : > { %v3988_v46 = vmul.f32 %v10460_v57, %v3964_v2  ;;  %v3989_v36 = vmul.f32 %v10460_v57, %v3965_v3  ;;  %v3990_v19 = vmul.f32 %v10460_v57, %v3966_v14  ;;  %v3991_v18 = vmul.f32 %v10460_v57, %v3967_v32  ;;  %v3481_v49 = vld [vmem:[#allocation2 + $0x9b] sm:$0x1] }
 0x363   : > { %v3992_v22 = vmul.f32 %v10460_v57, %v3968_v30  ;;  %v3993_v56 = vmul.f32 %v10460_v57, %v3969_v59  ;;  %v3994_v54 = vmul.f32 %v10460_v57, %v3970_v47  ;;  %v3995_v63 = vmul.f32 %v10460_v57, %v3971_v24  ;;  %4002 = vst.msk [vmem:[#allocation2 + $0x18] sm:$0xff] %vm626_vm0, %v3986_v10  ;;  %v3456_v59 = vld [vmem:[#allocation2 + $0x9a] sm:$0x1] }
 0x364   : > { %4003 = vst.msk [vmem:[#allocation2 + $0x20] sm:$0xff] %vm626_vm0, %v3987_v4  ;;  %v3996_v40 = vmul.f32 %v10460_v57, %v3972_v5  ;;  %v3997_v12 = vmul.f32 %v10460_v57, %v3973_v45  ;;  %v3998_v34 = vmul.f32 %v10460_v57, %v3974_v17  ;;  %v3999_v13 = vmul.f32 %v10460_v57, %v3975_v11  ;;  %v3505_v45 = vld [vmem:[#allocation2 + $0x9c] sm:$0x1] }
 0x365   : > { %4004 = vst.msk [vmem:[#allocation2 + $0x28] sm:$0xff] %vm626_vm0, %v3988_v46  ;;  %4005 = vst.msk [vmem:[#allocation2 + $0x30] sm:$0xff] %vm626_vm0, %v3989_v36  ;;  %v3177_v26 = vmul.f32 0.5625, %v3161_v41  ;;  %v4000_v38 = vmul.f32 %v10460_v57, %v3976_v6  ;;  %v3145_v23 = vadd.f32 %v11704_v61, %v10540_v60  ;;  %v3225_v8 = vmul.f32 0.5625, %v3209_v50 }
 0x366   : > { %4006 = vst.msk [vmem:[#allocation2 + $0x38] sm:$0xff] %vm626_vm0, %v3990_v19  ;;  %4007 = vst.msk [vmem:[#allocation2 + $0x40] sm:$0xff] %vm626_vm0, %v3991_v18  ;;  %v8918_v9 = vpack.c.bf16 %v4037_v42, %v4036_v31  ;;  %v3273_v44 = vmul.f32 0.1875, %v3257_v7  ;;  %v3293_v37 = vmul.f32 0.1875, %v3291_v43  ;;  %v10601_v2 = vpack.c.bf16 %v7689_v62, %v7688_v52  ;;  %v7691_v7 = vld [vmem:[%s11460_s9 + $0x58] sm:$0xff]  ;;  %v7709_v31 = vld [vmem:[%s11460_s9 + $0x68] sm:$0xff] }
 0x367   : > { %4008 = vst.msk [vmem:[#allocation2 + $0x48] sm:$0xff] %vm626_vm0, %v3992_v22  ;;  %4009 = vst.msk [vmem:[#allocation2 + $0x50] sm:$0xff] %vm626_vm0, %v3993_v56  ;;  %v3193_v60 = vadd.f32 %v3177_v26, %v3145_v23  ;;  %v3341_v14 = vmul.f32 0.5625, %v3325_v33  ;;  %v3377_v32 = vmul.f32 0.5625, %v3361_v16  ;;  %v3401_v30 = vmul.f32 0.1875, %v3397_v39  ;;  %v11705_v56 = vld [vmem:[#allocation19_spill] sm:$0xff] }
 0x368   : > { %4010 = vst.msk [vmem:[#allocation2 + $0x58] sm:$0xff] %vm626_vm0, %v3994_v54  ;;  %4011 = vst.msk [vmem:[#allocation2 + $0x60] sm:$0xff] %vm626_vm0, %v3995_v63  ;;  %v3435_v47 = vmul.f32 0.0625, %v3419_v27  ;;  %v3461_v51 = vmul.f32 0.1875, %v3456_v59  ;;  %v3485_v11 = vmul.f32 0.1875, %v3481_v49  ;;  %v3521_v10 = vmul.f32 0.0625, %v3505_v45 }
 0x369   : > { %4012 = vst.msk [vmem:[#allocation2 + $0x68] sm:$0xff] %vm626_vm0, %v3996_v40  ;;  %4013 = vst.msk [vmem:[#allocation2 + $0x70] sm:$0xff] %vm626_vm0, %v3997_v12  ;;  %v3241_v29 = vadd.f32 %v3225_v8, %v3193_v60  ;;  %v7690_v26 = vld [vmem:[%s11460_s9 + $0x50] sm:$0xff]  ;;  %v7708_v33 = vld [vmem:[%s11460_s9 + $0x60] sm:$0xff]  ;;  %vm11706_vm5 = vcmask 253952  }
 0x36a   : > { %4014 = vst.msk [vmem:[#allocation2 + $0x78] sm:$0xff] %vm626_vm0, %v3998_v34  ;;  %4015 = vst.msk [vmem:[#allocation2 + $0x80] sm:$0xff] %vm626_vm0, %v3999_v13  ;;  %v4039_v1 = vld [vmem:[#allocation2 + $0x15] sm:$0xff]  ;;  %v4018_v34 = vld [vmem:[#allocation2 + $0xc] sm:$0xff]  ;;  %v8926_v61 = vpack.c.bf16 %v7691_v7, %v7690_v26 }
 0x36b   : > { %4016 = vst.msk [vmem:[#allocation2 + $0x88] sm:$0xff] %vm626_vm0, %v4000_v38  ;;  %v4040_v0 = vld [vmem:[#allocation2 + $0x1d] sm:$0xff]  ;;  %8539 = vmatmul.mubr.msk.f32.vlgmr.msra.gmra.mrb[10].mxu0 %vm626_vm0, %v4039_v1  ;;  %v3289_v48 = vadd.f32 %v3273_v44, %v3241_v29  ;;  %v3960_v38 = vpop.permute.xlu0 %3959  ;;  %v4019_v23 = vld [vmem:[#allocation2 + $0x14] sm:$0xff] }
 0x36c   : > { %8541 = vmatprep.mubr.msk.f32.mxu0 %vm626_vm0, %v4040_v0  ;;  %8917 = vmatpush3.bf16.msra.mxu0 %v10517_v55  ;;  %v4041_v35 = vld [vmem:[#allocation2 + $0x25] sm:$0xff]  ;;  %v4042_v28 = vld [vmem:[#allocation2 + $0x2d] sm:$0xff]  ;;  %v4020_v60 = vld [vmem:[#allocation2 + $0x1c] sm:$0xff] }
 0x36d   : > { %8919 = vmatprep.subr.bf16.mxu0 %v8918_v9  ;;  %v3309_v3 = vadd.f32 %v3293_v37, %v3289_v48  ;;  %v4043_v53 = vld [vmem:[#allocation2 + $0x35] sm:$0xff]  ;;  %v4044_v55 = vld [vmem:[#allocation2 + $0x3d] sm:$0xff]  ;;  %v10642_v29 = vld [vmem:[#allocation2 + $0x2c] sm:$0xff] }
 0x36e   : > { %v4045_v5 = vld [vmem:[#allocation2 + $0x45] sm:$0xff]  ;;  %v4046_v25 = vld [vmem:[#allocation2 + $0x4d] sm:$0xff] }
 0x36f   : > { %8542 = vmatmul.mubr.msk.f32.gmra.mrb[12].mxu0 %vm626_vm0, %v4041_v35  ;;  %v3357_v20 = vadd.f32 %v3341_v14, %v3309_v3  ;;  %v4047_v41 = vld [vmem:[#allocation2 + $0x55] sm:$0xff]  ;;  %v4048_v46 = vld [vmem:[#allocation2 + $0x5d] sm:$0xff]  ;;  %v10658_v0 = vld [vmem:[#allocation2 + $0x4c] sm:$0xff] }
 0x370   : > { %8544 = vmatprep.mubr.msk.f32.mxu0 %vm626_vm0, %v4042_v28  ;;  %8921 = vmatpush3.bf16.msra.mxu0 %v8918_v9  ;;  %v4049_v18 = vld [vmem:[#allocation2 + $0x65] sm:$0xff]  ;;  %v4050_v22 = vld [vmem:[#allocation2 + $0x6d] sm:$0xff]  ;;  %v8930_v9 = vpack.c.bf16 %v7709_v31, %v7708_v33  ;;  %v10666_v48 = vld [vmem:[#allocation2 + $0x5c] sm:$0xff] }
 0x371   : > { %8923 = vmatprep.subr.bf16.mxu0 %v10601_v2  ;;  %v3393_v58 = vadd.f32 %v3377_v32, %v3357_v20  ;;  %v4051_v50 = vld [vmem:[#allocation2 + $0x75] sm:$0xff]  ;;  %v4052_v40 = vld [vmem:[#allocation2 + $0x7d] sm:$0xff]  ;;  %v4053_v13 = vld [vmem:[#allocation2 + $0x85] sm:$0x1] }
 0x372   : > { %v10637_v52 = vld [vmem:[#allocation2 + $0x24] sm:$0xff]  ;;  %v10646_v44 = vld [vmem:[#allocation2 + $0x34] sm:$0xff]  ;;  %v10674_v16 = vld [vmem:[#allocation2 + $0x6c] sm:$0xff] }
 0x373   : > { %8545 = vmatmul.mubr.msk.f32.gmra.mrb[14].mxu0 %vm626_vm0, %v4043_v53  ;;  %v3417_v24 = vadd.f32 %v3401_v30, %v3393_v58  ;;  %v10654_v1 = vld [vmem:[#allocation2 + $0x44] sm:$0xff]  ;;  %v10662_v62 = vld [vmem:[#allocation2 + $0x54] sm:$0xff]  ;;  %v10682_v39 = vld [vmem:[#allocation2 + $0x7c] sm:$0xff] }
 0x374   : > { %8547 = vmatprep.mubr.msk.f32.mxu0 %vm626_vm0, %v4044_v55  ;;  %v10670_v37 = vld [vmem:[#allocation2 + $0x64] sm:$0xff]  ;;  %v10678_v35 = vld [vmem:[#allocation2 + $0x74] sm:$0xff] }
 0x375   : > { %v3451_v17 = vadd.f32 %v3435_v47, %v3417_v24  ;;  %v4445_v28 = vld [vmem:[#allocation2 + $0xe] sm:$0xff]  ;;  %v7711_v14 = vld [vmem:[%s11460_s9 + $0x78] sm:$0xff]  ;;  %v7728_v20 = vld [vmem:[%s11460_s9 + $0x80] sm:$0xff] }
 0x376   : > { %v7710_v3 = vld [vmem:[%s11460_s9 + $0x70] sm:$0xff]  ;;  %v7729_v30 = vld [vmem:[%s11460_s9 + $0x88] sm:$0xff]  ;;  %v4447_v53 = vld [vmem:[#allocation2 + $0x1e] sm:$0xff] }
 0x377   : > { %8548 = vmatmul.mubr.msk.f32.gmra.mrb[16].mxu0 %vm626_vm0, %v4045_v5  ;;  %v3477_v6 = vadd.f32 %v3461_v51, %v3451_v17  ;;  %v8934_v27 = vpack.c.bf16 %v7711_v14, %v7710_v3  ;;  %v4446_v32 = vld [vmem:[#allocation2 + $0x16] sm:$0xff]  ;;  %v8938_v59 = vpack.c.bf16 %v7729_v30, %v7728_v20  ;;  %v4448_v55 = vld [vmem:[#allocation2 + $0x26] sm:$0xff]  ;;  %v4449_v58 = vld [vmem:[#allocation2 + $0x2e] sm:$0xff] }
 0x378   : > { %8550 = vmatprep.mubr.msk.f32.mxu0 %vm626_vm0, %v4046_v25  ;;  %v4450_v47 = vld [vmem:[#allocation2 + $0x36] sm:$0xff]  ;;  %v4451_v49 = vld [vmem:[#allocation2 + $0x3e] sm:$0xff]  ;;  %v4452_v24 = vld [vmem:[#allocation2 + $0x46] sm:$0xff] }
 0x379   : > { %v3501_v4 = vadd.f32 %v3485_v11, %v3477_v6  ;;  %v4453_v51 = vld [vmem:[#allocation2 + $0x4e] sm:$0xff]  ;;  %v4454_v5 = vld [vmem:[#allocation2 + $0x56] sm:$0xff]  ;;  %v4455_v45 = vld [vmem:[#allocation2 + $0x5e] sm:$0xff] }
 0x37a   : > { %v4456_v25 = vld [vmem:[#allocation2 + $0x66] sm:$0xff]  ;;  %v4457_v17 = vld [vmem:[#allocation2 + $0x6e] sm:$0xff]  ;;  %v4458_v11 = vld [vmem:[#allocation2 + $0x76] sm:$0xff] }
 0x37b   : > { %8551 = vmatmul.mubr.msk.f32.gmra.mrb[18].mxu0 %vm626_vm0, %v4047_v41  ;;  %v3537_v36 = vadd.f32 %v3521_v10, %v3501_v4  ;;  %v4459_v6 = vld [vmem:[#allocation2 + $0x7e] sm:$0xff]  ;;  %v4460_v10 = vld [vmem:[#allocation2 + $0x86] sm:$0x1]  ;;  %v7730_v4 = vld [vmem:[%s11460_s9 + $0x90] sm:$0xff] }
 0x37c   : > { %8553 = vmatprep.mubr.msk.f32.mxu0 %vm626_vm0, %v4048_v46  ;;  %v7731_v41 = vld [vmem:[%s11460_s9 + $0x98] sm:$0xff]  ;;  %v4685_v26 = vld [vmem:[#allocation2 + $0x67] sm:$0xff]  ;;  %v4686_v7 = vld [vmem:[#allocation2 + $0x6f] sm:$0xff] }
 0x37d   : > { %v3634_v19 = vmul.f32 %v11683_v15, %v3537_v36  ;;  %v4675_v46 = vld [vmem:[#allocation2 + $0x17] sm:$0xff]  ;;  %v8942_v36 = vpack.c.bf16 %v7731_v41, %v7730_v4 }
 0x37e   : > { %v7751_v33 = vld [vmem:[%s11460_s9 + $0xb8] sm:$0xff]  ;;  %v4908_v3 = vld [vmem:[#allocation2 + $0x30] sm:$0xff] }
 0x37f   : > { %8554 = vmatmul.mubr.msk.f32.gmra.mrb[20].mxu0 %vm626_vm0, %v4049_v18  ;;  %v3746_v54 = vadd.f32 %v11705_v56, %v3634_v19  ;;  %v4676_v19 = vld [vmem:[#allocation2 + $0x1f] sm:$0xff]  ;;  %v4677_v56 = vld [vmem:[#allocation2 + $0x27] sm:$0xff]  ;;  %v4912_v20 = vld [vmem:[#allocation2 + $0x50] sm:$0xff] }
 0x380   : > { %8556 = vmatprep.mubr.msk.f32.mxu0 %vm626_vm0, %v4050_v22  ;;  %v7748_v18 = vld [vmem:[%s11460_s9 + $0xa0] sm:$0xff]  ;;  %v7749_v22 = vld [vmem:[%s11460_s9 + $0xa8] sm:$0xff]  ;;  %v4905_v31 = vld [vmem:[#allocation2 + $0x18] sm:$0xff] }
 0x381   : > { %v3769_v63 = vadd.f32 %v10486_v21, %v3746_v54  ;;  %v8946_v54 = vpack.c.bf16 %v7749_v22, %v7748_v18  ;;  %v4909_v14 = vld [vmem:[#allocation2 + $0x38] sm:$0xff] }
 0x382   : > { %v4913_v30 = vld [vmem:[#allocation2 + $0x58] sm:$0xff] }
 0x383   : > { %8557 = vmatmul.mubr.msk.f32.gmra.mrb[22].mxu0 %vm626_vm0, %v4051_v50  ;;  %vm3785_vm4 = vcmp.ge.f32.partialorder %v3769_v63, 0.0  ;;  %v3801_v12 = vmul.f32 0.2, %v3769_v63  ;;  %v4679_v50 = vld [vmem:[#allocation2 + $0x37] sm:$0xff] }
 0x384   : > { %8559 = vmatprep.mubr.msk.f32.mxu0 %vm626_vm0, %v4052_v40  ;;  %v4680_v40 = vld [vmem:[#allocation2 + $0x3f] sm:$0xff]  ;;  %v5138_v41 = vld [vmem:[#allocation2 + $0x31] sm:$0xff] }
 0x385   : > { %v3817_v15 = vsel %vm3785_vm4, %v3769_v63, %v3801_v12  ;;  %v4678_v63 = vld [vmem:[#allocation2 + $0x2f] sm:$0xff]  ;;  %v4681_v12 = vld [vmem:[#allocation2 + $0x47] sm:$0xff]  ;;  %v5143_v22 = vld [vmem:[#allocation2 + $0x59] sm:$0xff] }
 0x386   : > { %v3833_v21 = vmul.f32 1.4142135, %v3817_v15  ;;  %v4683_v15 = vld [vmem:[#allocation2 + $0x57] sm:$0xff] }
 0x387   : > { %8560 = vmatmul.mubr.msk.f32.gmra.mrb[24].mxu0 %vm626_vm0, %v4053_v13  ;;  %v4684_v13 = vld [vmem:[#allocation2 + $0x5f] sm:$0xff]  ;;  %v5142_v18 = vld [vmem:[#allocation2 + $0x51] sm:$0xff] }
 0x388   : > { %8570 = vmatprep.mubr.msk.f32.mxu0 %vm626_vm0, %v4018_v34  ;;  %v7651_v43 = vclamps-f32 %v3833_v21, 256.0  ;;  %v4682_v34 = vld [vmem:[#allocation2 + $0x4f] sm:$0xff]  ;;  %v4687_v21 = vld [vmem:[#allocation2 + $0x77] sm:$0xff] }
 0x38a   : > { %v3977_v42 = vmul.f32 %v7651_v43, %v3960_v38  ;;  %v4688_v43 = vld [vmem:[#allocation2 + $0x7f] sm:$0xff]  ;;  %v4689_v38 = vld [vmem:[#allocation2 + $0x87] sm:$0xff] }
 0x38b   : > { %8571 = vmatmul.mubr.msk.f32.vlgmr.msra.gmra.mrb[10].mxu0 %vm626_vm0, %v4019_v23  ;;  %v7750_v23 = vld [vmem:[%s11460_s9 + $0xb0] sm:$0xff] }
 0x38c   : > { %8925 = vmatpush3.bf16.msra.mxu0 %v10601_v2  ;;  %8573 = vmatprep.mubr.msk.f32.mxu0 %vm626_vm0, %v4020_v60  ;;  %v4001_v8 = vmul.f32 %v10460_v57, %v3977_v42  ;;  %v10650_v57 = vld [vmem:[#allocation2 + $0x3c] sm:$0xff]  ;;  %v4033_v2 = vld [vmem:[#allocation2 + $0x84] sm:$0x1]  ;;  %v8950_v42 = vpack.c.bf16 %v7751_v33, %v7750_v23 }
 0x38d   : > { %8927 = vmatprep.subr.bf16.mxu0 %v8926_v61  ;;  %v4906_v60 = vld [vmem:[#allocation2 + $0x20] sm:$0xff] }
 0x38e   : > { %4017 = vst.msk [vmem:[#allocation2 + $0x90] sm:$0x1] %vm11706_vm5, %v4001_v8  ;;  %v7768_v8 = vld [vmem:[%s11460_s9 + $0xc0] sm:$0xff] }
 0x38f   : > { %8574 = vmatmul.mubr.msk.f32.gmra.mrb[12].mxu0 %vm626_vm0, %v10637_v52  ;;  %v5368_v33 = vld [vmem:[#allocation2 + $0x3a] sm:$0xff] }
 0x390   : > { %8576 = vmatprep.mubr.msk.f32.mxu0 %vm626_vm0, %v10642_v29  ;;  %8929 = vmatpush3.bf16.msra.mxu0 %v8926_v61  ;;  %v4690_v61 = vld [vmem:[#allocation2 + $0x8f] sm:$0x1] }
 0x391   : > { %8931 = vmatprep.subr.bf16.mxu0 %v8930_v9 }
 0x393   : > { %8577 = vmatmul.mubr.msk.f32.gmra.mrb[14].mxu0 %vm626_vm0, %v10646_v44 }
 0x394   : > { %8579 = vmatprep.mubr.msk.f32.mxu0 %vm626_vm0, %v10650_v57 }
 0x397   : > { %8580 = vmatmul.mubr.msk.f32.gmra.mrb[16].mxu0 %vm626_vm0, %v10654_v1 }
 0x398   : > { %8582 = vmatprep.mubr.msk.f32.mxu0 %vm626_vm0, %v10658_v0 }
 0x39b   : > { %8583 = vmatmul.mubr.msk.f32.gmra.mrb[18].mxu0 %vm626_vm0, %v10662_v62 }
 0x39c   : > { %8585 = vmatprep.mubr.msk.f32.mxu0 %vm626_vm0, %v10666_v48 }
 0x39f   : > { %8586 = vmatmul.mubr.msk.f32.gmra.mrb[20].mxu0 %vm626_vm0, %v10670_v37 }
 0x3a0   : > { %8588 = vmatprep.mubr.msk.f32.mxu0 %vm626_vm0, %v10674_v16 }
 0x3a3   : > { %8589 = vmatmul.mubr.msk.f32.gmra.mrb[22].mxu0 %vm626_vm0, %v10678_v35 }
 0x3a4   : > { %8591 = vmatprep.mubr.msk.f32.mxu0 %vm626_vm0, %v10682_v39 }
 0x3a7   : > { %8592 = vmatmul.mubr.msk.f32.gmra.mrb[24].mxu0 %vm626_vm0, %v4033_v2 }
 0x3a8   : > { %8602 = vmatprep.mubr.msk.f32.mxu0 %vm626_vm0, %v4445_v28  ;;  %v4907_v28 = vld [vmem:[#allocation2 + $0x28] sm:$0xff] }
 0x3ab   : > { %8603 = vmatmul.mubr.msk.f32.vlgmr.msra.gmra.mrb[10].mxu0 %vm626_vm0, %v4446_v32  ;;  %v4911_v32 = vld [vmem:[#allocation2 + $0x48] sm:$0xff] }
 0x3ac   : > { %8933 = vmatpush3.bf16.msra.mxu0 %v8930_v9  ;;  %8605 = vmatprep.mubr.msk.f32.mxu0 %vm626_vm0, %v4447_v53  ;;  %v7769_v9 = vld [vmem:[%s11460_s9 + $0xc8] sm:$0xff]  ;;  %v4914_v53 = vld [vmem:[#allocation2 + $0x60] sm:$0xff] }
 0x3ad   : > { %8935 = vmatprep.subr.bf16.mxu0 %v8934_v27  ;;  %v8954_v2 = vpack.c.bf16 %v7769_v9, %v7768_v8  ;;  %v5372_v8 = vld [vmem:[#allocation2 + $0x5a] sm:$0xff]  ;;  %v5373_v9 = vld [vmem:[#allocation2 + $0x62] sm:$0xff] }
 0x3af   : > { %8606 = vmatmul.mubr.msk.f32.gmra.mrb[12].mxu0 %vm626_vm0, %v4448_v55  ;;  %v4916_v55 = vld [vmem:[#allocation2 + $0x70] sm:$0xff] }
 0x3b0   : > { %8608 = vmatprep.mubr.msk.f32.mxu0 %vm626_vm0, %v4449_v58  ;;  %8937 = vmatpush3.bf16.msra.mxu0 %v8934_v27  ;;  %v4910_v27 = vld [vmem:[#allocation2 + $0x40] sm:$0xff]  ;;  %v4917_v58 = vld [vmem:[#allocation2 + $0x78] sm:$0xff] }
 0x3b1   : > { %8939 = vmatprep.subr.bf16.mxu0 %v8938_v59 }
 0x3b3   : > { %8609 = vmatmul.mubr.msk.f32.gmra.mrb[14].mxu0 %vm626_vm0, %v4450_v47  ;;  %v4918_v47 = vld [vmem:[#allocation2 + $0x80] sm:$0xff] }
 0x3b4   : > { %8611 = vmatprep.mubr.msk.f32.mxu0 %vm626_vm0, %v4451_v49  ;;  %v4919_v49 = vld [vmem:[#allocation2 + $0x88] sm:$0xff] }
 0x3b7   : > { %8612 = vmatmul.mubr.msk.f32.gmra.mrb[16].mxu0 %vm626_vm0, %v4452_v24  ;;  %v4920_v24 = vld [vmem:[#allocation2 + $0x90] sm:$0x1] }
 0x3b8   : > { %8614 = vmatprep.mubr.msk.f32.mxu0 %vm626_vm0, %v4453_v51  ;;  %v7770_v51 = vld [vmem:[%s11460_s9 + $0xd0] sm:$0xff] }
 0x3bb   : > { %8615 = vmatmul.mubr.msk.f32.gmra.mrb[18].mxu0 %vm626_vm0, %v4454_v5  ;;  %v7771_v5 = vld [vmem:[%s11460_s9 + $0xd8] sm:$0xff] }
 0x3bc   : > { %8617 = vmatprep.mubr.msk.f32.mxu0 %vm626_vm0, %v4455_v45  ;;  %v5135_v45 = vld [vmem:[#allocation2 + $0x19] sm:$0xff] }
 0x3bf   : > { %8618 = vmatmul.mubr.msk.f32.gmra.mrb[20].mxu0 %vm626_vm0, %v4456_v25  ;;  %v8958_v25 = vpack.c.bf16 %v7771_v5, %v7770_v51  ;;  %v5600_v51 = vld [vmem:[#allocation2 + $0x4b] sm:$0xff]  ;;  %v5601_v5 = vld [vmem:[#allocation2 + $0x53] sm:$0xff] }
 0x3c0   : > { %8620 = vmatprep.mubr.msk.f32.mxu0 %vm626_vm0, %v4457_v17  ;;  %v5136_v17 = vld [vmem:[#allocation2 + $0x21] sm:$0xff] }
 0x3c3   : > { %8621 = vmatmul.mubr.msk.f32.gmra.mrb[22].mxu0 %vm626_vm0, %v4458_v11  ;;  %v7788_v11 = vld [vmem:[%s11460_s9 + $0xe0] sm:$0xff] }
 0x3c4   : > { %8623 = vmatprep.mubr.msk.f32.mxu0 %vm626_vm0, %v4459_v6  ;;  %v7789_v6 = vld [vmem:[%s11460_s9 + $0xe8] sm:$0xff] }
 0x3c5   : > { %v8962_v4 = vpack.c.bf16 %v7789_v6, %v7788_v11  ;;  %v5605_v11 = vld [vmem:[#allocation2 + $0x73] sm:$0xff]  ;;  %v5606_v6 = vld [vmem:[#allocation2 + $0x7b] sm:$0xff] }
 0x3c7   : > { %8624 = vmatmul.mubr.msk.f32.gmra.mrb[24].mxu0 %vm626_vm0, %v4460_v10  ;;  %v5137_v10 = vld [vmem:[#allocation2 + $0x29] sm:$0xff] }
 0x3c8   : > { %8634 = vmatprep.mubr.msk.f32.mxu0 %vm626_vm0, %v4675_v46  ;;  %v5139_v46 = vld [vmem:[#allocation2 + $0x39] sm:$0xff] }
 0x3cb   : > { %8635 = vmatmul.mubr.msk.f32.vlgmr.msra.gmra.mrb[10].mxu0 %vm626_vm0, %v4676_v19  ;;  %v5141_v19 = vld [vmem:[#allocation2 + $0x49] sm:$0xff] }
 0x3cc   : > { %8941 = vmatpush3.bf16.msra.mxu0 %v8938_v59  ;;  %8637 = vmatprep.mubr.msk.f32.mxu0 %vm626_vm0, %v4677_v56  ;;  %v4915_v59 = vld [vmem:[#allocation2 + $0x68] sm:$0xff] }
 0x3cd   : > { %8943 = vmatprep.subr.bf16.mxu0 %v8942_v36  ;;  %v5144_v56 = vld [vmem:[#allocation2 + $0x61] sm:$0xff] }
 0x3cf   : > { %8638 = vmatmul.mubr.msk.f32.gmra.mrb[12].mxu0 %vm626_vm0, %v4678_v63  ;;  %v5146_v63 = vld [vmem:[#allocation2 + $0x71] sm:$0xff] }
 0x3d0   : > { %8640 = vmatprep.mubr.msk.f32.mxu0 %vm626_vm0, %v4679_v50  ;;  %8945 = vmatpush3.bf16.msra.mxu0 %v8942_v36  ;;  %v5140_v36 = vld [vmem:[#allocation2 + $0x41] sm:$0xff]  ;;  %v5147_v50 = vld [vmem:[#allocation2 + $0x79] sm:$0xff] }
 0x3d1   : > { %8947 = vmatprep.subr.bf16.mxu0 %v8946_v54 }
 0x3d3   : > { %8641 = vmatmul.mubr.msk.f32.gmra.mrb[14].mxu0 %vm626_vm0, %v4680_v40  ;;  %v5148_v40 = vld [vmem:[#allocation2 + $0x81] sm:$0xff] }
 0x3d4   : > { %8643 = vmatprep.mubr.msk.f32.mxu0 %vm626_vm0, %v4681_v12  ;;  %v5149_v12 = vld [vmem:[#allocation2 + $0x89] sm:$0xff] }
 0x3d7   : > { %8644 = vmatmul.mubr.msk.f32.gmra.mrb[16].mxu0 %vm626_vm0, %v4682_v34  ;;  %v5150_v34 = vld [vmem:[#allocation2 + $0x91] sm:$0x1] }
 0x3d8   : > { %8646 = vmatprep.mubr.msk.f32.mxu0 %vm626_vm0, %v4683_v15  ;;  %v7790_v15 = vld [vmem:[%s11460_s9 + $0xf0] sm:$0xff] }
 0x3db   : > { %8647 = vmatmul.mubr.msk.f32.gmra.mrb[18].mxu0 %vm626_vm0, %v4684_v13  ;;  %v7791_v13 = vld [vmem:[%s11460_s9 + $0xf8] sm:$0xff] }
 0x3dc   : > { %8649 = vmatprep.mubr.msk.f32.mxu0 %vm626_vm0, %v4685_v26  ;;  %v5365_v26 = vld [vmem:[#allocation2 + $0x22] sm:$0xff] }
 0x3df   : > { %8650 = vmatmul.mubr.msk.f32.gmra.mrb[20].mxu0 %vm626_vm0, %v4686_v7  ;;  %v8966_v7 = vpack.c.bf16 %v7791_v13, %v7790_v15 }
 0x3e0   : > { %8652 = vmatprep.mubr.msk.f32.mxu0 %vm626_vm0, %v4687_v21  ;;  %v5366_v21 = vld [vmem:[#allocation2 + $0x2a] sm:$0xff] }
 0x3e3   : > { %8653 = vmatmul.mubr.msk.f32.gmra.mrb[22].mxu0 %vm626_vm0, %v4688_v43  ;;  %v7808_v43 = vld [vmem:[%s11460_s9 + $0x100] sm:$0xff] }
 0x3e4   : > { %8655 = vmatprep.mubr.msk.f32.mxu0 %vm626_vm0, %v4689_v38  ;;  %v7809_v38 = vld [vmem:[%s11460_s9 + $0x108] sm:$0xff] }
 0x3e5   : > { %v8970_v23 = vpack.c.bf16 %v7809_v38, %v7808_v43 }
 0x3e7   : > { %8656 = vmatmul.mubr.msk.f32.gmra.mrb[24].mxu0 %vm626_vm0, %v4690_v61  ;;  %v5367_v61 = vld [vmem:[#allocation2 + $0x32] sm:$0xff] }
 0x3e8   : > { %8666 = vmatprep.mubr.msk.f32.mxu0 %vm626_vm0, %v4905_v31  ;;  %v5369_v31 = vld [vmem:[#allocation2 + $0x42] sm:$0xff] }
 0x3eb   : > { %8667 = vmatmul.mubr.msk.f32.vlgmr.msra.gmra.mrb[10].mxu0 %vm626_vm0, %v4906_v60  ;;  %v5371_v60 = vld [vmem:[#allocation2 + $0x52] sm:$0xff] }
 0x3ec   : > { %8949 = vmatpush3.bf16.msra.mxu0 %v8946_v54  ;;  %8669 = vmatprep.mubr.msk.f32.mxu0 %vm626_vm0, %v4907_v28  ;;  %v5145_v54 = vld [vmem:[#allocation2 + $0x69] sm:$0xff] }
 0x3ed   : > { %8951 = vmatprep.subr.bf16.mxu0 %v8950_v42  ;;  %v5374_v28 = vld [vmem:[#allocation2 + $0x6a] sm:$0xff] }
 0x3ef   : > { %8670 = vmatmul.mubr.msk.f32.gmra.mrb[12].mxu0 %vm626_vm0, %v4908_v3  ;;  %v5376_v3 = vld [vmem:[#allocation2 + $0x7a] sm:$0xff] }
 0x3f0   : > { %8672 = vmatprep.mubr.msk.f32.mxu0 %vm626_vm0, %v4909_v14  ;;  %8953 = vmatpush3.bf16.msra.mxu0 %v8950_v42  ;;  %v5370_v42 = vld [vmem:[#allocation2 + $0x4a] sm:$0xff]  ;;  %v5377_v14 = vld [vmem:[#allocation2 + $0x82] sm:$0xff] }
 0x3f1   : > { %8955 = vmatprep.subr.bf16.mxu0 %v8954_v2 }
 0x3f3   : > { %8673 = vmatmul.mubr.msk.f32.gmra.mrb[14].mxu0 %vm626_vm0, %v4910_v27  ;;  %v5379_v27 = vld [vmem:[#allocation2 + $0x92] sm:$0xff] }
 0x3f4   : > { %8675 = vmatprep.mubr.msk.f32.mxu0 %vm626_vm0, %v4911_v32  ;;  %v5378_v32 = vld [vmem:[#allocation2 + $0x8a] sm:$0xff] }
 0x3f7   : > { %8676 = vmatmul.mubr.msk.f32.gmra.mrb[16].mxu0 %vm626_vm0, %v4912_v20  ;;  %v5380_v20 = vld [vmem:[#allocation2 + $0x9a] sm:$0x1] }
 0x3f8   : > { %8678 = vmatprep.mubr.msk.f32.mxu0 %vm626_vm0, %v4913_v30  ;;  %v7810_v30 = vld [vmem:[%s11460_s9 + $0x110] sm:$0xff] }
 0x3fb   : > { %8679 = vmatmul.mubr.msk.f32.gmra.mrb[18].mxu0 %vm626_vm0, %v4914_v53  ;;  %v7811_v53 = vld [vmem:[%s11460_s9 + $0x118] sm:$0xff] }
 0x3fc   : > { %8681 = vmatprep.mubr.msk.f32.mxu0 %vm626_vm0, %v4915_v59  ;;  %v5595_v59 = vld [vmem:[#allocation2 + $0x23] sm:$0xff] }
 0x3ff   : > { %8682 = vmatmul.mubr.msk.f32.gmra.mrb[20].mxu0 %vm626_vm0, %v4916_v55  ;;  %v8974_v55 = vpack.c.bf16 %v7811_v53, %v7810_v30 }
 0x400   : > { %8684 = vmatprep.mubr.msk.f32.mxu0 %vm626_vm0, %v4917_v58  ;;  %v5596_v58 = vld [vmem:[#allocation2 + $0x2b] sm:$0xff] }
 0x403   : > { %8685 = vmatmul.mubr.msk.f32.gmra.mrb[22].mxu0 %vm626_vm0, %v4918_v47  ;;  %v5597_v47 = vld [vmem:[#allocation2 + $0x33] sm:$0xff] }
 0x404   : > { %8687 = vmatprep.mubr.msk.f32.mxu0 %vm626_vm0, %v4919_v49  ;;  %v5598_v49 = vld [vmem:[#allocation2 + $0x3b] sm:$0xff] }
 0x407   : > { %8688 = vmatmul.mubr.msk.f32.gmra.mrb[24].mxu0 %vm626_vm0, %v4920_v24  ;;  %v5599_v24 = vld [vmem:[#allocation2 + $0x43] sm:$0xff] }
 0x408   : > { %8698 = vmatprep.mubr.msk.f32.mxu0 %vm626_vm0, %v5135_v45  ;;  %v5602_v45 = vld [vmem:[#allocation2 + $0x5b] sm:$0xff] }
 0x40b   : > { %8699 = vmatmul.mubr.msk.f32.vlgmr.msra.gmra.mrb[10].mxu0 %vm626_vm0, %v5136_v17  ;;  %v5604_v17 = vld [vmem:[#allocation2 + $0x6b] sm:$0xff] }
 0x40c   : > { %8957 = vmatpush3.bf16.msra.mxu0 %v8954_v2  ;;  %8701 = vmatprep.mubr.msk.f32.mxu0 %vm626_vm0, %v5137_v10  ;;  %v5375_v2 = vld [vmem:[#allocation2 + $0x72] sm:$0xff]  ;;  %v5607_v10 = vld [vmem:[#allocation2 + $0x83] sm:$0xff] }
 0x40d   : > { %8959 = vmatprep.subr.bf16.mxu0 %v8958_v25 }
 0x40f   : > { %8702 = vmatmul.mubr.msk.f32.gmra.mrb[12].mxu0 %vm626_vm0, %v5138_v41  ;;  %v5608_v41 = vld [vmem:[#allocation2 + $0x8b] sm:$0xff] }
 0x410   : > { %8704 = vmatprep.mubr.msk.f32.mxu0 %vm626_vm0, %v5139_v46  ;;  %8961 = vmatpush3.bf16.msra.mxu0 %v8958_v25  ;;  %v5603_v25 = vld [vmem:[#allocation2 + $0x63] sm:$0xff]  ;;  %v5610_v46 = vld [vmem:[#allocation2 + $0x9b] sm:$0x1] }
 0x411   : > { %8963 = vmatprep.subr.bf16.mxu0 %v8962_v4 }
 0x413   : > { %8705 = vmatmul.mubr.msk.f32.gmra.mrb[14].mxu0 %vm626_vm0, %v5140_v36  ;;  %v6174_v36 = vpop.permute.xlu0 %6173 }
 0x414   : > { %8707 = vmatprep.mubr.msk.f32.mxu0 %vm626_vm0, %v5141_v19 }
 0x417   : > { %8708 = vmatmul.mubr.msk.f32.gmra.mrb[16].mxu0 %vm626_vm0, %v5142_v18  ;;  %v6184_v19 = vpop.permute.xlu0 %6183  ;;  %v6179_v18 = vpop.permute.xlu1 %6178 }
 0x418   : > { %8710 = vmatprep.mubr.msk.f32.mxu0 %vm626_vm0, %v5143_v22 }
 0x41b   : > { %8711 = vmatmul.mubr.msk.f32.gmra.mrb[18].mxu0 %vm626_vm0, %v5144_v56  ;;  %v6194_v22 = vpop.permute.xlu0 %6193 }
 0x41c   : > { %8713 = vmatprep.mubr.msk.f32.mxu0 %vm626_vm0, %v5145_v54  ;;  %v6189_v54 = vpop.permute.xlu1 %6188 }
 0x41f   : > { %8714 = vmatmul.mubr.msk.f32.gmra.mrb[20].mxu0 %vm626_vm0, %v5146_v63  ;;  %v11708_v63 = vld [vmem:[#allocation3_spill] sm:$0xff] }
 0x420   : > { %8716 = vmatprep.mubr.msk.f32.mxu0 %vm626_vm0, %v5147_v50  ;;  %v6199_v13 = vpop.permute.xlu1 %6198 }
 0x423   : > { %8717 = vmatmul.mubr.msk.f32.gmra.mrb[22].mxu0 %vm626_vm0, %v5148_v40 }
 0x424   : > { %8719 = vmatprep.mubr.msk.f32.mxu0 %vm626_vm0, %v5149_v12  ;;  %v10893_v12 = vpop.permute.xlu0 %6203 }
 0x427   : > { %8720 = vmatmul.mubr.msk.f32.gmra.mrb[24].mxu0 %vm626_vm0, %v5150_v34 }
 0x428   : > { %8730 = vmatprep.mubr.msk.f32.mxu0 %vm626_vm0, %v5365_v26  ;;  %v10899_v26 = vld [vmem:[%s11462_s11] ss:$0 sm:$0xff] }
 0x42b   : > { %8731 = vmatmul.mubr.msk.f32.vlgmr.msra.gmra.mrb[10].mxu0 %vm626_vm0, %v5366_v21 }
 0x42c   : > { %8965 = vmatpush3.bf16.msra.mxu0 %v8962_v4  ;;  %8733 = vmatprep.mubr.msk.f32.mxu0 %vm626_vm0, %v5367_v61  ;;  %v5609_v4 = vld [vmem:[#allocation2 + $0x93] sm:$0xff] }
 0x42d   : > { %8967 = vmatprep.subr.bf16.mxu0 %v8966_v7 }
 0x42f   : > { %8734 = vmatmul.mubr.msk.f32.gmra.mrb[12].mxu0 %vm626_vm0, %v5368_v33 }
 0x430   : > { %8736 = vmatprep.mubr.msk.f32.mxu0 %vm626_vm0, %v5369_v31  ;;  %8969 = vmatpush3.bf16.msra.mxu0 %v8966_v7 }
 0x431   : > { %8971 = vmatprep.subr.bf16.mxu0 %v8970_v23 }
 0x433   : > { %8737 = vmatmul.mubr.msk.f32.gmra.mrb[14].mxu0 %vm626_vm0, %v5370_v42 }
 0x434   : > { %8739 = vmatprep.mubr.msk.f32.mxu0 %vm626_vm0, %v5371_v60  ;;  %v10906_v60 = vpop.permute.xlu0 %6213 }
 0x437   : > { %8740 = vmatmul.mubr.msk.f32.gmra.mrb[16].mxu0 %vm626_vm0, %v5372_v8 }
 0x438   : > { %8742 = vmatprep.mubr.msk.f32.mxu0 %vm626_vm0, %v5373_v9 }
 0x43b   : > { %8743 = vmatmul.mubr.msk.f32.gmra.mrb[18].mxu0 %vm626_vm0, %v5374_v28  ;;  %v6209_v28 = vpop.permute.xlu1 %6208 }
 0x43c   : > { %8745 = vmatprep.mubr.msk.f32.mxu0 %vm626_vm0, %v5375_v2 }
 0x43f   : > { %8746 = vmatmul.mubr.msk.f32.gmra.mrb[20].mxu0 %vm626_vm0, %v5376_v3 }
 0x440   : > { %8748 = vmatprep.mubr.msk.f32.mxu0 %vm626_vm0, %v5377_v14 }
 0x443   : > { %8749 = vmatmul.mubr.msk.f32.gmra.mrb[22].mxu0 %vm626_vm0, %v5378_v32 }
 0x444   : > { %8751 = vmatprep.mubr.msk.f32.mxu0 %vm626_vm0, %v5379_v27 }
 0x447   : > { %8752 = vmatmul.mubr.msk.f32.gmra.mrb[24].mxu0 %vm626_vm0, %v5380_v20 }
 0x448   : > { %8762 = vmatprep.mubr.msk.f32.mxu0 %vm626_vm0, %v5595_v59 }
 0x44b   : > { %8763 = vmatmul.mubr.msk.f32.vlgmr.msra.gmra.mrb[10].mxu0 %vm626_vm0, %v5596_v58 }
 0x44c   : > { %8973 = vmatpush3.bf16.msra.mxu0 %v8970_v23  ;;  %8765 = vmatprep.mubr.msk.f32.mxu0 %vm626_vm0, %v5597_v47 }
 0x44d   : > { %8975 = vmatprep.subr.bf16.mxu0 %v8974_v55 }
 0x44f   : > { %8766 = vmatmul.mubr.msk.f32.gmra.mrb[12].mxu0 %vm626_vm0, %v5598_v49 }
 0x450   : > { %8768 = vmatprep.mubr.msk.f32.mxu0 %vm626_vm0, %v5599_v24  ;;  %8977 = vmatpush3.bf16.msra.mxu0 %v8974_v55 }
 0x453   : > { %8769 = vmatmul.mubr.msk.f32.gmra.mrb[14].mxu0 %vm626_vm0, %v5600_v51 }
 0x454   : > { %8771 = vmatprep.mubr.msk.f32.mxu0 %vm626_vm0, %v5601_v5 }
 0x457   : > { %8772 = vmatmul.mubr.msk.f32.gmra.mrb[16].mxu0 %vm626_vm0, %v5602_v45 }
 0x458   : > { %8774 = vmatprep.mubr.msk.f32.mxu0 %vm626_vm0, %v5603_v25 }
 0x45b   : > { %8775 = vmatmul.mubr.msk.f32.gmra.mrb[18].mxu0 %vm626_vm0, %v5604_v17  ;;  %v10918_v17 = vpop.permute.xlu0 %6407 }
 0x45c   : > { %8777 = vmatprep.mubr.msk.f32.mxu0 %vm626_vm0, %v5605_v11 }
 0x45f   : > { %8778 = vmatmul.mubr.msk.f32.gmra.mrb[20].mxu0 %vm626_vm0, %v5606_v6 }
 0x460   : > { %8780 = vmatprep.mubr.msk.f32.mxu0 %vm626_vm0, %v5607_v10 }
 0x463   : > { %8781 = vmatmul.mubr.msk.f32.gmra.mrb[22].mxu0 %vm626_vm0, %v5608_v41 }
 0x464   : > { %8783 = vmatprep.mubr.msk.f32.mxu0 %vm626_vm0, %v5609_v4 }
 0x467   : > { %8784 = vmatmul.mubr.msk.f32.gmra.mrb[24].mxu0 %vm626_vm0, %v5610_v46  ;;  %v6219_v46 = vpop.permute.xlu1 %6218 }
 0x468   : > { %8794 = vmatprep.mubr.msk.f32.mxu0 %vm626_vm0, %v10637_v52  ;;  %v5837_v52 = vld [vmem:[#allocation2 + $0x84] sm:$0xff] }
 0x46b   : > { %8795 = vmatmul.mubr.msk.f32.vlgmr.msra.gmra.mrb[10].mxu0 %vm626_vm0, %v10642_v29  ;;  %v5839_v29 = vld [vmem:[#allocation2 + $0x94] sm:$0xff] }
 0x46c   : > { %8797 = vmatprep.mubr.msk.f32.mxu0 %vm626_vm0, %v10646_v44  ;;  %v5838_v44 = vld [vmem:[#allocation2 + $0x8c] sm:$0xff] }
 0x46f   : > { %8798 = vmatmul.mubr.msk.f32.gmra.mrb[12].mxu0 %vm626_vm0, %v10650_v57  ;;  %v5840_v57 = vld [vmem:[#allocation2 + $0x9c] sm:$0x1] }
 0x470   : > { %8800 = vmatprep.mubr.msk.f32.mxu0 %vm626_vm0, %v10654_v1  ;;  %v6426_v1 = vld [vmem:[%s11464_s13] sm:$0xff] }
 0x473   : > { %8801 = vmatmul.mubr.msk.f32.gmra.mrb[14].mxu0 %vm626_vm0, %v10658_v0  ;;  %v6427_v0 = vld [vmem:[%s11464_s13 + $0x8] sm:$0xff] }
 0x474   : > { %8803 = vmatprep.mubr.msk.f32.mxu0 %vm626_vm0, %v10662_v62  ;;  %v8984_v62 = vpack.c.bf16 %v6427_v0, %v6426_v1 }
 0x476   : > { %8985 = vmatprep.subr.bf16.mxu1 %v8984_v62 }
 0x477   : > { %8804 = vmatmul.mubr.msk.f32.gmra.mrb[16].mxu0 %vm626_vm0, %v10666_v48  ;;  %8987 = vmatpush3.bf16.msra.mxu1 %v8984_v62  ;;  %v6428_v48 = vld [vmem:[%s11464_s13 + $0x10] sm:$0xff] }
 0x478   : > { %8806 = vmatprep.mubr.msk.f32.mxu0 %vm626_vm0, %v10670_v37  ;;  %v6429_v37 = vld [vmem:[%s11464_s13 + $0x18] sm:$0xff] }
 0x47b   : > { %8807 = vmatmul.mubr.msk.f32.gmra.mrb[18].mxu0 %vm626_vm0, %v10674_v16  ;;  %v8988_v16 = vpack.c.bf16 %v6429_v37, %v6428_v48 }
 0x47c   : > { %8809 = vmatprep.mubr.msk.f32.mxu0 %vm626_vm0, %v10678_v35  ;;  %v11707_v35 = vld [vmem:[#allocation55_spill] sm:$0xff] }
 0x47d   : > { %8989 = vmatprep.subr.bf16.mxu1 %v8988_v16 }
 0x47e   : > { %8991 = vmatpush3.bf16.msra.mxu1 %v8988_v16 }
 0x47f   : > { %8810 = vmatmul.mubr.msk.f32.gmra.mrb[20].mxu0 %vm626_vm0, %v10682_v39  ;;  %v6131_v39 = vadd.f32 1e-08, %v11707_v35 }
 0x480   : > { %8812 = vmatprep.mubr.msk.f32.mxu0 %vm626_vm0, %v5837_v52 }
 0x481   : > { %9268 = vrsqrt.f32 %v6131_v39 }
 0x483   : > { %8813 = vmatmul.mubr.msk.f32.gmra.mrb[22].mxu0 %vm626_vm0, %v5838_v44 }
 0x484   : > { %8815 = vmatprep.mubr.msk.f32.mxu0 %vm626_vm0, %v5839_v29 }
 0x487   : > { %8816 = vmatmul.mubr.msk.f32.gmra.mrb[24].mxu0 %vm626_vm0, %v5840_v57 }
 0x48b   : > { %v9269_v56 = vpop.eup %9268 }
 0x48c   : > { %v10891_v50 = vrot.slane %v9269_v56, %v11708_v63  ;;  %v6229_v56 = vpop.permute.xlu0 %6228 }
 0x53e   : > { %v8796_v40 = vpop.f32.mrb[10].mxu0 }
 0x53f   : > { %v6140_v34 = vmul.f32 %v8796_v40, %v10891_v50  ;;  %v5960_v15 = vpop.f32.mrb[11].mxu0 }
 0x540   : > { %v6139_v7 = vmul.f32 %v10891_v50, %v5960_v15 }
 0x541   : > { %v6252_v21 = vadd.f32 %v6179_v18, %v6140_v34 }
 0x542   : > { %v6251_v43 = vadd.f32 %v6174_v36, %v6139_v7  ;;  %v8799_v38 = vpop.f32.mrb[12].mxu0 }
 0x543   : > { %v6275_v61 = vadd.f32 %v10899_v26, %v6252_v21  ;;  %v6142_v23 = vmul.f32 %v8799_v38, %v10891_v50  ;;  %v5970_v33 = vpop.f32.mrb[13].mxu0  ;;  %v6224_v21 = vpop.permute.xlu1 %6223 }
 0x544   : > { %v6274_v31 = vadd.f32 %v10899_v26, %v6251_v43  ;;  %v6141_v42 = vmul.f32 %v10891_v50, %v5970_v33 }
 0x545   : > { %vm6291_vm6 = vcmp.ge.f32.partialorder %v6275_v61, 0.0  ;;  %v6307_v8 = vmul.f32 0.2, %v6275_v61  ;;  %v6254_v9 = vadd.f32 %v6189_v54, %v6142_v23 }
 0x546   : > { %vm6290_vm7 = vcmp.ge.f32.partialorder %v6274_v31, 0.0  ;;  %v6306_v2 = vmul.f32 0.2, %v6274_v31  ;;  %v6253_v3 = vadd.f32 %v6184_v19, %v6141_v42  ;;  %v8802_v14 = vpop.f32.mrb[14].mxu0 }
 0x547   : > { %v6323_v27 = vsel %vm6291_vm6, %v6275_v61, %v6307_v8  ;;  %v6277_v32 = vadd.f32 %v10899_v26, %v6254_v9  ;;  %v6144_v20 = vmul.f32 %v8802_v14, %v10891_v50  ;;  %v5980_v30 = vpop.f32.mrb[15].mxu0 }
 0x548   : > { %v6339_v53 = vmul.f32 1.4142135, %v6323_v27  ;;  %v6322_v59 = vsel %vm6290_vm7, %v6274_v31, %v6306_v2  ;;  %v6276_v55 = vadd.f32 %v10899_v26, %v6253_v3  ;;  %v6143_v58 = vmul.f32 %v10891_v50, %v5980_v30 }
 0x549   : > { %v6338_v47 = vmul.f32 1.4142135, %v6322_v59  ;;  %vm6293_vm8 = vcmp.ge.f32.partialorder %v6277_v32, 0.0  ;;  %v6309_v49 = vmul.f32 0.2, %v6277_v32  ;;  %v6256_v24 = vadd.f32 %v6199_v13, %v6144_v20 }
 0x54a   : > { %v7831_v51 = vclamps-f32 %v6339_v53, 256.0  ;;  %vm6292_vm9 = vcmp.ge.f32.partialorder %v6276_v55, 0.0  ;;  %v6308_v5 = vmul.f32 0.2, %v6276_v55  ;;  %v6255_v45 = vadd.f32 %v6194_v22, %v6143_v58  ;;  %v8805_v25 = vpop.f32.mrb[16].mxu0 }
 0x54b   : > { %v6325_v11 = vsel %vm6293_vm8, %v6277_v32, %v6309_v49  ;;  %v6279_v6 = vadd.f32 %v10899_v26, %v6256_v24  ;;  %v6146_v10 = vmul.f32 %v8805_v25, %v10891_v50  ;;  %v5990_v4 = vpop.f32.mrb[17].mxu0  ;;  %v7830_v41 = vclamps-f32 %v6338_v47, 256.0  ;;  %v6239_v32 = vpop.permute.xlu0 %6238 }
 0x54c   : > { %6387 = vst.msk [vmem:[%s10916_s24 + $0x8] sm:$0xff] %vm626_vm0, %v7831_v51  ;;  %v6411_v52 = vmul.f32 %v7831_v51, %v10918_v17  ;;  %v6341_v29 = vmul.f32 1.4142135, %v6325_v11  ;;  %v6324_v44 = vsel %vm6292_vm9, %v6276_v55, %v6308_v5  ;;  %v6278_v57 = vadd.f32 %v10899_v26, %v6255_v45  ;;  %v6234_v51 = vpop.permute.xlu1 %6233 }
 0x54d   : > { %v6340_v1 = vmul.f32 1.4142135, %v6324_v44  ;;  %vm6295_vm10 = vcmp.ge.f32.partialorder %v6279_v6, 0.0  ;;  %v6311_v0 = vmul.f32 0.2, %v6279_v6  ;;  %v6258_v62 = vadd.f32 %v6209_v28, %v6146_v10  ;;  %6386 = vst.msk [vmem:[%s10916_s24] sm:$0xff] %vm626_vm0, %v7830_v41 }
 0x54e   : > { %vm6294_vm11 = vcmp.ge.f32.partialorder %v6278_v57, 0.0  ;;  %v6310_v48 = vmul.f32 0.2, %v6278_v57  ;;  %v6145_v37 = vmul.f32 %v10891_v50, %v5990_v4  ;;  %v8808_v16 = vpop.f32.mrb[18].mxu0  ;;  %v6410_v35 = vmul.f32 %v7830_v41, %v10918_v17 }
 0x54f   : > { %v6327_v39 = vsel %vm6295_vm10, %v6279_v6, %v6311_v0  ;;  %v6281_v36 = vadd.f32 %v10899_v26, %v6258_v62  ;;  %v6148_v19 = vmul.f32 %v8808_v16, %v10891_v50  ;;  %v6000_v18 = vpop.f32.mrb[19].mxu0  ;;  %v7832_v22 = vclamps-f32 %v6340_v1, 256.0 }
 0x550   : > { %v10932_v54 = vmul.f32 1.4142135, %v6327_v39  ;;  %v6326_v63 = vsel %vm6294_vm11, %v6278_v57, %v6310_v48  ;;  %v6257_v40 = vadd.f32 %v10893_v12, %v6145_v37  ;;  %v6147_v34 = vmul.f32 %v10891_v50, %v6000_v18  ;;  %8837 = vmatprep.mubr.msk.f32.mxu1 %vm626_vm0, %v6410_v35  ;;  %v6249_v48 = vpop.permute.xlu0 %6248 }
 0x551   : > { %v6342_v15 = vmul.f32 1.4142135, %v6326_v63  ;;  %vm6297_vm12 = vcmp.ge.f32.partialorder %v6281_v36, 0.0  ;;  %v6313_v13 = vmul.f32 0.2, %v6281_v36  ;;  %v6260_v7 = vadd.f32 %v6219_v46, %v6148_v19  ;;  %8838 = vmatmul.mubr.msk.f32.vlgmr.msra.gmra.mrb[18].mxu1 %vm626_vm0, %v6411_v52  ;;  %6388 = vst.msk [vmem:[%s10916_s24 + $0x10] sm:$0xff] %vm626_vm0, %v7832_v22 }
 0x552   : > { %v6280_v43 = vadd.f32 %v10899_v26, %v6257_v40  ;;  %v6259_v38 = vadd.f32 %v10906_v60, %v6147_v34  ;;  %v8811_v61 = vpop.f32.mrb[20].mxu0  ;;  %v6412_v12 = vmul.f32 %v7832_v22, %v10918_v17  ;;  %v7833_v23 = vclamps-f32 %v6341_v29, 256.0 }
 0x553   : > { %v6329_v33 = vsel %vm6297_vm12, %v6281_v36, %v6313_v13  ;;  %v6283_v31 = vadd.f32 %v10899_v26, %v6260_v7  ;;  %v6150_v42 = vmul.f32 %v8811_v61, %v10891_v50  ;;  %v6010_v8 = vpop.f32.mrb[21].mxu0  ;;  %v7834_v9 = vclamps-f32 %v6342_v15, 256.0 }
 0x554   : > { %v10945_v28 = vmul.f32 1.4142135, %v6329_v33  ;;  %vm6296_vm13 = vcmp.ge.f32.partialorder %v6280_v43, 0.0  ;;  %v6312_v2 = vmul.f32 0.2, %v6280_v43  ;;  %v6282_v3 = vadd.f32 %v10899_v26, %v6259_v38  ;;  %8840 = vmatprep.mubr.msk.f32.mxu1 %vm626_vm0, %v6412_v12  ;;  %6389 = vst.msk [vmem:[%s10916_s24 + $0x18] sm:$0xff] %vm626_vm0, %v7833_v23 }
 0x555   : > { %vm6299_vm14 = vcmp.ge.f32.partialorder %v6283_v31, 0.0  ;;  %v6315_v60 = vmul.f32 0.2, %v6283_v31  ;;  %v6262_v14 = vadd.f32 %v6229_v56, %v6150_v42  ;;  %v6149_v27 = vmul.f32 %v10891_v50, %v6010_v8  ;;  %6390 = vst.msk [vmem:[%s10916_s24 + $0x20] sm:$0xff] %vm626_vm0, %v7834_v9  ;;  %v6244_v56 = vpop.permute.xlu1 %6243 }
 0x556   : > { %v6328_v20 = vsel %vm6296_vm13, %v6280_v43, %v6312_v2  ;;  %vm6298_vm15 = vcmp.ge.f32.partialorder %v6282_v3, 0.0  ;;  %v6314_v30 = vmul.f32 0.2, %v6282_v3  ;;  %v6413_v53 = vmul.f32 %v7833_v23, %v10918_v17  ;;  %v8814_v59 = vpop.f32.mrb[22].mxu0 }
 0x557   : > { %v6344_v55 = vmul.f32 1.4142135, %v6328_v20  ;;  %v6331_v58 = vsel %vm6299_vm14, %v6283_v31, %v6315_v60  ;;  %v6285_v47 = vadd.f32 %v10899_v26, %v6262_v14  ;;  %v6261_v49 = vadd.f32 %v6224_v21, %v6149_v27  ;;  %v6020_v24 = vpop.f32.mrb[23].mxu0 }
 0x558   : > { %v10956_v5 = vmul.f32 1.4142135, %v6331_v58  ;;  %v6330_v45 = vsel %vm6298_vm15, %v6282_v3, %v6314_v30  ;;  %8841 = vmatmul.mubr.msk.f32.gmra.mrb[20].mxu1 %vm626_vm0, %v6413_v53  ;;  %v6152_v25 = vmul.f32 %v8814_v59, %v10891_v50  ;;  %v6151_v11 = vmul.f32 %v10891_v50, %v6020_v24  ;;  %v6663_v24 = vld [vmem:[%s11021_s0 + $0x8] sm:$0xff] }
 0x559   : > { %v6346_v6 = vmul.f32 1.4142135, %v6330_v45  ;;  %vm6301_vm1 = vcmp.ge.f32.partialorder %v6285_v47, 0.0  ;;  %v6317_v10 = vmul.f32 0.2, %v6285_v47  ;;  %v6284_v4 = vadd.f32 %v10899_v26, %v6261_v49  ;;  %v6666_v45 = vld [vmem:[%s11021_s0 + $0x20] sm:$0xff] }
 0x55a   : > { %v6264_v41 = vadd.f32 %v6239_v32, %v6152_v25  ;;  %v6263_v46 = vadd.f32 %v6234_v51, %v6151_v11  ;;  %v6414_v52 = vmul.f32 %v7834_v9, %v10918_v17  ;;  %v7835_v29 = vclamps-f32 %v10932_v54, 256.0  ;;  %v8817_v44 = vpop.f32.mrb[24].mxu0  ;;  %v6664_v51 = vld [vmem:[%s11021_s0 + $0x10] sm:$0xff]  ;;  %v6667_v25 = vld [vmem:[%s11021_s0 + $0x28] sm:$0xff] }
 0x55b   : > { %v6333_v57 = vsel %vm6301_vm1, %v6285_v47, %v6317_v10  ;;  %vm6300_vm2 = vcmp.ge.f32.partialorder %v6284_v4, 0.0  ;;  %v6316_v1 = vmul.f32 0.2, %v6284_v4  ;;  %v6154_v0 = vmul.f32 %v8817_v44, %v10891_v50  ;;  %v6030_v62 = vpop.f32.mrb[25].mxu0  ;;  %v6668_v11 = vld [vmem:[%s11021_s0 + $0x30] sm:$0xff]  ;;  %v6670_v10 = vld [vmem:[%s11021_s0 + $0x40] sm:$0xff] }
 0x55c   : > { %v6349_v37 = vmul.f32 1.4142135, %v6333_v57  ;;  %v6287_v16 = vadd.f32 %v10899_v26, %v6264_v41  ;;  %v6286_v35 = vadd.f32 %v10899_v26, %v6263_v46  ;;  %8843 = vmatprep.mubr.msk.f32.mxu1 %vm626_vm0, %v6414_v52  ;;  %6391 = vst.msk [vmem:[%s10916_s24 + $0x28] sm:$0xff] %vm626_vm0, %v7835_v29  ;;  %v6415_v39 = vmul.f32 %v7835_v29, %v10918_v17  ;;  %v6672_v41 = vld [vmem:[%s11021_s0 + $0x50] sm:$0xff]  ;;  %v6673_v46 = vld [vmem:[%s11021_s0 + $0x58] sm:$0xff]  ;;  %v6674_v52 = vld [vmem:[%s11021_s0 + $0x60] sm:$0xff] }
 0x55d   : > { %v6332_v36 = vsel %vm6300_vm2, %v6284_v4, %v6316_v1  ;;  %v6266_v19 = vadd.f32 %v6249_v48, %v6154_v0  ;;  %v6153_v18 = vmul.f32 %v10891_v50, %v6030_v62  ;;  %v7836_v22 = vclamps-f32 %v6344_v55, 256.0  ;;  %v6671_v4 = vld [vmem:[%s11021_s0 + $0x48] sm:$0xff]  ;;  %v6676_v44 = vld [vmem:[%s11021_s0 + $0x70] sm:$0xff] }
 0x55e   : > { %v6348_v54 = vmul.f32 1.4142135, %v6332_v36  ;;  %vm6303_vm3 = vcmp.ge.f32.partialorder %v6287_v16, 0.0  ;;  %v6319_v63 = vmul.f32 0.2, %v6287_v16  ;;  %vm6302_vm4 = vcmp.ge.f32.partialorder %v6286_v35, 0.0  ;;  %8844 = vmatmul.mubr.msk.f32.gmra.mrb[22].mxu1 %vm626_vm0, %v6415_v39 }
 0x55f   : > { %v6318_v40 = vmul.f32 0.2, %v6286_v35  ;;  %v6289_v34 = vadd.f32 %v10899_v26, %v6266_v19  ;;  %v6265_v15 = vadd.f32 %v6244_v56, %v6153_v18  ;;  %6392 = vst.msk [vmem:[%s10916_s24 + $0x30] sm:$0xff] %vm626_vm0, %v7836_v22  ;;  %v6416_v13 = vmul.f32 %v7836_v22, %v10918_v17  ;;  %v6675_v29 = vld [vmem:[%s11021_s0 + $0x68] sm:$0xff] }
 0x560   : > { %v6335_v50 = vsel %vm6303_vm3, %v6287_v16, %v6319_v63  ;;  %v7837_v7 = vclamps-f32 %v10945_v28, 256.0  ;;  %v7838_v21 = vclamps-f32 %v6346_v6, 256.0  ;;  %v7839_v43 = vclamps-f32 %v10956_v5, 256.0  ;;  %v6665_v5 = vld [vmem:[%s11021_s0 + $0x18] sm:$0xff] }
 0x561   : > { %v6351_v38 = vmul.f32 1.4142135, %v6335_v50  ;;  %v6334_v61 = vsel %vm6302_vm4, %v6286_v35, %v6318_v40  ;;  %vm6305_vm5 = vcmp.ge.f32.partialorder %v6289_v34, 0.0  ;;  %v6321_v12 = vmul.f32 0.2, %v6289_v34  ;;  %8846 = vmatprep.mubr.msk.f32.mxu1 %vm626_vm0, %v6416_v13  ;;  %v6669_v6 = vld [vmem:[%s11021_s0 + $0x38] sm:$0xff] }
 0x562   : > { %v6350_v23 = vmul.f32 1.4142135, %v6334_v61  ;;  %v6288_v33 = vadd.f32 %v10899_v26, %v6265_v15  ;;  %6393 = vst.msk [vmem:[%s10916_s24 + $0x38] sm:$0xff] %vm626_vm0, %v7837_v7  ;;  %v6417_v31 = vmul.f32 %v7837_v7, %v10918_v17  ;;  %6394 = vst.msk [vmem:[%s10916_s24 + $0x40] sm:$0xff] %vm626_vm0, %v7838_v21  ;;  %v6418_v42 = vmul.f32 %v7838_v21, %v10918_v17  ;;  %v6744_v35 = vld [vmem:[#allocation2 + $0xd] sm:$0xff] }
 0x563   : > { %6395 = vst.msk [vmem:[%s10916_s24 + $0x48] sm:$0xff] %vm626_vm0, %v7839_v43  ;;  %v6337_v8 = vsel %vm6305_vm5, %v6289_v34, %v6321_v12  ;;  %v7840_v9 = vclamps-f32 %v6348_v54, 256.0  ;;  %v7841_v28 = vclamps-f32 %v6349_v37, 256.0  ;;  %v7843_v14 = vclamps-f32 %v6351_v38, 256.0  ;;  %v6696_v37 = vld [vmem:[#allocation2 + $0xc] sm:$0xff] }
 0x564   : > { %v6353_v2 = vmul.f32 1.4142135, %v6337_v8  ;;  %vm6304_vm6 = vcmp.ge.f32.partialorder %v6288_v33, 0.0  ;;  %v6320_v26 = vmul.f32 0.2, %v6288_v33  ;;  %8847 = vmatmul.mubr.msk.f32.gmra.mrb[24].mxu1 %vm626_vm0, %v6417_v31  ;;  %v7842_v3 = vclamps-f32 %v6350_v23, 256.0 }
 0x565   : > { %8849 = vmatprep.mubr.msk.f32.mxu1 %vm626_vm0, %v6418_v42  ;;  %6396 = vst.msk [vmem:[%s10916_s24 + $0x50] sm:$0xff] %vm626_vm0, %v7840_v9  ;;  %v6420_v60 = vmul.f32 %v7840_v9, %v10918_v17  ;;  %6397 = vst.msk [vmem:[%s10916_s24 + $0x58] sm:$0xff] %vm626_vm0, %v7841_v28  ;;  %v6419_v32 = vmul.f32 %v7839_v43, %v10918_v17  ;;  %vm11709_vm7 = vcmask 253952   ;;  %v6421_v55 = vmul.f32 %v7841_v28, %v10918_v17  ;;  %v6792_v40 = vld [vmem:[#allocation2 + $0xe] sm:$0xff] }
 0x566   : > { %v6336_v27 = vsel %vm6304_vm6, %v6288_v33, %v6320_v26  ;;  %6398 = vst.msk [vmem:[%s10916_s24 + $0x60] sm:$0xff] %vm626_vm0, %v7842_v3  ;;  %v7845_v20 = vclamps-f32 %v6353_v2, 256.0  ;;  %6399 = vst.msk [vmem:[%s10916_s24 + $0x68] sm:$0xff] %vm626_vm0, %v7843_v14  ;;  %v6422_v53 = vmul.f32 %v7842_v3, %v10918_v17  ;;  %v6423_v47 = vmul.f32 %v7843_v14, %v10918_v17  ;;  %v6840_v23 = vld [vmem:[#allocation2 + $0xf] sm:$0xff] }
 0x567   : > { %v6352_v30 = vmul.f32 1.4142135, %v6336_v27  ;;  %v6712_v22 = vmul.f32 0.0625, %v6696_v37  ;;  %v6760_v54 = vmul.f32 0.1875, %v6744_v35  ;;  %v6808_v61 = vmul.f32 0.1875, %v6792_v40 }
 0x568   : > { %8850 = vmatmul.mubr.msk.f32.gmra.mrb[26].mxu1 %vm626_vm0, %v6419_v32  ;;  %6401 = vst.msk [vmem:[%s10916_s24 + $0x78] sm:$0x1] %vm11709_vm7, %v7845_v20  ;;  %v6425_v49 = vmul.f32 %v7845_v20, %v10918_v17  ;;  %vm6694_vm8 = vcmask 16384  }
 0x569   : > { %8852 = vmatprep.mubr.msk.f32.mxu1 %vm626_vm0, %v6420_v60  ;;  %v7844_v59 = vclamps-f32 %v6352_v30, 256.0  ;;  %v6776_v43 = vadd.f32 %v6760_v54, %v6712_v22  ;;  %v6856_v60 = vmul.f32 0.0625, %v6840_v23 }
 0x56b   : > { %6400 = vst.msk [vmem:[%s10916_s24 + $0x70] sm:$0xff] %vm626_vm0, %v7844_v59  ;;  %v6424_v58 = vmul.f32 %v7844_v59, %v10918_v17  ;;  %v6662_v17 = vld [vmem:[%s11021_s0] sm:$0xff]  ;;  %v6824_v26 = vadd.f32 %v6808_v61, %v6776_v43 }
 0x56c   : > { %8853 = vmatmul.mubr.msk.f32.gmra.mrb[28].mxu1 %vm626_vm0, %v6421_v55 }
 0x56d   : > { %8855 = vmatprep.mubr.msk.f32.mxu1 %vm626_vm0, %v6422_v53 }
 0x570   : > { %8856 = vmatmul.mubr.msk.f32.gmra.mrb[30].mxu1 %vm626_vm0, %v6423_v47  ;;  %v6872_v47 = vadd.f32 %v6856_v60, %v6824_v26 }
 0x571   : > { %8858 = vmatprep.mubr.msk.f32.mxu1 %vm626_vm0, %v6424_v58 }
 0x574   : > { %8859 = vmatmul.mubr.msk.f32.gmra.mrb[32].mxu1 %vm626_vm0, %v6425_v49  ;;  %vm6678_vm0 = vcmask 23552  }
 0x575   : > { %6679 = vst.msk [vmem:[#allocation2 + $0x18] sm:$0xff] %vm6678_vm0, %v6662_v17  ;;  %6680 = vst.msk [vmem:[#allocation2 + $0x20] sm:$0xff] %vm6678_vm0, %v6663_v24 }
 0x576   : > { %6681 = vst.msk [vmem:[#allocation2 + $0x28] sm:$0xff] %vm6678_vm0, %v6664_v51  ;;  %6682 = vst.msk [vmem:[#allocation2 + $0x30] sm:$0xff] %vm6678_vm0, %v6665_v5 }
 0x577   : > { %6683 = vst.msk [vmem:[#allocation2 + $0x38] sm:$0xff] %vm6678_vm0, %v6666_v45  ;;  %6684 = vst.msk [vmem:[#allocation2 + $0x40] sm:$0xff] %vm6678_vm0, %v6667_v25 }
 0x578   : > { %6685 = vst.msk [vmem:[#allocation2 + $0x48] sm:$0xff] %vm6678_vm0, %v6668_v11  ;;  %6686 = vst.msk [vmem:[#allocation2 + $0x50] sm:$0xff] %vm6678_vm0, %v6669_v6 }
 0x579   : > { %6687 = vst.msk [vmem:[#allocation2 + $0x58] sm:$0xff] %vm6678_vm0, %v6670_v10  ;;  %6688 = vst.msk [vmem:[#allocation2 + $0x60] sm:$0xff] %vm6678_vm0, %v6671_v4 }
 0x57a   : > { %6689 = vst.msk [vmem:[#allocation2 + $0x68] sm:$0xff] %vm6678_vm0, %v6672_v41  ;;  %6690 = vst.msk [vmem:[#allocation2 + $0x70] sm:$0xff] %vm6678_vm0, %v6673_v46 }
 0x57b   : > { %6691 = vst.msk [vmem:[#allocation2 + $0x78] sm:$0xff] %vm6678_vm0, %v6674_v52  ;;  %6692 = vst.msk [vmem:[#allocation2 + $0x80] sm:$0xff] %vm6678_vm0, %v6675_v29 }
 0x57c   : > { %6693 = vst.msk [vmem:[#allocation2 + $0x88] sm:$0xff] %vm6678_vm0, %v6676_v44  ;;  %v6697_v57 = vld [vmem:[#allocation2 + $0x14] sm:$0xff]  ;;  %v6842_v50 = vld [vmem:[#allocation2 + $0x1f] sm:$0xff] }
 0x57d   : > { %v6745_v1 = vld [vmem:[#allocation2 + $0x15] sm:$0xff]  ;;  %v6713_v0 = vmul.f32 0.0625, %v6697_v57  ;;  %v11053_v16 = vld [vmem:[#allocation2 + $0x24] sm:$0xff]  ;;  %v6891_v42 = vmul.f32 0.1875, %v6842_v50  ;;  %v6858_v41 = vmul.f32 0.0625, %v6842_v50  ;;  %v6700_v37 = vld [vmem:[#allocation2 + $0x2c] sm:$0xff] }
 0x57e   : > { %v6761_v62 = vmul.f32 0.1875, %v6745_v1  ;;  %v6793_v48 = vld [vmem:[#allocation2 + $0x16] sm:$0xff]  ;;  %v6747_v39 = vld [vmem:[#allocation2 + $0x25] sm:$0xff]  ;;  %v6715_v56 = vmul.f32 0.0625, %v11053_v16  ;;  %v11079_v35 = vld [vmem:[#allocation2 + $0x2d] sm:$0xff]  ;;  %v6716_v61 = vmul.f32 0.0625, %v6700_v37 }
 0x57f   : > { %v6809_v19 = vmul.f32 0.1875, %v6793_v48  ;;  %v6841_v18 = vld [vmem:[#allocation2 + $0x17] sm:$0xff]  ;;  %v11056_v63 = vmul.f32 0.1875, %v6747_v39  ;;  %v6795_v34 = vld [vmem:[#allocation2 + $0x26] sm:$0xff]  ;;  %v11059_v27 = vld [vmem:[#allocation2 + $0x2f] sm:$0xff] }
 0x580   : > { %v6777_v36 = vadd.f32 %v6761_v62, %v6713_v0  ;;  %v6857_v13 = vmul.f32 0.0625, %v6841_v18  ;;  %v6698_v7 = vld [vmem:[#allocation2 + $0x1c] sm:$0xff]  ;;  %v6811_v12 = vmul.f32 0.1875, %v6795_v34  ;;  %v6843_v33 = vld [vmem:[#allocation2 + $0x27] sm:$0xff]  ;;  %v11061_v32 = vld [vmem:[#allocation2 + $0x34] sm:$0xff]  ;;  %v6890_v17 = vmul.f32 0.1875, %v6841_v18 }
 0x581   : > { %v6746_v21 = vld [vmem:[#allocation2 + $0x1d] sm:$0xff]  ;;  %v6779_v38 = vadd.f32 %v11056_v63, %v6715_v56  ;;  %v6714_v8 = vmul.f32 0.0625, %v6698_v7  ;;  %v6859_v14 = vmul.f32 0.0625, %v6843_v33  ;;  %v11063_v20 = vld [vmem:[#allocation2 + $0x35] sm:$0xff]  ;;  %v11066_v24 = vmul.f32 0.1875, %v11059_v27  ;;  %v7020_v56 = vld [vmem:[#allocation2 + $0x2a] sm:$0xff] }
 0x582   : > { %v6825_v15 = vadd.f32 %v6809_v19, %v6777_v36  ;;  %v6762_v9 = vmul.f32 0.1875, %v6746_v21  ;;  %v6923_v28 = vld [vmem:[#allocation2 + $0x20] sm:$0xff]  ;;  %v6922_v51 = vld [vmem:[#allocation2 + $0x18] sm:$0xff]  ;;  %v11068_v5 = vld [vmem:[#allocation2 + $0x30] sm:$0xff]  ;;  %v6717_v45 = vmul.f32 0.0625, %v11061_v32  ;;  %v11072_v25 = vmul.f32 0.1875, %v11063_v20 }
 0x583   : > { %v6794_v2 = vld [vmem:[#allocation2 + $0x1e] sm:$0xff]  ;;  %v6827_v3 = vadd.f32 %v6811_v12, %v6779_v38  ;;  %v6939_v53 = vmul.f32 0.5625, %v6923_v28  ;;  %v6797_v11 = vld [vmem:[#allocation2 + $0x36] sm:$0xff]  ;;  %v6906_v52 = vadd.f32 %v6890_v17, %v6872_v47  ;;  %v6938_v44 = vmul.f32 0.5625, %v6922_v51  ;;  %v6924_v54 = vld [vmem:[#allocation2 + $0x28] sm:$0xff] }
 0x584   : > { %v6873_v31 = vadd.f32 %v6857_v13, %v6825_v15  ;;  %v6778_v59 = vadd.f32 %v6762_v9, %v6714_v8  ;;  %v6810_v55 = vmul.f32 0.1875, %v6794_v2  ;;  %v6971_v58 = vld [vmem:[#allocation2 + $0x21] sm:$0xff]  ;;  %v6941_v57 = vmul.f32 0.5625, %v11068_v5  ;;  %v6970_v1 = vld [vmem:[#allocation2 + $0x19] sm:$0xff]  ;;  %v6973_v0 = vld [vmem:[#allocation2 + $0x31] sm:$0xff] }
 0x585   : > { %v6875_v49 = vadd.f32 %v6859_v14, %v6827_v3  ;;  %v6987_v10 = vmul.f32 0.5625, %v6971_v58  ;;  %v7019_v46 = vld [vmem:[#allocation2 + $0x22] sm:$0xff]  ;;  %v6781_v62 = vadd.f32 %v11072_v25, %v6717_v45  ;;  %v11077_v48 = vmul.f32 0.1875, %v6797_v11  ;;  %v6845_v39 = vld [vmem:[#allocation2 + $0x37] sm:$0xff]  ;;  %v7087_v9 = vld [vmem:[#allocation2 + $0x2b] sm:$0xff] }
 0x586   : > { %v6907_v30 = vadd.f32 %v6891_v42, %v6873_v31  ;;  %v6826_v4 = vadd.f32 %v6810_v55, %v6778_v59  ;;  %v7035_v19 = vmul.f32 0.1875, %v7019_v46  ;;  %v6892_v22 = vmul.f32 0.1875, %v6843_v33  ;;  %v7018_v50 = vld [vmem:[#allocation2 + $0x1a] sm:$0xff]  ;;  %v7021_v7 = vld [vmem:[#allocation2 + $0x32] sm:$0xff]  ;;  %v6972_v14 = vld [vmem:[#allocation2 + $0x29] sm:$0xff] }
 0x587   : > { %v6909_v29 = vadd.f32 %v11066_v24, %v6875_v49  ;;  %v6954_v40 = vadd.f32 %v6938_v44, %v6906_v52  ;;  %v6986_v15 = vmul.f32 0.5625, %v6970_v1  ;;  %v6989_v13 = vmul.f32 0.5625, %v6973_v0  ;;  %v6796_v31 = vld [vmem:[#allocation2 + $0x2e] sm:$0xff]  ;;  %v11085_v8 = vld [vmem:[#allocation2 + $0x3f] sm:$0xff] }
 0x588   : > { %v6955_v6 = vadd.f32 %v6939_v53, %v6907_v30  ;;  %v6874_v18 = vadd.f32 %v6858_v41, %v6826_v4  ;;  %v11082_v21 = vmul.f32 0.1875, %v11079_v35  ;;  %v6829_v43 = vadd.f32 %v11077_v48, %v6781_v62  ;;  %v7022_v60 = vld [vmem:[#allocation2 + $0x3a] sm:$0xff]  ;;  %v11102_v4 = vld [vmem:[#allocation2 + $0x45] sm:$0xff] }
 0x589   : > { %v6957_v34 = vadd.f32 %v6941_v57, %v6909_v29  ;;  %v6861_v38 = vmul.f32 0.0625, %v6845_v39  ;;  %v7036_v12 = vmul.f32 0.1875, %v7020_v56  ;;  %v6940_v33 = vmul.f32 0.5625, %v6924_v54  ;;  %v11095_v17 = vld [vmem:[#allocation2 + $0x40] sm:$0xff] }
 0x58a   : > { %v7003_v36 = vadd.f32 %v6987_v10, %v6955_v6  ;;  %v6908_v42 = vadd.f32 %v6892_v22, %v6874_v18  ;;  %v7002_v28 = vadd.f32 %v6986_v15, %v6954_v40  ;;  %v7034_v26 = vmul.f32 0.1875, %v7018_v50  ;;  %v7086_v6 = vld [vmem:[#allocation2 + $0x23] sm:$0xff]  ;;  %v7089_v52 = vld [vmem:[#allocation2 + $0x3b] sm:$0xff] }
 0x58b   : > { %v7005_v2 = vadd.f32 %v6989_v13, %v6957_v34  ;;  %v11087_v3 = vmul.f32 0.1875, %v7021_v7  ;;  %v6780_v30 = vadd.f32 %v11082_v21, %v6716_v61  ;;  %v11090_v53 = vmul.f32 0.1875, %v6796_v31  ;;  %v11100_v10 = vld [vmem:[#allocation2 + $0x44] sm:$0xff]  ;;  %v6702_v13 = vld [vmem:[#allocation2 + $0x3c] sm:$0xff] }
 0x58c   : > { %v7051_v23 = vadd.f32 %v7035_v19, %v7003_v36  ;;  %v6877_v59 = vadd.f32 %v6861_v38, %v6829_v43  ;;  %v11093_v55 = vmul.f32 0.1875, %v11085_v8  ;;  %v7103_v47 = vmul.f32 0.5625, %v7087_v9  ;;  %v6975_v22 = vld [vmem:[#allocation2 + $0x41] sm:$0xff]  ;;  %v6926_v38 = vld [vmem:[#allocation2 + $0x38] sm:$0xff] }
 0x58d   : > { %v6956_v49 = vadd.f32 %v6940_v33, %v6908_v42  ;;  %v11097_v51 = vmul.f32 0.1875, %v7022_v60  ;;  %v7050_v45 = vadd.f32 %v7034_v26, %v7002_v28  ;;  %v7053_v11 = vadd.f32 %v11087_v3, %v7005_v2  ;;  %v6799_v54 = vld [vmem:[#allocation2 + $0x46] sm:$0xff]  ;;  %v11115_v50 = vld [vmem:[#allocation2 + $0x3d] sm:$0xff] }
 0x58e   : > { %v7071_v58 = vadd.f32 %v7051_v23, %v7036_v12  ;;  %v6988_v41 = vmul.f32 0.5625, %v6972_v14  ;;  %v7139_v46 = vmul.f32 0.5625, %v6700_v37  ;;  %v6828_v29 = vadd.f32 %v11090_v53, %v6780_v30  ;;  %v7023_v42 = vld [vmem:[#allocation2 + $0x42] sm:$0xff]  ;;  %v7088_v14 = vld [vmem:[#allocation2 + $0x33] sm:$0xff] }
 0x58f   : > { %v6860_v44 = vmul.f32 0.0625, %v11059_v27  ;;  %v6911_v57 = vadd.f32 %v11093_v55, %v6877_v59  ;;  %v6943_v1 = vmul.f32 0.5625, %v11095_v17  ;;  %v7102_v62 = vmul.f32 0.5625, %v7086_v6  ;;  %v6847_v9 = vld [vmem:[#allocation2 + $0x47] sm:$0xff] }
 0x590   : > { %v7119_v0 = vadd.f32 %v7103_v47, %v7071_v58  ;;  %v6719_v36 = vmul.f32 0.0625, %v11100_v10  ;;  %v11110_v18 = vmul.f32 0.1875, %v11102_v4  ;;  %v7070_v56 = vadd.f32 %v7050_v45, %v7035_v19  ;;  %v6974_v58 = vld [vmem:[#allocation2 + $0x39] sm:$0xff] }
 0x591   : > { %v7073_v37 = vadd.f32 %v7053_v11, %v11097_v51  ;;  %v7105_v40 = vmul.f32 0.5625, %v7089_v52  ;;  %v7004_v34 = vadd.f32 %v6988_v41, %v6956_v49  ;;  %v11113_v15 = vmul.f32 0.1875, %v6845_v39  ;;  %v6798_v47 = vld [vmem:[#allocation2 + $0x3e] sm:$0xff] }
 0x592   : > { %v6876_v27 = vadd.f32 %v6860_v44, %v6828_v29  ;;  %v6959_v7 = vadd.f32 %v6943_v1, %v6911_v57  ;;  %v6991_v43 = vmul.f32 0.5625, %v6975_v22  ;;  %v7155_v61 = vadd.f32 %v7139_v46, %v7119_v0  ;;  %v11129_v57 = vld [vmem:[#allocation2 + $0x4f] sm:$0xff] }
 0x593   : > { %v7138_v23 = vmul.f32 0.5625, %v11053_v16  ;;  %v6783_v31 = vadd.f32 %v11110_v18, %v6719_v36  ;;  %v11119_v19 = vmul.f32 0.1875, %v6799_v54  ;;  %v7118_v33 = vadd.f32 %v7102_v62, %v7070_v56  ;;  %v11137_v56 = vld [vmem:[#allocation2 + $0x54] sm:$0xff] }
 0x594   : > { %v7121_v28 = vadd.f32 %v7105_v40, %v7073_v37  ;;  %v7141_v39 = vmul.f32 0.5625, %v6702_v13  ;;  %v7052_v2 = vadd.f32 %v7036_v12, %v7004_v34  ;;  %v6766_v26 = vmul.f32 0.1875, %v11115_v50  ;;  %v7024_v12 = vld [vmem:[#allocation2 + $0x4a] sm:$0xff]  ;;  %v11139_v37 = vld [vmem:[#allocation2 + $0x55] sm:$0xff] }
 0x595   : > { %v6718_v60 = vmul.f32 0.0625, %v6702_v13  ;;  %v6942_v30 = vmul.f32 0.5625, %v6926_v38  ;;  %v6910_v59 = vadd.f32 %v11113_v15, %v6876_v27  ;;  %v7007_v16 = vadd.f32 %v6991_v43, %v6959_v7  ;;  %v7091_v40 = vld [vmem:[#allocation2 + $0x4b] sm:$0xff] }
 0x596   : > { %v11123_v49 = vmul.f32 0.1875, %v7023_v42  ;;  %v7179_v45 = vadd.f32 %v7155_v61, %v11082_v21  ;;  %v7197_v11 = vmul.f32 0.0625, %v11063_v20  ;;  %v6831_v6 = vadd.f32 %v11119_v19, %v6783_v31  ;;  %v11147_v61 = vld [vmem:[#allocation2 + $0x50] sm:$0xff] }
 0x597   : > { %v6863_v41 = vmul.f32 0.0625, %v6847_v9  ;;  %v7154_v46 = vadd.f32 %v7138_v23, %v7118_v33  ;;  %v7157_v52 = vadd.f32 %v7141_v39, %v7121_v28  ;;  %v7072_v29 = vadd.f32 %v7052_v2, %v11087_v3 }
 0x598   : > { %v7104_v44 = vmul.f32 0.5625, %v7088_v14  ;;  %v6990_v1 = vmul.f32 0.5625, %v6974_v58  ;;  %v6782_v0 = vadd.f32 %v6766_v26, %v6718_v60  ;;  %v11131_v62 = vmul.f32 0.1875, %v6798_v47  ;;  %v11161_v60 = vld [vmem:[#allocation2 + $0x4d] sm:$0xff] }
 0x599   : > { %v6958_v36 = vadd.f32 %v6942_v30, %v6910_v59  ;;  %v7196_v21 = vmul.f32 0.0625, %v11079_v35  ;;  %v11134_v22 = vmul.f32 0.1875, %v7024_v12  ;;  %v7055_v20 = vadd.f32 %v11123_v49, %v7007_v16  ;;  %v6928_v58 = vld [vmem:[#allocation2 + $0x48] sm:$0xff]  ;;  %v6977_v16 = vld [vmem:[#allocation2 + $0x51] sm:$0xff] }
 0x59a   : > { %v7213_v54 = vadd.f32 %v7197_v11, %v7179_v45  ;;  %v7199_v3 = vmul.f32 0.0625, %v11102_v4  ;;  %v6879_v34 = vadd.f32 %v6863_v41, %v6831_v6  ;;  %v11143_v27 = vmul.f32 0.1875, %v11129_v57  ;;  %v6849_v12 = vld [vmem:[#allocation2 + $0x57] sm:$0xff] }
 0x59b   : > { %v7178_v13 = vadd.f32 %v7154_v46, %v11056_v63  ;;  %v7181_v7 = vadd.f32 %v7157_v52, %v6766_v26  ;;  %v7120_v35 = vadd.f32 %v7104_v44, %v7072_v29  ;;  %v7140_v43 = vmul.f32 0.5625, %v11061_v32  ;;  %v6801_v63 = vld [vmem:[#allocation2 + $0x56] sm:$0xff]  ;;  %v6704_v26 = vld [vmem:[#allocation2 + $0x4c] sm:$0xff] }
 0x59c   : > { %v6830_v23 = vadd.f32 %v11131_v62, %v6782_v0  ;;  %v6862_v31 = vmul.f32 0.0625, %v11085_v8  ;;  %v6721_v42 = vmul.f32 0.0625, %v11137_v56  ;;  %v11153_v4 = vmul.f32 0.1875, %v11139_v37 }
 0x59d   : > { %v11155_v33 = vmul.f32 0.0625, %v6926_v38  ;;  %v7075_v28 = vadd.f32 %v7055_v20, %v11134_v22  ;;  %v7107_v39 = vmul.f32 0.5625, %v7091_v40  ;;  %v7006_v2 = vadd.f32 %v6990_v1, %v6958_v36  ;;  %v6800_v1 = vld [vmem:[#allocation2 + $0x4e] sm:$0xff]  ;;  %v7090_v40 = vld [vmem:[#allocation2 + $0x43] sm:$0xff] }
 0x59e   : > { %v11159_v32 = vmul.f32 0.0625, %v11068_v5  ;;  %v6913_v8 = vadd.f32 %v11143_v27, %v6879_v34  ;;  %v6945_v14 = vmul.f32 0.5625, %v11147_v61  ;;  %v7212_v30 = vadd.f32 %v7196_v21, %v7178_v13 }
 0x59f   : > { %v6896_v59 = vmul.f32 0.1875, %v6847_v9  ;;  %v7215_v38 = vadd.f32 %v7199_v3, %v7181_v7  ;;  %v7156_v47 = vadd.f32 %v7140_v43, %v7120_v35  ;;  %v7239_v45 = vadd.f32 %v7213_v54, %v11077_v48  ;;  %v7025_v3 = vld [vmem:[#allocation2 + $0x52] sm:$0xff]  ;;  %v6976_v7 = vld [vmem:[#allocation2 + $0x49] sm:$0xff] }
 0x5a0   : > { %v6878_v11 = vadd.f32 %v6862_v31, %v6830_v23  ;;  %v6785_v6 = vadd.f32 %v11153_v4, %v6721_v42  ;;  %v11167_v5 = vmul.f32 0.1875, %v6801_v63  ;;  %v6768_v41 = vmul.f32 0.1875, %v11161_v60  ;;  %v6677_v63 = vld [vmem:[%s11021_s0 + $0x78] sm:$0x1] }
 0x5a1   : > { %v7123_v46 = vadd.f32 %v7107_v39, %v7075_v28  ;;  %v7143_v52 = vmul.f32 0.5625, %v6704_v26  ;;  %v6720_v29 = vmul.f32 0.0625, %v6704_v26  ;;  %v6944_v44 = vmul.f32 0.5625, %v6928_v58  ;;  %6695 = vst.msk [vmem:[#allocation2 + $0x90] sm:$0x1] %vm6694_vm8, %v6677_v63  ;;  %v7027_v63 = vld [vmem:[#allocation2 + $0x62] sm:$0xff] }
 0x5a2   : > { %v6961_v9 = vadd.f32 %v6945_v14, %v6913_v8  ;;  %v6993_v0 = vmul.f32 0.5625, %v6977_v16  ;;  %v7054_v36 = vadd.f32 %v11097_v51, %v7006_v2  ;;  %v7238_v21 = vadd.f32 %v7212_v30, %v11090_v53  ;;  %v7026_v14 = vld [vmem:[#allocation2 + $0x5a] sm:$0xff] }
 0x5a3   : > { %v7241_v48 = vadd.f32 %v7215_v38, %v11119_v19  ;;  %v7180_v20 = vadd.f32 %v7156_v47, %v11072_v25  ;;  %v7198_v54 = vmul.f32 0.0625, %v11115_v50  ;;  %v7285_v34 = vmul.f32 0.0625, %v6928_v58  ;;  %v11179_v19 = vld [vmem:[#allocation2 + $0x5f] sm:$0xff] }
 0x5a4   : > { %v6912_v13 = vadd.f32 %v6896_v59, %v6878_v11  ;;  %v6833_v35 = vadd.f32 %v11167_v5, %v6785_v6  ;;  %v6865_v43 = vmul.f32 0.0625, %v6849_v12  ;;  %v7263_v23 = vadd.f32 %v7239_v45, %v11113_v15  ;;  %v11192_v45 = vld [vmem:[#allocation2 + $0x60] sm:$0xff] }
 0x5a5   : > { %v7159_v51 = vadd.f32 %v7143_v52, %v7123_v46  ;;  %v6784_v31 = vadd.f32 %v6768_v41, %v6720_v29  ;;  %v11177_v53 = vmul.f32 0.1875, %v6800_v1  ;;  %v7009_v25 = vadd.f32 %v6993_v0, %v6961_v9  ;;  %v7093_v46 = vld [vmem:[#allocation2 + $0x5b] sm:$0xff] }
 0x5a6   : > { %v11181_v42 = vmul.f32 0.1875, %v7025_v3  ;;  %v7074_v50 = vadd.f32 %v7054_v36, %v11123_v49  ;;  %v7106_v28 = vmul.f32 0.5625, %v7090_v40  ;;  %v7262_v39 = vadd.f32 %v7238_v21, %v11066_v24  ;;  %v6930_v29 = vld [vmem:[#allocation2 + $0x58] sm:$0xff] }
 0x5a7   : > { %v7265_v2 = vadd.f32 %v7241_v48, %v6896_v59  ;;  %v6992_v26 = vmul.f32 0.5625, %v6976_v7  ;;  %v7214_v8 = vadd.f32 %v7198_v54, %v7180_v20  ;;  %v6960_v15 = vadd.f32 %v6944_v44, %v6912_v13  ;;  %v6978_v44 = vld [vmem:[#allocation2 + $0x59] sm:$0xff]  ;;  %v11212_v54 = vld [vmem:[#allocation2 + $0x64] sm:$0xff] }
 0x5a8   : > { %v7201_v30 = vmul.f32 0.0625, %v11139_v37  ;;  %v6881_v58 = vadd.f32 %v6865_v43, %v6833_v35  ;;  %v11188_v38 = vmul.f32 0.1875, %v11179_v19  ;;  %v7183_v47 = vadd.f32 %v7159_v51, %v6768_v41  ;;  %v6755_v35 = vld [vmem:[#allocation2 + $0x65] sm:$0xff]  ;;  %v11216_v43 = vld [vmem:[#allocation2 + $0x5d] sm:$0xff] }
 0x5a9   : > { %v6832_v16 = vadd.f32 %v11177_v53, %v6784_v31  ;;  %v6864_v49 = vmul.f32 0.0625, %v11129_v57  ;;  %v11194_v24 = vmul.f32 0.1875, %v7026_v14  ;;  %v7057_v59 = vadd.f32 %v11181_v42, %v7009_v25 }
 0x5aa   : > { %v7122_v11 = vadd.f32 %v7106_v28, %v7074_v50  ;;  %v7142_v6 = vmul.f32 0.5625, %v11100_v10  ;;  %v11200_v37 = vadd.f32 %v11155_v33, %v7263_v23  ;;  %v7240_v41 = vadd.f32 %v7214_v8, %v11131_v62  ;;  %v6979_v33 = vld [vmem:[#allocation2 + $0x61] sm:$0xff] }
 0x5ab   : > { %v7008_v52 = vadd.f32 %v6992_v26, %v6960_v15  ;;  %v7284_v57 = vmul.f32 0.0625, %v11095_v17  ;;  %v6915_v1 = vadd.f32 %v11188_v38, %v6881_v58  ;;  %v6947_v9 = vmul.f32 0.5625, %v11192_v45  ;;  %v6803_v23 = vld [vmem:[#allocation2 + $0x66] sm:$0xff]  ;;  %v6802_v58 = vld [vmem:[#allocation2 + $0x5e] sm:$0xff] }
 0x5ac   : > { %v11207_v0 = vadd.f32 %v11159_v32, %v7262_v39  ;;  %v6898_v10 = vmul.f32 0.1875, %v6849_v12  ;;  %v7217_v36 = vadd.f32 %v7201_v30, %v7183_v47  ;;  %v6880_v21 = vadd.f32 %v6864_v49, %v6832_v16  ;;  %v6706_v12 = vld [vmem:[#allocation2 + $0x5c] sm:$0xff]  ;;  %v7092_v39 = vld [vmem:[#allocation2 + $0x53] sm:$0xff]  ;;  %v6851_v26 = vld [vmem:[#allocation2 + $0x67] sm:$0xff] }
 0x5ad   : > { %v11209_v48 = vadd.f32 %v7285_v34, %v7265_v2  ;;  %v7077_v62 = vadd.f32 %v7057_v59, %v11194_v24  ;;  %v7158_v20 = vadd.f32 %v7142_v6, %v7122_v11  ;;  %v7109_v17 = vmul.f32 0.5625, %v7093_v46  ;;  %v6932_v30 = vld [vmem:[#allocation2 + $0x68] sm:$0xff] }
 0x5ae   : > { %v7264_v3 = vadd.f32 %v7240_v41, %v11093_v55  ;;  %v6946_v40 = vmul.f32 0.5625, %v6930_v29  ;;  %v7287_v13 = vmul.f32 0.0625, %v6930_v29  ;;  %v6994_v7 = vmul.f32 0.5625, %v6978_v44  ;;  %v7028_v16 = vld [vmem:[#allocation2 + $0x6a] sm:$0xff] }
 0x5af   : > { %v7200_v32 = vmul.f32 0.0625, %v11161_v60  ;;  %v6963_v34 = vadd.f32 %v6947_v9, %v6915_v1  ;;  %v6995_v51 = vmul.f32 0.5625, %v6979_v33  ;;  %v7056_v31 = vadd.f32 %v11134_v22, %v7008_v52  ;;  %v11237_v52 = vld [vmem:[#allocation2 + $0x74] sm:$0xff] }
 0x5b0   : > { %v7243_v25 = vadd.f32 %v7217_v36, %v11167_v5  ;;  %v6914_v50 = vadd.f32 %v6898_v10, %v6880_v21  ;;  %v11221_v28 = vmul.f32 0.0625, %v11147_v61  ;;  %v6723_v55 = vmul.f32 0.0625, %v11212_v54  ;;  %v6708_v36 = vld [vmem:[#allocation2 + $0x6c] sm:$0xff] }
 0x5b1   : > { %v7182_v60 = vadd.f32 %v7158_v20, %v11110_v18  ;;  %v11225_v2 = vmul.f32 0.1875, %v6755_v35  ;;  %v7125_v8 = vadd.f32 %v7109_v17, %v7077_v62  ;;  %v7145_v14 = vmul.f32 0.5625, %v6706_v12  ;;  %v11244_v21 = vld [vmem:[#allocation2 + $0x6d] sm:$0xff] }
 0x5b2   : > { %v11227_v15 = vadd.f32 %v7284_v57, %v7264_v3  ;;  %v6770_v22 = vmul.f32 0.1875, %v11216_v43  ;;  %v11230_v5 = vmul.f32 0.1875, %v6803_v23  ;;  %v6722_v61 = vmul.f32 0.0625, %v6706_v12  ;;  %v11239_v57 = vld [vmem:[#allocation2 + $0x75] sm:$0xff] }
 0x5b3   : > { %v7011_v47 = vadd.f32 %v6995_v51, %v6963_v34  ;;  %v11232_v49 = vmul.f32 0.1875, %v7027_v63  ;;  %v7076_v18 = vadd.f32 %v7056_v31, %v11181_v42  ;;  %v7108_v59 = vmul.f32 0.5625, %v7092_v39  ;;  %v7095_v51 = vld [vmem:[#allocation2 + $0x6b] sm:$0xff]  ;;  %v6711_v39 = vld [vmem:[#allocation2 + $0x84] sm:$0x1] }
 0x5b4   : > { %11711 = vst [vmem:[#allocation52_spill] sm:$0xff] %v11227_v15  ;;  %v7267_v11 = vadd.f32 %v7243_v25, %v6898_v10  ;;  %v6962_v6 = vadd.f32 %v6946_v40, %v6914_v50  ;;  %v6867_v41 = vmul.f32 0.0625, %v6851_v26  ;;  %v11235_v46 = vmul.f32 0.1875, %v6851_v26  ;;  %v6804_v25 = vld [vmem:[#allocation2 + $0x6e] sm:$0xff] }
 0x5b5   : > { %v7216_v29 = vadd.f32 %v7200_v32, %v7182_v60  ;;  %v6787_v44 = vadd.f32 %v11225_v2, %v6723_v55  ;;  %v11242_v1 = vmul.f32 0.5625, %v6932_v30  ;;  %v7161_v9 = vadd.f32 %v7145_v14, %v7125_v8  ;;  %v6805_v32 = vld [vmem:[#allocation2 + $0x76] sm:$0xff]  ;;  %v6759_v60 = vld [vmem:[#allocation2 + $0x85] sm:$0x1] }
 0x5b6   : > { %v6786_v42 = vadd.f32 %v6770_v22, %v6722_v61  ;;  %v11246_v33 = vmul.f32 0.1875, %v6802_v58  ;;  %v11248_v10 = vmul.f32 0.1875, %v7028_v16  ;;  %v7144_v62 = vmul.f32 0.5625, %v11137_v56  ;;  %v11271_v14 = vld [vmem:[#allocation2 + $0x7c] sm:$0xff]  ;;  %v6852_v16 = vld [vmem:[#allocation2 + $0x6f] sm:$0xff] }
 0x5b7   : > { %v7059_v20 = vadd.f32 %v11232_v49, %v7011_v47  ;;  %v7124_v17 = vadd.f32 %v7108_v59, %v7076_v18  ;;  %v6725_v3 = vmul.f32 0.0625, %v11237_v52  ;;  %v11254_v40 = vmul.f32 0.1875, %v11239_v57  ;;  %v11273_v61 = vld [vmem:[#allocation2 + $0x7d] sm:$0xff] }
 0x5b8   : > { %v11256_v12 = vadd.f32 %v7287_v13, %v7267_v11  ;;  %v11258_v23 = vadd.f32 %v6994_v7, %v6962_v6  ;;  %v11261_v34 = vmul.f32 0.1875, %v11244_v21  ;;  %v6724_v31 = vmul.f32 0.0625, %v6708_v36 }
 0x5b9   : > { %v6835_v56 = vadd.f32 %v11230_v5, %v6787_v44  ;;  %v7185_v50 = vadd.f32 %v7161_v9, %v6770_v22  ;;  %v7203_v55 = vmul.f32 0.0625, %v6755_v35  ;;  %v11264_v63 = vmul.f32 0.0625, %v6932_v30  ;;  %v6853_v30 = vld [vmem:[#allocation2 + $0x77] sm:$0xff]  ;;  %v6807_v9 = vld [vmem:[#allocation2 + $0x86] sm:$0x1] }
 0x5ba   : > { %11712 = vst [vmem:[#allocation30_spill] sm:$0xff] %v11256_v12  ;;  %v7242_v26 = vadd.f32 %v7216_v29, %v11177_v53  ;;  %v6834_v13 = vadd.f32 %v11246_v33, %v6786_v42  ;;  %v6866_v7 = vmul.f32 0.0625, %v11179_v19  ;;  %v11269_v8 = vmul.f32 0.1875, %v6805_v32  ;;  %v6980_v32 = vld [vmem:[#allocation2 + $0x69] sm:$0xff] }
 0x5bb   : > { %v7079_v58 = vadd.f32 %v7059_v20, %v11248_v10  ;;  %v7160_v22 = vadd.f32 %v7144_v62, %v7124_v17  ;;  %v6789_v35 = vadd.f32 %v11254_v40, %v6725_v3  ;;  %v7111_v47 = vmul.f32 0.5625, %v7095_v51  ;;  %v6806_v3 = vld [vmem:[#allocation2 + $0x7e] sm:$0xff] }
 0x5bc   : > { %v6788_v53 = vadd.f32 %v11261_v34, %v6724_v31  ;;  %v11278_v18 = vmul.f32 0.1875, %v6804_v25  ;;  %v6727_v59 = vmul.f32 0.0625, %v6711_v39  ;;  %v6775_v19 = vmul.f32 0.1875, %v6759_v60  ;;  %v6854_v60 = vld [vmem:[#allocation2 + $0x7f] sm:$0xff] }
 0x5bd   : > { %v7219_v11 = vadd.f32 %v7203_v55, %v7185_v50  ;;  %v7202_v6 = vmul.f32 0.0625, %v11216_v43  ;;  %v11282_v29 = vmul.f32 0.1875, %v11273_v61  ;;  %v6726_v44 = vmul.f32 0.0625, %v11271_v14  ;;  %v11289_v43 = vld [vmem:[#allocation2 + $0x70] sm:$0xff] }
 0x5be   : > { %v6882_v42 = vadd.f32 %v6866_v7, %v6834_v13  ;;  %v6869_v62 = vmul.f32 0.0625, %v6853_v30  ;;  %v6883_v20 = vadd.f32 %v6867_v41, %v6835_v56  ;;  %v11285_v17 = vmul.f32 0.1875, %v6852_v16 }
 0x5bf   : > { %v7184_v51 = vadd.f32 %v7160_v22, %v11153_v4  ;;  %v6837_v31 = vadd.f32 %v11269_v8, %v6789_v35  ;;  %v7127_v25 = vadd.f32 %v7111_v47, %v7079_v58  ;;  %v7147_v50 = vmul.f32 0.5625, %v6708_v36  ;;  %v6855_v4 = vld [vmem:[#allocation2 + $0x87] sm:$0x1] }
 0x5c0   : > { %v6836_v55 = vadd.f32 %v11278_v18, %v6788_v53  ;;  %v6868_v39 = vmul.f32 0.0625, %v6852_v16  ;;  %v6791_v12 = vadd.f32 %v6775_v19, %v6727_v59  ;;  %v6823_v13 = vmul.f32 0.1875, %v6807_v9  ;;  %v6934_v53 = vld [vmem:[#allocation2 + $0x78] sm:$0xff] }
 0x5c1   : > { %v7266_v41 = vadd.f32 %v7242_v26, %v11143_v27  ;;  %v7245_v56 = vadd.f32 %v7219_v11, %v11230_v5  ;;  %v6790_v7 = vadd.f32 %v11282_v29, %v6726_v44  ;;  %v11295_v15 = vmul.f32 0.1875, %v6806_v3  ;;  %v6981_v59 = vld [vmem:[#allocation2 + $0x71] sm:$0xff]  ;;  %v11304_v11 = vld [vmem:[#allocation2 + $0x80] sm:$0xff]  ;;  %v6889_v3 = vld [vmem:[#allocation2 + $0x8f] sm:$0x1] }
 0x5c2   : > { %v6916_v58 = vadd.f32 %v11235_v46, %v6882_v42  ;;  %v6996_v36 = vmul.f32 0.5625, %v6980_v32  ;;  %v6917_v22 = vadd.f32 %v11285_v17, %v6883_v20  ;;  %v6949_v35 = vmul.f32 0.5625, %v11289_v43 }
 0x5c3   : > { %v7218_v47 = vadd.f32 %v7202_v6, %v7184_v51  ;;  %v11300_v16 = vmul.f32 0.1875, %v6853_v30  ;;  %v6885_v27 = vadd.f32 %v6869_v62, %v6837_v31  ;;  %v11302_v26 = vmul.f32 0.1875, %v6854_v60 }
 0x5c4   : > { %v7163_v5 = vadd.f32 %v7147_v50, %v7127_v25  ;;  %v6884_v19 = vadd.f32 %v6868_v39, %v6836_v55  ;;  %v6839_v44 = vadd.f32 %v6823_v13, %v6791_v12  ;;  %v6871_v9 = vmul.f32 0.0625, %v6855_v4  ;;  %v6888_v25 = vld [vmem:[#allocation2 + $0x87] sm:$0xff]  ;;  %v7029_v55 = vld [vmem:[#allocation2 + $0x72] sm:$0xff] }
 0x5c5   : > { %v11307_v42 = vadd.f32 %v11221_v28, %v7266_v41  ;;  %v7269_v20 = vadd.f32 %v7245_v56, %v11235_v46  ;;  %v6838_v6 = vadd.f32 %v11295_v15, %v6790_v7  ;;  %v6870_v30 = vmul.f32 0.0625, %v6854_v60  ;;  %v6982_v13 = vld [vmem:[#allocation2 + $0x79] sm:$0xff]  ;;  %v6983_v41 = vld [vmem:[#allocation2 + $0x81] sm:$0xff] }
 0x5c6   : > { %v6964_v32 = vadd.f32 %v11242_v1, %v6916_v58  ;;  %v6950_v62 = vmul.f32 0.5625, %v6934_v53  ;;  %v6965_v51 = vadd.f32 %v6949_v35, %v6917_v22  ;;  %v6997_v31 = vmul.f32 0.5625, %v6981_v59  ;;  %v6937_v58 = vld [vmem:[#allocation2 + $0x90] sm:$0x1]  ;;  %v7094_v59 = vld [vmem:[#allocation2 + $0x63] sm:$0xff] }
 0x5c7   : > { %v7244_v50 = vadd.f32 %v7218_v47, %v11246_v33  ;;  %v7205_v12 = vmul.f32 0.0625, %v11239_v57  ;;  %v6919_v28 = vadd.f32 %v11302_v26, %v6885_v27  ;;  %v6951_v39 = vmul.f32 0.5625, %v11304_v11  ;;  %v11326_v27 = vld [vmem:[#allocation2 + $0x88] sm:$0xff] }
 0x5c8   : > { %v7187_v46 = vadd.f32 %v7163_v5, %v11261_v34  ;;  %v6918_v60 = vadd.f32 %v11300_v16, %v6884_v19  ;;  %v6887_v1 = vadd.f32 %v6871_v9, %v6839_v44  ;;  %v6905_v56 = vmul.f32 0.1875, %v6889_v3  ;;  %v7031_v3 = vld [vmem:[#allocation2 + $0x82] sm:$0xff] }
 0x5c9   : > { %v7288_v7 = vmul.f32 0.0625, %v11192_v45  ;;  %v7058_v33 = vadd.f32 %v11194_v24, %v11258_v23  ;;  %v11321_v4 = vmul.f32 0.1875, %v6888_v25  ;;  %v6886_v57 = vadd.f32 %v6870_v30, %v6838_v6  ;;  %v7030_v45 = vld [vmem:[#allocation2 + $0x7a] sm:$0xff] }
 0x5ca   : > { %v11324_v22 = vadd.f32 %v11264_v63, %v7269_v20  ;;  %v7012_v35 = vadd.f32 %v6996_v36, %v6964_v32  ;;  %v7013_v34 = vadd.f32 %v6997_v31, %v6965_v51  ;;  %v7045_v47 = vmul.f32 0.1875, %v7029_v55  ;;  %v6985_v51 = vld [vmem:[#allocation2 + $0x91] sm:$0x1] }
 0x5cb   : > { %v7268_v5 = vadd.f32 %v7244_v50, %v11188_v38  ;;  %v6998_v19 = vmul.f32 0.5625, %v6982_v13  ;;  %v6967_v44 = vadd.f32 %v6951_v39, %v6919_v28  ;;  %v6999_v9 = vmul.f32 0.5625, %v6983_v41  ;;  %v6984_v50 = vld [vmem:[#allocation2 + $0x89] sm:$0xff]  ;;  %v7097_v28 = vld [vmem:[#allocation2 + $0x7b] sm:$0xff] }
 0x5cc   : > { %v7221_v24 = vadd.f32 %v7205_v12, %v7187_v46  ;;  %v6966_v23 = vadd.f32 %v6950_v62, %v6918_v60  ;;  %v6921_v6 = vadd.f32 %v6905_v56, %v6887_v1  ;;  %v6953_v30 = vmul.f32 0.5625, %v6937_v58  ;;  %v7096_v46 = vld [vmem:[#allocation2 + $0x73] sm:$0xff]  ;;  %v7032_v41 = vld [vmem:[#allocation2 + $0x8a] sm:$0xff]  ;;  %v7033_v58 = vld [vmem:[#allocation2 + $0x92] sm:$0x1] }
 0x5cd   : > { %v7078_v63 = vadd.f32 %v7058_v33, %v11232_v49  ;;  %v7110_v20 = vmul.f32 0.5625, %v7094_v59  ;;  %v6952_v36 = vmul.f32 0.5625, %v11326_v27  ;;  %v6920_v32 = vadd.f32 %v11321_v4, %v6886_v57 }
 0x5ce   : > { %v11332_v31 = vmul.f32 0.0625, %v6934_v53  ;;  %v7046_v38 = vmul.f32 0.1875, %v7030_v45  ;;  %v7061_v25 = vadd.f32 %v7045_v47, %v7013_v34  ;;  %v7060_v55 = vadd.f32 %v11248_v10, %v7012_v35  ;;  %v11347_v34 = vld [vmem:[#allocation2 + $0x85] sm:$0xff] }
 0x5cf   : > { %v7146_v62 = vmul.f32 0.5625, %v11212_v54  ;;  %v11337_v12 = vmul.f32 0.0625, %v11244_v21  ;;  %v7015_v49 = vadd.f32 %v6999_v9, %v6967_v44  ;;  %v7047_v39 = vmul.f32 0.1875, %v7031_v3  ;;  %v11345_v54 = vld [vmem:[%s11465_s14] ss:$0 sm:$0xff]  ;;  %v7098_v3 = vld [vmem:[#allocation2 + $0x83] sm:$0xff] }
 0x5d0   : > { %v7247_v60 = vadd.f32 %v7221_v24, %v11269_v8  ;;  %v7014_v13 = vadd.f32 %v6998_v19, %v6966_v23  ;;  %v6969_v53 = vadd.f32 %v6953_v30, %v6921_v6  ;;  %v7001_v1 = vmul.f32 0.5625, %v6985_v51  ;;  %v7099_v24 = vld [vmem:[#allocation2 + $0x8b] sm:$0xff] }
 0x5d1   : > { %v11340_v56 = vadd.f32 %v7288_v7, %v7268_v5  ;;  %v7126_v33 = vadd.f32 %v7110_v20, %v7078_v63  ;;  %v6968_v57 = vadd.f32 %v6952_v36, %v6920_v32  ;;  %v7000_v10 = vmul.f32 0.5625, %v6984_v50  ;;  %v7067_v36 = vld [vmem:[#allocation2 + $0x9a] sm:$0x1] }
 0x5d2   : > { %v7081_v21 = vadd.f32 %v7061_v25, %v7046_v38  ;;  %v7113_v35 = vmul.f32 0.5625, %v7097_v28  ;;  %v7080_v8 = vadd.f32 %v7060_v55, %v7045_v47  ;;  %v7112_v59 = vmul.f32 0.5625, %v7096_v46  ;;  %v7228_v55 = vld [vmem:[#allocation2 + $0x86] sm:$0xff] }
 0x5d3   : > { %v11350_v19 = vmul.f32 0.0625, %v11289_v43  ;;  %v7149_v7 = vmul.f32 0.5625, %v11271_v14  ;;  %v7048_v5 = vmul.f32 0.1875, %v7032_v41  ;;  %v7063_v45 = vadd.f32 %v7047_v39, %v7015_v49  ;;  %v7134_v41 = vld [vmem:[#allocation2 + $0x84] sm:$0xff] }
 0x5d4   : > { %v11354_v9 = vadd.f32 %v7247_v60, %v11300_v16  ;;  %v7062_v23 = vadd.f32 %v7046_v38, %v7014_v13  ;;  %v7017_v6 = vadd.f32 %v7001_v1, %v6969_v53  ;;  %v7049_v30 = vmul.f32 0.1875, %v7033_v58  ;;  %v7066_v38 = vld [vmem:[#allocation2 + $0x92] sm:$0xff] }
 0x5d5   : > { %v7162_v20 = vadd.f32 %v7146_v62, %v7126_v33  ;;  %v11358_v43 = vmul.f32 0.0625, %v11347_v34  ;;  %v7016_v14 = vadd.f32 %v7000_v10, %v6968_v57  ;;  %v7129_v51 = vadd.f32 %v7113_v35, %v7081_v21  ;;  %v7135_v60 = vld [vmem:[#allocation2 + $0x8c] sm:$0xff]  ;;  %v7101_v57 = vld [vmem:[#allocation2 + $0x9b] sm:$0x1] }
 0x5d6   : > { %v7128_v16 = vadd.f32 %v7112_v59, %v7080_v8  ;;  %v7148_v25 = vmul.f32 0.5625, %v11237_v52  ;;  %v7083_v28 = vadd.f32 %v7063_v45, %v7048_v5  ;;  %v7115_v49 = vmul.f32 0.5625, %v7099_v24  ;;  %v7100_v45 = vld [vmem:[#allocation2 + $0x93] sm:$0xff] }
 0x5d7   : > { %v7114_v46 = vmul.f32 0.5625, %v7098_v3  ;;  %v7082_v13 = vadd.f32 %v7062_v23, %v7047_v39  ;;  %v7065_v53 = vadd.f32 %v7049_v30, %v7017_v6  ;;  %v7069_v1 = vmul.f32 0.1875, %v7067_v36 }
 0x5d8   : > { %v7186_v33 = vadd.f32 %v7162_v20, %v11225_v2  ;;  %v7064_v10 = vadd.f32 %v7048_v5, %v7016_v14  ;;  %v7068_v58 = vmul.f32 0.1875, %v7066_v38  ;;  %v7165_v35 = vadd.f32 %v7149_v7, %v7129_v51 }
 0x5d9   : > { %v11371_v8 = vmul.f32 0.1875, %v7228_v55  ;;  %v7164_v59 = vadd.f32 %v7148_v25, %v7128_v16  ;;  %v7151_v24 = vmul.f32 0.5625, %v7135_v60  ;;  %v7150_v23 = vmul.f32 0.5625, %v7134_v41  ;;  %v7136_v16 = vld [vmem:[#allocation2 + $0x94] sm:$0xff] }
 0x5da   : > { %v7130_v7 = vadd.f32 %v7114_v46, %v7082_v13  ;;  %v7085_v3 = vadd.f32 %v7069_v1, %v7065_v53  ;;  %v7117_v6 = vmul.f32 0.5625, %v7101_v57  ;;  %v7084_v20 = vadd.f32 %v7068_v58, %v7064_v10  ;;  %v11713_v60 = vld [vmem:[#allocation52_spill] sm:$0xff] }
 0x5db   : > { %v7189_v36 = vadd.f32 %v7165_v35, %v11282_v29  ;;  %v7206_v51 = vmul.f32 0.0625, %v11273_v61  ;;  %v7173_v61 = vld [vmem:[#allocation2 + $0x9d] sm:$0x1]  ;;  %v7152_v53 = vmul.f32 0.5625, %v7136_v16  ;;  %v7232_v16 = vld [vmem:[#allocation2 + $0xa6] sm:$0x1] }
 0x5dc   : > { %v7133_v46 = vadd.f32 %v7117_v6, %v7085_v3  ;;  %v7230_v58 = vld [vmem:[#allocation2 + $0x96] sm:$0xff]  ;;  %v7292_v3 = vmul.f32 0.0625, %v11304_v11 }
 0x5dd   : > { %v7235_v6 = vmul.f32 0.1875, %v7230_v58 }
 0x624   : > { %v8839_v44 = vpop.f32.mrb[18].mxu1 }
 0x625   : > { %v6557_v63 = vadd.f32 %v8839_v44, %v11345_v54  ;;  %v6551_v47 = vpop.f32.mrb[19].mxu1  ;;  %v11376_v44 = vmul.f32 0.0625, %v11326_v27  ;;  %v7116_v27 = vmul.f32 0.5625, %v7100_v45  ;;  %v7229_v45 = vld [vmem:[#allocation2 + $0x8e] sm:$0xff] }
 0x626   : > { %v6552_v32 = vadd.f32 %v11345_v54, %v6551_v47  ;;  %v7137_v47 = vld [vmem:[#allocation2 + $0x9c] sm:$0x1] }
 0x627   : > { %v7864_v50 = vclamps-f32 %v6557_v63, 256.0  ;;  %v7220_v63 = vadd.f32 %v11337_v12, %v7186_v33  ;;  %v7132_v41 = vadd.f32 %v7116_v27, %v7084_v20  ;;  %v7234_v27 = vmul.f32 0.1875, %v7229_v45 }
 0x628   : > { %v7863_v62 = vclamps-f32 %v6552_v32, 256.0  ;;  %v7188_v32 = vadd.f32 %v7164_v59, %v11254_v40 }
 0x629   : > { %v7315_v52 = vadd.f32 %v7864_v50, %v11200_v37  ;;  %v7131_v37 = vadd.f32 %v7115_v49, %v7083_v28  ;;  %v7172_v50 = vld [vmem:[#allocation2 + $0x95] sm:$0xff]  ;;  %v7174_v28 = vmul.f32 0.1875, %v11347_v34  ;;  %v7166_v49 = vadd.f32 %v7150_v23, %v7130_v7 }
 0x62a   : > { %v7314_v21 = vadd.f32 %v7863_v62, %v11207_v0  ;;  %v7171_v0 = vld [vmem:[#allocation2 + $0x8d] sm:$0xff]  ;;  %v7153_v62 = vmul.f32 0.5625, %v7137_v47  ;;  %v7246_v40 = vadd.f32 %v7220_v63, %v11278_v18  ;;  %v7223_v34 = vadd.f32 %v11358_v43, %v7189_v36 }
 0x62b   : > { %7331 = vst.msk [vmem:[%s11366_s21 + $0x8] sm:$0xff] %vm6678_vm0, %v7315_v52  ;;  %v8842_v39 = vpop.f32.mrb[20].mxu1  ;;  %v7167_v38 = vadd.f32 %v7151_v24, %v7131_v37  ;;  %v7175_v55 = vmul.f32 0.1875, %v7171_v0  ;;  %v7209_v33 = vmul.f32 0.0625, %v7172_v50  ;;  %v7222_v18 = vadd.f32 %v7206_v51, %v7188_v32 }
 0x62c   : > { %7330 = vst.msk [vmem:[%s11366_s21] sm:$0xff] %vm6678_vm0, %v7314_v21  ;;  %v6567_v2 = vadd.f32 %v8842_v39, %v11345_v54  ;;  %v6561_v5 = vpop.f32.mrb[21].mxu1  ;;  %v7208_v21 = vmul.f32 0.0625, %v7171_v0  ;;  %v7190_v59 = vadd.f32 %v7174_v28, %v7166_v49  ;;  %v7169_v39 = vadd.f32 %v7153_v62, %v7133_v46  ;;  %v7194_v0 = vld [vmem:[#allocation2 + $0x9d] sm:$0xff] }
 0x62d   : > { %v6562_v30 = vadd.f32 %v11345_v54, %v6561_v5  ;;  %v7191_v10 = vadd.f32 %v7175_v55, %v7167_v38  ;;  %v7177_v37 = vmul.f32 0.1875, %v7173_v61  ;;  %v7168_v43 = vadd.f32 %v7152_v53, %v7132_v41  ;;  %v7231_v49 = vld [vmem:[#allocation2 + $0x9e] sm:$0xff] }
 0x62e   : > { %v7866_v14 = vclamps-f32 %v6567_v2, 256.0  ;;  %v7176_v23 = vmul.f32 0.1875, %v7172_v50  ;;  %v11714_v2 = vld [vmem:[#allocation30_spill] sm:$0xff]  ;;  %v7249_v7 = vadd.f32 %v11371_v8, %v7223_v34  ;;  %v7248_v47 = vadd.f32 %v7222_v18, %v11295_v15 }
 0x62f   : > { %v7865_v25 = vclamps-f32 %v6562_v30, 256.0  ;;  %v7225_v20 = vadd.f32 %v7209_v33, %v7191_v10  ;;  %v7224_v8 = vadd.f32 %v7208_v21, %v7190_v59  ;;  %v7193_v51 = vadd.f32 %v7177_v37, %v7169_v39  ;;  %v7256_v21 = vld [vmem:[#allocation2 + $0x9f] sm:$0xff] }
 0x630   : > { %v7317_v12 = vadd.f32 %v7866_v14, %v11209_v48  ;;  %v11395_v48 = vadd.f32 %v11332_v31, %v11354_v9  ;;  %v7270_v31 = vadd.f32 %v7246_v40, %v11285_v17  ;;  %v7195_v9 = vld [vmem:[#allocation2 + $0xa5] sm:$0x1]  ;;  %v7255_v17 = vld [vmem:[#allocation2 + $0x97] sm:$0xff]  ;;  %v7254_v14 = vld [vmem:[#allocation2 + $0x8f] sm:$0xff]  ;;  %v7192_v15 = vadd.f32 %v7176_v23, %v7168_v43 }
 0x631   : > { %v7316_v29 = vadd.f32 %v7865_v25, %v11713_v60  ;;  %v8845_v13 = vpop.f32.mrb[22].mxu1  ;;  %v7211_v11 = vmul.f32 0.0625, %v7195_v9  ;;  %v7210_v38 = vmul.f32 0.0625, %v7194_v0  ;;  %v7273_v55 = vadd.f32 %v7249_v7, %v11321_v4  ;;  %v7278_v40 = vld [vmem:[#allocation2 + $0x90] sm:$0xff] }
 0x632   : > { %7333 = vst.msk [vmem:[%s11366_s21 + $0x18] sm:$0xff] %vm6678_vm0, %v7317_v12  ;;  %v6577_v1 = vadd.f32 %v8845_v13, %v11345_v54  ;;  %v6571_v52 = vpop.f32.mrb[23].mxu1  ;;  %v7306_v25 = vadd.f32 %v11350_v19, %v7270_v31  ;;  %v7259_v28 = vmul.f32 0.1875, %v7255_v17  ;;  %v7258_v12 = vmul.f32 0.1875, %v7254_v14  ;;  %v7279_v13 = vld [vmem:[#allocation2 + $0x98] sm:$0xff] }
 0x633   : > { %7332 = vst.msk [vmem:[%s11366_s21 + $0x10] sm:$0xff] %vm6678_vm0, %v7316_v29  ;;  %v6572_v57 = vadd.f32 %v11345_v54, %v6571_v52  ;;  %v7272_v60 = vadd.f32 %v7248_v47, %v11302_v26  ;;  %v7251_v29 = vadd.f32 %v7235_v6, %v7225_v20  ;;  %v7237_v61 = vmul.f32 0.1875, %v7232_v16  ;;  %v7257_v52 = vld [vmem:[#allocation2 + $0xa7] sm:$0x1] }
 0x634   : > { %v7868_v35 = vclamps-f32 %v6577_v1, 256.0  ;;  %v7250_v1 = vadd.f32 %v7234_v27, %v7224_v8  ;;  %v7227_v4 = vadd.f32 %v7211_v11, %v7193_v51  ;;  %v7236_v18 = vmul.f32 0.1875, %v7231_v49  ;;  %v7280_v6 = vld [vmem:[#allocation2 + $0xa0] sm:$0xff] }
 0x635   : > { %v7867_v24 = vclamps-f32 %v6572_v57, 256.0  ;;  %v7226_v57 = vadd.f32 %v7210_v38, %v7192_v15  ;;  %v7309_v10 = vadd.f32 %v11376_v44, %v7273_v55  ;;  %v7295_v58 = vmul.f32 0.0625, %v7279_v13  ;;  %v7281_v44 = vld [vmem:[#allocation2 + $0xa8] sm:$0x1] }
 0x636   : > { %v7319_v5 = vadd.f32 %v7868_v35, %v11714_v2  ;;  %v7308_v45 = vadd.f32 %v7292_v3, %v7272_v60  ;;  %v7261_v39 = vmul.f32 0.1875, %v7257_v52  ;;  %v7274_v9 = vadd.f32 %v7258_v12, %v7250_v1 }
 0x637   : > { %v7318_v30 = vadd.f32 %v7867_v24, %v11307_v42  ;;  %v8848_v63 = vpop.f32.mrb[24].mxu1  ;;  %v7253_v43 = vadd.f32 %v7237_v61, %v7227_v4  ;;  %v7260_v7 = vmul.f32 0.1875, %v7256_v21  ;;  %v7296_v14 = vmul.f32 0.0625, %v7280_v6 }
 0x638   : > { %7335 = vst.msk [vmem:[%s11366_s21 + $0x28] sm:$0xff] %vm6678_vm0, %v7319_v5  ;;  %v6587_v36 = vadd.f32 %v8848_v63, %v11345_v54  ;;  %v6581_v32 = vpop.f32.mrb[25].mxu1  ;;  %v7252_v5 = vadd.f32 %v7236_v18, %v7226_v57  ;;  %v7297_v63 = vmul.f32 0.0625, %v7281_v44 }
 0x639   : > { %7334 = vst.msk [vmem:[%s11366_s21 + $0x20] sm:$0xff] %vm6678_vm0, %v7318_v30  ;;  %v6582_v42 = vadd.f32 %v11345_v54, %v6581_v32  ;;  %v7277_v27 = vadd.f32 %v7261_v39, %v7253_v43 }
 0x63a   : > { %v7870_v50 = vclamps-f32 %v6587_v36, 256.0  ;;  %v7276_v51 = vadd.f32 %v7260_v7, %v7252_v5 }
 0x63b   : > { %v7869_v46 = vclamps-f32 %v6582_v42, 256.0  ;;  %v8851_v62 = vpop.f32.mrb[26].mxu1  ;;  %v7313_v38 = vadd.f32 %v7297_v63, %v7277_v27 }
 0x63c   : > { %v7321_v41 = vadd.f32 %v7870_v50, %v11324_v22  ;;  %v6597_v19 = vadd.f32 %v8851_v62, %v11345_v54  ;;  %v6591_v53 = vpop.f32.mrb[27].mxu1  ;;  %v7294_v22 = vmul.f32 0.0625, %v7278_v40  ;;  %v7312_v12 = vadd.f32 %v7296_v14, %v7276_v51 }
 0x63d   : > { %v7320_v34 = vadd.f32 %v7869_v46, %v11340_v56  ;;  %v6592_v33 = vadd.f32 %v11345_v54, %v6591_v53  ;;  %v7275_v56 = vadd.f32 %v7259_v28, %v7251_v29 }
 0x63e   : > { %7337 = vst.msk [vmem:[%s11366_s21 + $0x38] sm:$0xff] %vm6678_vm0, %v7321_v41  ;;  %v7872_v26 = vclamps-f32 %v6597_v19, 256.0  ;;  %v7310_v8 = vadd.f32 %v7294_v22, %v7274_v9 }
 0x63f   : > { %7336 = vst.msk [vmem:[%s11366_s21 + $0x30] sm:$0xff] %vm6678_vm0, %v7320_v34  ;;  %v7871_v35 = vclamps-f32 %v6592_v33, 256.0  ;;  %v8854_v59 = vpop.f32.mrb[28].mxu1  ;;  %v7311_v30 = vadd.f32 %v7295_v58, %v7275_v56 }
 0x640   : > { %v7323_v37 = vadd.f32 %v7872_v26, %v11395_v48  ;;  %v6607_v24 = vadd.f32 %v8854_v59, %v11345_v54  ;;  %v6601_v31 = vpop.f32.mrb[29].mxu1 }
 0x641   : > { %v7322_v23 = vadd.f32 %v7871_v35, %v7306_v25  ;;  %v6602_v2 = vadd.f32 %v11345_v54, %v6601_v31 }
 0x642   : > { %7339 = vst.msk [vmem:[%s11366_s21 + $0x48] sm:$0xff] %vm6678_vm0, %v7323_v37  ;;  %v7874_v3 = vclamps-f32 %v6607_v24, 256.0 }
 0x643   : > { %7338 = vst.msk [vmem:[%s11366_s21 + $0x40] sm:$0xff] %vm6678_vm0, %v7322_v23  ;;  %v7873_v48 = vclamps-f32 %v6602_v2, 256.0  ;;  %v8857_v0 = vpop.f32.mrb[30].mxu1 }
 0x644   : > { %v7325_v47 = vadd.f32 %v7874_v3, %v7309_v10  ;;  %v6617_v20 = vadd.f32 %v8857_v0, %v11345_v54  ;;  %v6611_v17 = vpop.f32.mrb[31].mxu1 }
 0x645   : > { %v7324_v36 = vadd.f32 %v7873_v48, %v7308_v45  ;;  %v6612_v32 = vadd.f32 %v11345_v54, %v6611_v17 }
 0x646   : > { %7341 = vst.msk [vmem:[%s11366_s21 + $0x58] sm:$0xff] %vm6678_vm0, %v7325_v47  ;;  %v7876_v11 = vclamps-f32 %v6617_v20, 256.0 }
 0x647   : > { %7340 = vst.msk [vmem:[%s11366_s21 + $0x50] sm:$0xff] %vm6678_vm0, %v7324_v36  ;;  %v7875_v16 = vclamps-f32 %v6612_v32, 256.0  ;;  %v8860_v42 = vpop.f32.mrb[32].mxu1 }
 0x648   : > { %v7327_v25 = vadd.f32 %v7876_v11, %v7311_v30  ;;  %v6627_v15 = vadd.f32 %v8860_v42, %v11345_v54  ;;  %v6621_v50 = vpop.f32.mrb[33].mxu1 }
 0x649   : > { %v7326_v55 = vadd.f32 %v7875_v16, %v7310_v8  ;;  %v6622_v28 = vadd.f32 %v11345_v54, %v6621_v50 }
 0x64a   : > { %7343 = vst.msk [vmem:[%s11366_s21 + $0x68] sm:$0xff] %vm6678_vm0, %v7327_v25  ;;  %v7878_v49 = vclamps-f32 %v6627_v15, 256.0 }
 0x64b   : > { %7342 = vst.msk [vmem:[%s11366_s21 + $0x60] sm:$0xff] %vm6678_vm0, %v7326_v55  ;;  %v7877_v46 = vclamps-f32 %v6622_v28, 256.0 }
 0x64c   : > { %v7329_v62 = vadd.f32 %v7878_v49, %v7313_v38 }
 0x64d   : > { %v7328_v60 = vadd.f32 %v7877_v46, %v7312_v12 }
 0x64e   : > { %7345 = vst.msk [vmem:[%s11366_s21 + $0x78] sm:$0x1] %vm6694_vm8, %v7329_v62 }
 0x64f   : > { %7344 = vst.msk [vmem:[%s11366_s21 + $0x70] sm:$0xff] %vm6678_vm0, %v7328_v60 }
 0x650 PF: > { %s29_s27 = sadd.s32 1, %s9276_s27  }
 0x651   : > { %p26_p4 = scmp.ge.s32.totalorder %s29_s27, 4  }
 0x653   :  { %28 = sbr.rel (!%p26_p4) target bundleno = 4 (0x4), region = 152 }

</bundles_post_ra>
